<compile_context>
chip_gen: v7x
topology: tpu7x:2x2x1
jax: 0.10.0
libtpu: 0.0.40
codegen_flags: <defaults>
</compile_context>

<pallas_src>
import math

import jax
import jax.numpy as jnp
from jax.experimental import pallas as pl
from jax.experimental.pallas import tpu as pltpu

VERY_NEG_NUMBER = -100000000000.0

# ---- config (mirrors the PyTorch config dict) -------------------------------
NUM_LAYER = 3
NUM_RELATION = 6          # R1 = NUM_RELATION + 1 (padding row)
NUM_ENTITY = 40
NUM_WORD = 50
ENTITY_DIM = 128          # lane-aligned so gate slices stay 128-aligned
WORD_DIM = 32
KGE_DIM = 16

B = 2                     # batch_size
MAX_LOCAL_ENTITY = 16
MAX_FACT = 8
MAX_QUERY_WORD = 8

# derived packing constants
LSTM_ROWS = 8             # 2*B stacked fwd/bwd rows, padded to one sublane tile
REL_ROWS = 16             # (NUM_RELATION+1)=7 relation rows padded to 16
OUT_ROWS = 8
OUT_LANES = 128


def graphmem_kernel(lstm_w_ref, bias_ref, batch_ref, scal_ref,
                    gru_hbm, entrel_hbm, out_ref,
                    gru_buf, er_buf, gi_buf, dma_sem):
    f32 = jnp.float32
    bf16 = jnp.bfloat16
    D = ENTITY_DIM
    Wd = WORD_DIM
    K = KGE_DIM
    E = MAX_LOCAL_ENTITY
    Q = MAX_QUERY_WORD
    S = LSTM_ROWS
    R1 = NUM_RELATION + 1
    R1P = REL_ROWS

    # SMEM scalar reads up front (before any DMA .wait()).
    w_state = scal_ref[0]
    w_query = scal_ref[1]

    # Kick off the deferred weight DMAs; they complete under the LSTM recurrence.
    cp_gru = pltpu.make_async_copy(gru_hbm, gru_buf, dma_sem.at[0])
    cp_er = pltpu.make_async_copy(entrel_hbm, er_buf, dma_sem.at[1])
    cp_gru.start()
    cp_er.start()

    # ---------------- static slices out of the eager operands -----------------
    w_ih_blk = lstm_w_ref[0:2 * Wd, :]                       # (64, 4D) bf16 (i,f,o,g)
    w_hh_blk = lstm_w_ref[2 * Wd:2 * Wd + 2 * D, :]          # (256, 4D)

    b_lstm_f = bias_ref[0:1, :]                              # (1, 4D) f32 (i,f,o,g)
    b_lstm_b = bias_ref[1:2, :]
    gru_bih = bias_ref[2:3, 0:3 * D]
    gru_bhh = bias_ref[3:4, 0:3 * D]
    b_ent = bias_ref[4:5, 0:D]
    b_rel = bias_ref[5:6, 0:D]

    r = 0
    x_blk = batch_ref[r:r + Q * S, :];          r += Q * S   # (Q*S, 2Wd)
    entkge = batch_ref[r:r + B * E, 0:K];       r += B * E   # (B*E, K)
    e2e = batch_ref[r:r + B * E, 0:E].reshape(B, E, E); r += B * E
    start0 = batch_ref[r:r + B, 0:E];           r += 8       # (B, E)
    mask = batch_ref[r:r + B, 0:E];             r += 8
    ans = batch_ref[r:r + B, 0:E]

    # ---------------- bidirectional LSTM, both directions interleaved ---------
    ridx = jax.lax.broadcasted_iota(jnp.int32, (S, 1), 0)
    sel_f = (ridx < B).astype(f32)                           # rows 0..B-1  : fwd
    sel_b = ((ridx >= B) & (ridx < 2 * B)).astype(f32)       # rows B..2B-1 : bwd
    sel_f_b = sel_f.astype(bf16)
    sel_b_b = sel_b.astype(bf16)
    bias_rows = sel_f * b_lstm_f + sel_b * b_lstm_b          # (S, 4D), hoisted

    # All input projections (both directions, every timestep) in one matmul,
    # parked in VMEM scratch so the result does not occupy vregs across the loop.
    gi_buf[...] = jnp.dot(x_blk.astype(bf16), w_ih_blk, preferred_element_type=f32)

    h = jnp.zeros((S, D), f32)
    c = jnp.zeros((S, D), f32)
    for t in range(Q):
        gi_t = gi_buf[t * S:(t + 1) * S, :]                  # 8-row aligned slice
        h_b = h.astype(bf16)
        h_blk = jnp.concatenate([h_b * sel_f_b, h_b * sel_b_b], axis=1)  # (S,2D) bf16
        g = gi_t + bias_rows + jnp.dot(h_blk, w_hh_blk, preferred_element_type=f32)
        sg = jax.nn.sigmoid(g[:, 0:3 * D])                   # gates (i, f, o) at once
        i_g = sg[:, 0:D]
        f_g = sg[:, D:2 * D]
        o_g = sg[:, 2 * D:3 * D]
        g_g = jnp.tanh(g[:, 3 * D:4 * D])
        c = f_g * c + i_g * g_g
        h = o_g * jnp.tanh(c)
    # rows 0:B = final fwd hidden, rows B:2B = final bwd hidden
    query_node_emb = (h[0:B, :] + h[B:2 * B, :]) * 0.5       # (B, D)

    # ---------------- late weights needed from here on: wait on deferred DMAs -
    cp_gru.wait()
    cp_er.wait()

    gru_wih = gru_buf[0:D, :]                                # (D, 3D) bf16
    gru_whh = gru_buf[D:2 * D, :]
    w_ent = er_buf[0:K, :]                                   # (K, D) bf16
    w_rel_k = er_buf[K:K + D, :]                             # (D, D) (rows>=Wd zero)
    rel_raw = er_buf[K + D:K + D + R1P, :]                   # (16, D) lanes 0:Wd real

    # ---------------- entity / relation embeddings through their linears ------
    ent_emb = (jnp.dot(entkge.astype(bf16), w_ent, preferred_element_type=f32)
               + b_ent).reshape(B, E, D)                     # (B, E, D)
    rel_lin = jnp.dot(rel_raw, w_rel_k, preferred_element_type=f32) + b_rel  # (R1P,D) f32
    # rows >= R1 are artificial padding: mask them out of the softmax exactly
    rel_mask = jnp.where(
        jax.lax.broadcasted_iota(jnp.int32, (1, R1P), 1) >= R1,
        -1e30, 0.0).astype(f32)

    # entity_state = bmm(start.unsqueeze(1), local_entity_emb).squeeze()
    entity_state = jnp.sum(start0[:, :, None] * ent_emb, axis=1)            # (B, D)

    # ---------------- GRU decoder with relation attention (attention in f32) --
    inv_sqrt_d = 1.0 / math.sqrt(D)
    hidden = query_node_emb
    dec_in = jnp.zeros_like(hidden)
    aggr_hist = None
    for _ in range(NUM_LAYER):
        gi = jnp.dot(dec_in.astype(bf16), gru_wih, preferred_element_type=f32) + gru_bih
        gh = jnp.dot(hidden.astype(bf16), gru_whh, preferred_element_type=f32) + gru_bhh
        rg = jax.nn.sigmoid(gi[:, 0:D] + gh[:, 0:D])
        zg = jax.nn.sigmoid(gi[:, D:2 * D] + gh[:, D:2 * D])
        ng = jnp.tanh(gi[:, 2 * D:3 * D] + rg * gh[:, 2 * D:3 * D])
        hidden = (1.0 - zg) * ng + zg * hidden                              # GRUCell
        # contract feature dims directly -- no rel_lin transpose on the XLU
        q2r = jax.lax.dot_general(hidden, rel_lin,
                                  (((1,), (1,)), ((), ())),
                                  preferred_element_type=f32)               # (B, R1P)
        sc = q2r * inv_sqrt_d + rel_mask
        sc = sc - jnp.max(sc, axis=1, keepdims=True)
        p = jnp.exp(sc)
        attn = p / jnp.sum(p, axis=1, keepdims=True)                        # softmax dim=1
        aggr = jnp.dot(attn, rel_lin, preferred_element_type=f32)           # (B, D) f32
        aggr_hist = aggr if aggr_hist is None else aggr_hist * aggr
        dec_in = aggr

    latent_rel = aggr_hist * w_state + query_node_emb * w_query             # (B, D)
    v = entity_state * latent_rel
    # kge_scores = bmm(v.unsqueeze(1), ent_emb.transpose(1,2)).squeeze()
    kge_scores = jnp.sum(v[:, None, :] * ent_emb, axis=2)                   # (B, E)

    # ---------------- multi-hop entity traversal ------------------------------
    start = start0
    traverse = start0
    for _ in range(NUM_LAYER):
        end = jnp.sum(e2e * start[:, None, :], axis=2) + traverse           # (B, E)
        end = jnp.where(end > 0.0, 1.0, end)                                # end[end>0]=1
        end = end - traverse
        start = end
        traverse = traverse + end

    # ---------------- loss / score / predictions ------------------------------
    x = kge_scores
    # BCEWithLogitsLoss (reduction='mean'): max(x,0) - x*y + log(1 + exp(-|x|))
    bce = jnp.maximum(x, 0.0) - x * ans + jnp.log(1.0 + jnp.exp(-jnp.abs(x)))
    loss = jnp.mean(bce)

    score = (x + (1.0 - mask) * VERY_NEG_NUMBER
             + (1.0 - traverse) * VERY_NEG_NUMBER)
    pdist = jax.nn.sigmoid(score) * mask

    # argmax along dim=1 (first max index)
    mx = jnp.max(score, axis=1, keepdims=True)
    idx = jax.lax.broadcasted_iota(jnp.int32, score.shape, 1)
    cand = jnp.where(score == mx, idx, jnp.int32(E))
    pred_f = jnp.min(cand, axis=1, keepdims=True).astype(f32)               # (B, 1)

    # epilogue: zero-fill once + masked sub-slice stores (no lane concatenation)
    out_ref[...] = jnp.zeros((OUT_ROWS, OUT_LANES), f32)
    out_ref[0:B, 0:E] = pdist
    out_ref[0:B, E:E + 1] = pred_f
    out_ref[0:B, E + 1:E + 2] = jnp.zeros((B, 1), f32) + loss


# ---------------- parameter init (deterministic, synthetic) ------------------
def init_params(key):
    D, Wd, K = ENTITY_DIM, WORD_DIM, KGE_DIM
    R1 = NUM_RELATION + 1
    keys = jax.random.split(key, 17)

    def u(k, shape, scale=0.1):
        return jax.random.uniform(k, shape, jnp.float32, -1.0, 1.0) * scale

    # embedding tables with zeroed padding rows (padding_idx semantics)
    word_emb = u(keys[0], (NUM_WORD + 1, Wd)).at[NUM_WORD].set(0.0)
    entity_kge = u(keys[1], (NUM_ENTITY + 1, K)).at[NUM_ENTITY].set(0.0)
    rel_emb = u(keys[2], (R1, Wd)).at[NUM_RELATION].set(0.0)

    return dict(
        word_emb=word_emb,
        entity_kge=entity_kge,
        rel_emb=rel_emb,
        w_ent=u(keys[3], (K, D)),
        b_ent=u(keys[4], (1, D)),
        w_rel=u(keys[5], (Wd, D)),
        b_rel=u(keys[6], (1, D)),
        lstm_wih_f=u(keys[7], (Wd, 4 * D)),    # gate order (i, f, g, o)
        lstm_whh_f=u(keys[8], (D, 4 * D)),
        lstm_b_f=u(keys[9], (1, 4 * D)),       # b_ih + b_hh folded
        lstm_wih_b=u(keys[10], (Wd, 4 * D)),
        lstm_whh_b=u(keys[11], (D, 4 * D)),
        lstm_b_b=u(keys[12], (1, 4 * D)),
        gru_wih=u(keys[13], (D, 3 * D)),
        gru_whh=u(keys[14], (D, 3 * D)),
        gru_bih=u(keys[15], (1, 3 * D)),
        gru_bhh=u(keys[16], (1, 3 * D)),
        w_state=jnp.ones((1, 1), jnp.float32),  # state_rel_score_weight (init ones)
        w_query=jnp.ones((1, 1), jnp.float32),  # query_rel_score_weight (init ones)
    )


# ---------------- one-time, call-invariant weight packing --------------------
def pack_params(params):
    D, Wd, K = ENTITY_DIM, WORD_DIM, KGE_DIM
    f32 = jnp.float32

    def pad_lanes(x, lanes):
        return jnp.concatenate(
            [x, jnp.zeros((x.shape[0], lanes - x.shape[1]), x.dtype)], axis=1)

    def pad_rows(x, rows):
        return jnp.concatenate(
            [x, jnp.zeros((rows - x.shape[0], x.shape[1]), x.dtype)], axis=0)

    def reorder_gates(w):
        # LSTM gate columns (i, f, g, o) -> (i, f, o, g): kernel does one sigmoid
        # over the first 3*D lanes and one tanh over the last D lanes.
        return jnp.concatenate(
            [w[:, 0:2 * D], w[:, 3 * D:4 * D], w[:, 2 * D:3 * D]], axis=1)

    # (1) early LSTM slab (needed at t=0 -> eager auto-DMA), bf16 (320, 512)
    lstm_slab = jnp.concatenate([
        jnp.concatenate([reorder_gates(params['lstm_wih_f']),
                         reorder_gates(params['lstm_wih_b'])], axis=0),
        jnp.concatenate([reorder_gates(params['lstm_whh_f']),
                         reorder_gates(params['lstm_whh_b'])], axis=0),
    ], axis=0).astype(jnp.bfloat16)

    # (2) late GRU slab (deferred manual DMA), bf16, natural 3*D lanes: (256, 384)
    gru_slab = jnp.concatenate(
        [params['gru_wih'], params['gru_whh']], axis=0).astype(jnp.bfloat16)

    # (3) late entity/relation slab, bf16, natural D lanes: (160, 128)
    w_rel_k = pad_rows(params['w_rel'], D)                       # rows >= Wd zero
    rel_raw = pad_lanes(pad_rows(params['rel_emb'], REL_ROWS), D)
    entrel_slab = jnp.concatenate(
        [params['w_ent'], w_rel_k, rel_raw], axis=0).astype(jnp.bfloat16)

    # (4) f32 bias slab (8, 512)
    bias_slab = jnp.concatenate([
        reorder_gates(params['lstm_b_f']), reorder_gates(params['lstm_b_b']),
        pad_lanes(params['gru_bih'], 4 * D), pad_lanes(params['gru_bhh'], 4 * D),
        pad_lanes(params['b_ent'], 4 * D), pad_lanes(params['b_rel'], 4 * D),
        jnp.zeros((2, 4 * D), f32),
    ], axis=0)

    # (5) SMEM scalars
    scalars = jnp.concatenate([params['w_state'].reshape(1),
                               params['w_query'].reshape(1)])    # (2,)

    return dict(
        lstm_slab=lstm_slab, gru_slab=gru_slab, entrel_slab=entrel_slab,
        bias_slab=bias_slab, scalars=scalars,
        word_emb=params['word_emb'], entity_kge=params['entity_kge'],
    )


# ---------------- wrapper (per-call work only: gathers + batch slab) ----------
def graphmem_forward(packed, batch):
    (local_entity, q2e_adj_mat, kb_adj_mat, kb_fact_rel,
     query_text, answer_dist) = batch
    # only entity2entity_mat is used by the reference forward
    (_f2e, _f2er, _e2f, entity2entity_mat, _r2f, _f2r) = kb_adj_mat

    f32 = jnp.float32
    B_, E_ = local_entity.shape
    Q_ = query_text.shape[1]
    D, Wd, K = ENTITY_DIM, WORD_DIM, KGE_DIM
    S = LSTM_ROWS
    assert B_ == B and E_ == MAX_LOCAL_ENTITY and Q_ == MAX_QUERY_WORD

    # glue: embedding gathers + masks (cheap, index-based, outside the kernel)
    qw_emb = packed['word_emb'][query_text]            # (B, Q, Wd)
    ent_kge_emb = packed['entity_kge'][local_entity]   # (B, E, K)
    local_entity_mask = (local_entity != NUM_ENTITY).astype(f32)
    start_entities = q2e_adj_mat[..., 0].astype(f32)
    e2e = entity2entity_mat.astype(f32)
    answer = answer_dist.astype(f32)

    def pad_lanes(x, lanes):
        return jnp.concatenate(
            [x, jnp.zeros((x.shape[0], lanes - x.shape[1]), x.dtype)], axis=1)

    def pad_rows(x, rows):
        return jnp.concatenate(
            [x, jnp.zeros((rows - x.shape[0], x.shape[1]), x.dtype)], axis=0)

    # f32 batch slab, lane width 2*Wd = 64
    qw_f = jnp.transpose(qw_emb, (1, 0, 2))                    # (Q, B, Wd)
    qw_b = jnp.transpose(qw_emb[:, ::-1, :], (1, 0, 2))        # time-reversed
    zpad = jnp.zeros((Q_, B_, Wd), f32)
    x_blk = jnp.concatenate([
        jnp.concatenate([qw_f, zpad], axis=2),                 # fwd rows: lanes 0:Wd
        jnp.concatenate([zpad, qw_b], axis=2),                 # bwd rows: lanes Wd:2Wd
        jnp.zeros((Q_, S - 2 * B_, 2 * Wd), f32),
    ], axis=1).reshape(Q_ * S, 2 * Wd)                         # (64, 64)
    batch_slab = jnp.concatenate([
        x_blk,
        pad_lanes(ent_kge_emb.reshape(B_ * E_, K), 2 * Wd),
        pad_lanes(e2e.reshape(B_ * E_, E_), 2 * Wd),
        pad_rows(pad_lanes(start_entities, 2 * Wd), 8),
        pad_rows(pad_lanes(local_entity_mask, 2 * Wd), 8),
        pad_rows(pad_lanes(answer, 2 * Wd), 8),
    ], axis=0)                                                 # (152, 64)

    vmem = pl.BlockSpec(memory_space=pltpu.MemorySpace.VMEM)
    smem = pl.BlockSpec(memory_space=pltpu.MemorySpace.SMEM)
    anyspace = pl.BlockSpec(memory_space=pl.ANY)

    out = pl.pallas_call(
        graphmem_kernel,
        out_shape=jax.ShapeDtypeStruct((OUT_ROWS, OUT_LANES), jnp.float32),
        in_specs=[vmem, vmem, vmem, smem, anyspace, anyspace],
        out_specs=vmem,
        scratch_shapes=[
            pltpu.VMEM((2 * D, 3 * D), jnp.bfloat16),                 # gru weights
            pltpu.VMEM((K + D + REL_ROWS, D), jnp.bfloat16),          # ent/rel weights
            pltpu.VMEM((MAX_QUERY_WORD * S, 4 * D), jnp.float32),     # LSTM input proj
            pltpu.SemaphoreType.DMA((2,)),
        ],
        cost_estimate=pl.CostEstimate(
            flops=23_000_000, transcendentals=45_000, bytes_accessed=640_000),
    )(packed['lstm_slab'], packed['bias_slab'], batch_slab, packed['scalars'],
      packed['gru_slab'], packed['entrel_slab'])

    pred_dist = out[:B_, :E_]
    pred = out[:B_, E_].astype(jnp.int32)
    loss = out[0, E_ + 1]
    return loss, pred, pred_dist


if __name__ == "__main__":
    key = jax.random.PRNGKey(0)
    pkey, dkey = jax.random.split(key)
    params = init_params(pkey)
    packed = pack_params(params)       # hoisted: call-invariant weight packing

    ks = jax.random.split(dkey, 6)
    local_entity = jax.random.randint(
        ks[0], (B, MAX_LOCAL_ENTITY), 0, NUM_ENTITY + 1, dtype=jnp.int32)
    q2e_adj_mat = (jax.random.uniform(ks[1], (B, MAX_LOCAL_ENTITY, 1))
                   < 0.25).astype(jnp.float32)
    entity2entity_mat = (jax.random.uniform(
        ks[2], (B, MAX_LOCAL_ENTITY, MAX_LOCAL_ENTITY)) < 0.2).astype(jnp.float32)
    kb_fact_rel = jax.random.randint(
        ks[3], (B, MAX_FACT), 0, NUM_RELATION + 1, dtype=jnp.int32)
    query_text = jax.random.randint(
        ks[4], (B, MAX_QUERY_WORD), 0, NUM_WORD + 1, dtype=jnp.int32)
    answer_dist = (jax.random.uniform(ks[5], (B, MAX_LOCAL_ENTITY))
                   < 0.2).astype(jnp.float32)

    # the other 5 sparse adjacency matrices are not used by forward()
    kb_adj_mat = (None, None, None, entity2entity_mat, None, None)
    batch = (local_entity, q2e_adj_mat, kb_adj_mat, kb_fact_rel,
             query_text, answer_dist)

    loss, pred, pred_dist = graphmem_forward(packed, batch)
    jax.block_until_ready((loss, pred, pred_dist))
    print("KERNEL_OK")
</pallas_src>

<mosaic_0001>
module attributes {stable_mosaic.version = 11 : i64} {
  func.func @graphmem_kernel(%arg0: memref<320x512xbf16, #tpu.memory_space<vmem>>, %arg1: memref<8x512xf32, #tpu.memory_space<vmem>>, %arg2: memref<152x64xf32, #tpu.memory_space<vmem>>, %arg3: memref<2xf32, #tpu.memory_space<smem>>, %arg4: memref<256x384xbf16, #tpu.memory_space<any>>, %arg5: memref<160x128xbf16, #tpu.memory_space<any>>, %arg6: memref<8x128xf32, #tpu.memory_space<vmem>>, %arg7: memref<256x384xbf16, #tpu.memory_space<vmem>>, %arg8: memref<160x128xbf16, #tpu.memory_space<vmem>>, %arg9: memref<64x512xf32, #tpu.memory_space<vmem>>, %arg10: memref<2x!tpu.dma_semaphore, #tpu.memory_space<semaphore_mem>>) attributes {dimension_semantics = [], scalar_prefetch = 0 : i64, scratch_operands = 4 : i64, tpu.core_type = #tpu.core_type<tc>} {
    %c0 = arith.constant 0 : index
    %0 = memref.load %arg3[%c0] : memref<2xf32, #tpu.memory_space<smem>>
    %c1 = arith.constant 1 : index
    %1 = memref.load %arg3[%c1] : memref<2xf32, #tpu.memory_space<smem>>
    %c0_i32 = arith.constant 0 : i32
    %2 = tpu.memref_slice %arg10[%c0_i32] : memref<2x!tpu.dma_semaphore, #tpu.memory_space<semaphore_mem>> -> memref<1x!tpu.dma_semaphore, #tpu.memory_space<semaphore_mem>>
    %3 = tpu.memref_squeeze %2 : memref<1x!tpu.dma_semaphore, #tpu.memory_space<semaphore_mem>> -> memref<!tpu.dma_semaphore, #tpu.memory_space<semaphore_mem>>
    tpu.enqueue_dma source(%arg4 : memref<256x384xbf16, #tpu.memory_space<any>>) target(%arg7 : memref<256x384xbf16, #tpu.memory_space<vmem>>) target_semaphore(%3 : memref<!tpu.dma_semaphore, #tpu.memory_space<semaphore_mem>>)
    %c1_i32 = arith.constant 1 : i32
    %4 = tpu.memref_slice %arg10[%c1_i32] : memref<2x!tpu.dma_semaphore, #tpu.memory_space<semaphore_mem>> -> memref<1x!tpu.dma_semaphore, #tpu.memory_space<semaphore_mem>>
    %5 = tpu.memref_squeeze %4 : memref<1x!tpu.dma_semaphore, #tpu.memory_space<semaphore_mem>> -> memref<!tpu.dma_semaphore, #tpu.memory_space<semaphore_mem>>
    tpu.enqueue_dma source(%arg5 : memref<160x128xbf16, #tpu.memory_space<any>>) target(%arg8 : memref<160x128xbf16, #tpu.memory_space<vmem>>) target_semaphore(%5 : memref<!tpu.dma_semaphore, #tpu.memory_space<semaphore_mem>>)
    %c0_0 = arith.constant 0 : index
    %c0_1 = arith.constant 0 : index
    %6 = vector.load %arg0[%c0_0, %c0_1] : memref<320x512xbf16, #tpu.memory_space<vmem>>, vector<64x512xbf16>
    %c64 = arith.constant 64 : index
    %c0_2 = arith.constant 0 : index
    %7 = vector.load %arg0[%c64, %c0_2] : memref<320x512xbf16, #tpu.memory_space<vmem>>, vector<256x512xbf16>
    %c0_3 = arith.constant 0 : index
    %c0_4 = arith.constant 0 : index
    %8 = vector.load %arg1[%c0_3, %c0_4] : memref<8x512xf32, #tpu.memory_space<vmem>>, vector<1x512xf32>
    %c1_5 = arith.constant 1 : index
    %c0_6 = arith.constant 0 : index
    %9 = vector.load %arg1[%c1_5, %c0_6] : memref<8x512xf32, #tpu.memory_space<vmem>>, vector<1x512xf32>
    %c2 = arith.constant 2 : index
    %c0_7 = arith.constant 0 : index
    %10 = vector.load %arg1[%c2, %c0_7] : memref<8x512xf32, #tpu.memory_space<vmem>>, vector<1x384xf32>
    %c3 = arith.constant 3 : index
    %c0_8 = arith.constant 0 : index
    %11 = vector.load %arg1[%c3, %c0_8] : memref<8x512xf32, #tpu.memory_space<vmem>>, vector<1x384xf32>
    %c4 = arith.constant 4 : index
    %c0_9 = arith.constant 0 : index
    %12 = vector.load %arg1[%c4, %c0_9] : memref<8x512xf32, #tpu.memory_space<vmem>>, vector<1x128xf32>
    %c5 = arith.constant 5 : index
    %c0_10 = arith.constant 0 : index
    %13 = vector.load %arg1[%c5, %c0_10] : memref<8x512xf32, #tpu.memory_space<vmem>>, vector<1x128xf32>
    %c0_11 = arith.constant 0 : index
    %c0_12 = arith.constant 0 : index
    %14 = vector.load %arg2[%c0_11, %c0_12] : memref<152x64xf32, #tpu.memory_space<vmem>>, vector<64x64xf32>
    %c64_13 = arith.constant 64 : index
    %c0_14 = arith.constant 0 : index
    %15 = vector.load %arg2[%c64_13, %c0_14] : memref<152x64xf32, #tpu.memory_space<vmem>>, vector<32x16xf32>
    %c96 = arith.constant 96 : index
    %c0_15 = arith.constant 0 : index
    %16 = vector.load %arg2[%c96, %c0_15] : memref<152x64xf32, #tpu.memory_space<vmem>>, vector<32x16xf32>
    %17 = vector.shape_cast %16 : vector<32x16xf32> to vector<2x16x16xf32>
    %c128 = arith.constant 128 : index
    %c0_16 = arith.constant 0 : index
    %18 = vector.load %arg2[%c128, %c0_16] : memref<152x64xf32, #tpu.memory_space<vmem>>, vector<2x16xf32>
    %c136 = arith.constant 136 : index
    %c0_17 = arith.constant 0 : index
    %19 = vector.load %arg2[%c136, %c0_17] : memref<152x64xf32, #tpu.memory_space<vmem>>, vector<2x16xf32>
    %c144 = arith.constant 144 : index
    %c0_18 = arith.constant 0 : index
    %20 = vector.load %arg2[%c144, %c0_18] : memref<152x64xf32, #tpu.memory_space<vmem>>, vector<2x16xf32>
    %21 = tpu.iota {dimensions = array<i32: 0>} : vector<8x1xi32>
    %c2_i32 = arith.constant 2 : i32
    %22 = vector.broadcast %c2_i32 : i32 to vector<8x1xi32>
    %23 = arith.cmpi slt, %21, %22 : vector<8x1xi32>
    %24 = arith.extui %23 : vector<8x1xi1> to vector<8x1xi32>
    %25 = arith.sitofp %24 : vector<8x1xi32> to vector<8x1xf32>
    %c2_i32_19 = arith.constant 2 : i32
    %26 = vector.broadcast %c2_i32_19 : i32 to vector<8x1xi32>
    %27 = arith.cmpi sge, %21, %26 : vector<8x1xi32>
    %c4_i32 = arith.constant 4 : i32
    %28 = vector.broadcast %c4_i32 : i32 to vector<8x1xi32>
    %29 = arith.cmpi slt, %21, %28 : vector<8x1xi32>
    %30 = arith.andi %27, %29 : vector<8x1xi1>
    %31 = arith.extui %30 : vector<8x1xi1> to vector<8x1xi32>
    %32 = arith.sitofp %31 : vector<8x1xi32> to vector<8x1xf32>
    %33 = arith.truncf %25 : vector<8x1xf32> to vector<8x1xbf16>
    %34 = arith.truncf %32 : vector<8x1xf32> to vector<8x1xbf16>
    %35 = vector.broadcast %25 : vector<8x1xf32> to vector<8x512xf32>
    %36 = vector.broadcast %8 : vector<1x512xf32> to vector<8x512xf32>
    %37 = arith.mulf %35, %36 : vector<8x512xf32>
    %38 = vector.broadcast %32 : vector<8x1xf32> to vector<8x512xf32>
    %39 = vector.broadcast %9 : vector<1x512xf32> to vector<8x512xf32>
    %40 = arith.mulf %38, %39 : vector<8x512xf32>
    %41 = arith.addf %37, %40 : vector<8x512xf32>
    %42 = arith.truncf %14 : vector<64x64xf32> to vector<64x64xbf16>
    %cst = arith.constant dense<0.000000e+00> : vector<64x512xf32>
    %43 = tpu.matmul %42, %6, %cst {dimension_numbers = #tpu.dot_dimension_numbers<[1], [0], [0], [1], [0, 0, 1, 1], [], []>} : vector<64x64xbf16>, vector<64x512xbf16>, vector<64x512xf32> -> vector<64x512xf32>
    %c0_20 = arith.constant 0 : index
    %c0_21 = arith.constant 0 : index
    %44 = vector.load %arg9[%c0_20, %c0_21] : memref<64x512xf32, #tpu.memory_space<vmem>>, vector<64x512xf32>
    tpu.vector_store %arg9[%c0_20, %c0_21], %43 {strides = array<i32>} : memref<64x512xf32, #tpu.memory_space<vmem>>, vector<64x512xf32>,
    %cst_22 = arith.constant 0.000000e+00 : f32
    %45 = vector.broadcast %cst_22 : f32 to vector<8x128xf32>
    %cst_23 = arith.constant 0.000000e+00 : f32
    %46 = vector.broadcast %cst_23 : f32 to vector<8x128xf32>
    %c0_24 = arith.constant 0 : index
    %c0_25 = arith.constant 0 : index
    %47 = vector.load %arg9[%c0_24, %c0_25] : memref<64x512xf32, #tpu.memory_space<vmem>>, vector<8x512xf32>
    %48 = arith.truncf %45 : vector<8x128xf32> to vector<8x128xbf16>
    %49 = vector.broadcast %33 : vector<8x1xbf16> to vector<8x128xbf16>
    %50 = arith.mulf %48, %49 : vector<8x128xbf16>
    %51 = vector.broadcast %34 : vector<8x1xbf16> to vector<8x128xbf16>
    %52 = arith.mulf %48, %51 : vector<8x128xbf16>
    %53 = tpu.concatenate %50, %52 in 1 : vector<8x128xbf16>, vector<8x128xbf16> -> vector<8x256xbf16>
    %54 = arith.addf %47, %41 : vector<8x512xf32>
    %cst_26 = arith.constant dense<0.000000e+00> : vector<8x512xf32>
    %55 = tpu.matmul %53, %7, %cst_26 {dimension_numbers = #tpu.dot_dimension_numbers<[1], [0], [0], [1], [0, 0, 1, 1], [], []>} : vector<8x256xbf16>, vector<256x512xbf16>, vector<8x512xf32> -> vector<8x512xf32>
    %56 = arith.addf %54, %55 : vector<8x512xf32>
    %57 = vector.extract_strided_slice %56 {offsets = [0, 0], sizes = [8, 384], strides = [1, 1]} : vector<8x512xf32> to vector<8x384xf32>
    %58 = arith.negf %57 : vector<8x384xf32>
    %59 = math.exp %58 : vector<8x384xf32>
    %cst_27 = arith.constant 1.000000e+00 : f32
    %60 = vector.broadcast %cst_27 : f32 to vector<8x384xf32>
    %61 = arith.addf %60, %59 : vector<8x384xf32>
    %62 = arith.divf %60, %61 : vector<8x384xf32>
    %63 = vector.extract_strided_slice %62 {offsets = [0, 0], sizes = [8, 128], strides = [1, 1]} : vector<8x384xf32> to vector<8x128xf32>
    %64 = vector.extract_strided_slice %62 {offsets = [0, 128], sizes = [8, 128], strides = [1, 1]} : vector<8x384xf32> to vector<8x128xf32>
    %65 = vector.extract_strided_slice %62 {offsets = [0, 256], sizes = [8, 128], strides = [1, 1]} : vector<8x384xf32> to vector<8x128xf32>
    %66 = vector.extract_strided_slice %56 {offsets = [0, 384], sizes = [8, 128], strides = [1, 1]} : vector<8x512xf32> to vector<8x128xf32>
    %67 = math.tanh %66 : vector<8x128xf32>
    %68 = arith.mulf %64, %46 : vector<8x128xf32>
    %69 = arith.mulf %63, %67 : vector<8x128xf32>
    %70 = arith.addf %68, %69 : vector<8x128xf32>
    %71 = math.tanh %70 : vector<8x128xf32>
    %72 = arith.mulf %65, %71 : vector<8x128xf32>
    %c8 = arith.constant 8 : index
    %c0_28 = arith.constant 0 : index
    %73 = vector.load %arg9[%c8, %c0_28] : memref<64x512xf32, #tpu.memory_space<vmem>>, vector<8x512xf32>
    %74 = arith.truncf %72 : vector<8x128xf32> to vector<8x128xbf16>
    %75 = vector.broadcast %33 : vector<8x1xbf16> to vector<8x128xbf16>
    %76 = arith.mulf %74, %75 : vector<8x128xbf16>
    %77 = vector.broadcast %34 : vector<8x1xbf16> to vector<8x128xbf16>
    %78 = arith.mulf %74, %77 : vector<8x128xbf16>
    %79 = tpu.concatenate %76, %78 in 1 : vector<8x128xbf16>, vector<8x128xbf16> -> vector<8x256xbf16>
    %80 = arith.addf %73, %41 : vector<8x512xf32>
    %cst_29 = arith.constant dense<0.000000e+00> : vector<8x512xf32>
    %81 = tpu.matmul %79, %7, %cst_29 {dimension_numbers = #tpu.dot_dimension_numbers<[1], [0], [0], [1], [0, 0, 1, 1], [], []>} : vector<8x256xbf16>, vector<256x512xbf16>, vector<8x512xf32> -> vector<8x512xf32>
    %82 = arith.addf %80, %81 : vector<8x512xf32>
    %83 = vector.extract_strided_slice %82 {offsets = [0, 0], sizes = [8, 384], strides = [1, 1]} : vector<8x512xf32> to vector<8x384xf32>
    %84 = arith.negf %83 : vector<8x384xf32>
    %85 = math.exp %84 : vector<8x384xf32>
    %cst_30 = arith.constant 1.000000e+00 : f32
    %86 = vector.broadcast %cst_30 : f32 to vector<8x384xf32>
    %87 = arith.addf %86, %85 : vector<8x384xf32>
    %88 = arith.divf %86, %87 : vector<8x384xf32>
    %89 = vector.extract_strided_slice %88 {offsets = [0, 0], sizes = [8, 128], strides = [1, 1]} : vector<8x384xf32> to vector<8x128xf32>
    %90 = vector.extract_strided_slice %88 {offsets = [0, 128], sizes = [8, 128], strides = [1, 1]} : vector<8x384xf32> to vector<8x128xf32>
    %91 = vector.extract_strided_slice %88 {offsets = [0, 256], sizes = [8, 128], strides = [1, 1]} : vector<8x384xf32> to vector<8x128xf32>
    %92 = vector.extract_strided_slice %82 {offsets = [0, 384], sizes = [8, 128], strides = [1, 1]} : vector<8x512xf32> to vector<8x128xf32>
    %93 = math.tanh %92 : vector<8x128xf32>
    %94 = arith.mulf %90, %70 : vector<8x128xf32>
    %95 = arith.mulf %89, %93 : vector<8x128xf32>
    %96 = arith.addf %94, %95 : vector<8x128xf32>
    %97 = math.tanh %96 : vector<8x128xf32>
    %98 = arith.mulf %91, %97 : vector<8x128xf32>
    %c16 = arith.constant 16 : index
    %c0_31 = arith.constant 0 : index
    %99 = vector.load %arg9[%c16, %c0_31] : memref<64x512xf32, #tpu.memory_space<vmem>>, vector<8x512xf32>
    %100 = arith.truncf %98 : vector<8x128xf32> to vector<8x128xbf16>
    %101 = vector.broadcast %33 : vector<8x1xbf16> to vector<8x128xbf16>
    %102 = arith.mulf %100, %101 : vector<8x128xbf16>
    %103 = vector.broadcast %34 : vector<8x1xbf16> to vector<8x128xbf16>
    %104 = arith.mulf %100, %103 : vector<8x128xbf16>
    %105 = tpu.concatenate %102, %104 in 1 : vector<8x128xbf16>, vector<8x128xbf16> -> vector<8x256xbf16>
    %106 = arith.addf %99, %41 : vector<8x512xf32>
    %cst_32 = arith.constant dense<0.000000e+00> : vector<8x512xf32>
    %107 = tpu.matmul %105, %7, %cst_32 {dimension_numbers = #tpu.dot_dimension_numbers<[1], [0], [0], [1], [0, 0, 1, 1], [], []>} : vector<8x256xbf16>, vector<256x512xbf16>, vector<8x512xf32> -> vector<8x512xf32>
    %108 = arith.addf %106, %107 : vector<8x512xf32>
    %109 = vector.extract_strided_slice %108 {offsets = [0, 0], sizes = [8, 384], strides = [1, 1]} : vector<8x512xf32> to vector<8x384xf32>
    %110 = arith.negf %109 : vector<8x384xf32>
    %111 = math.exp %110 : vector<8x384xf32>
    %cst_33 = arith.constant 1.000000e+00 : f32
    %112 = vector.broadcast %cst_33 : f32 to vector<8x384xf32>
    %113 = arith.addf %112, %111 : vector<8x384xf32>
    %114 = arith.divf %112, %113 : vector<8x384xf32>
    %115 = vector.extract_strided_slice %114 {offsets = [0, 0], sizes = [8, 128], strides = [1, 1]} : vector<8x384xf32> to vector<8x128xf32>
    %116 = vector.extract_strided_slice %114 {offsets = [0, 128], sizes = [8, 128], strides = [1, 1]} : vector<8x384xf32> to vector<8x128xf32>
    %117 = vector.extract_strided_slice %114 {offsets = [0, 256], sizes = [8, 128], strides = [1, 1]} : vector<8x384xf32> to vector<8x128xf32>
    %118 = vector.extract_strided_slice %108 {offsets = [0, 384], sizes = [8, 128], strides = [1, 1]} : vector<8x512xf32> to vector<8x128xf32>
    %119 = math.tanh %118 : vector<8x128xf32>
    %120 = arith.mulf %116, %96 : vector<8x128xf32>
    %121 = arith.mulf %115, %119 : vector<8x128xf32>
    %122 = arith.addf %120, %121 : vector<8x128xf32>
    %123 = math.tanh %122 : vector<8x128xf32>
    %124 = arith.mulf %117, %123 : vector<8x128xf32>
    %c24 = arith.constant 24 : index
    %c0_34 = arith.constant 0 : index
    %125 = vector.load %arg9[%c24, %c0_34] : memref<64x512xf32, #tpu.memory_space<vmem>>, vector<8x512xf32>
    %126 = arith.truncf %124 : vector<8x128xf32> to vector<8x128xbf16>
    %127 = vector.broadcast %33 : vector<8x1xbf16> to vector<8x128xbf16>
    %128 = arith.mulf %126, %127 : vector<8x128xbf16>
    %129 = vector.broadcast %34 : vector<8x1xbf16> to vector<8x128xbf16>
    %130 = arith.mulf %126, %129 : vector<8x128xbf16>
    %131 = tpu.concatenate %128, %130 in 1 : vector<8x128xbf16>, vector<8x128xbf16> -> vector<8x256xbf16>
    %132 = arith.addf %125, %41 : vector<8x512xf32>
    %cst_35 = arith.constant dense<0.000000e+00> : vector<8x512xf32>
    %133 = tpu.matmul %131, %7, %cst_35 {dimension_numbers = #tpu.dot_dimension_numbers<[1], [0], [0], [1], [0, 0, 1, 1], [], []>} : vector<8x256xbf16>, vector<256x512xbf16>, vector<8x512xf32> -> vector<8x512xf32>
    %134 = arith.addf %132, %133 : vector<8x512xf32>
    %135 = vector.extract_strided_slice %134 {offsets = [0, 0], sizes = [8, 384], strides = [1, 1]} : vector<8x512xf32> to vector<8x384xf32>
    %136 = arith.negf %135 : vector<8x384xf32>
    %137 = math.exp %136 : vector<8x384xf32>
    %cst_36 = arith.constant 1.000000e+00 : f32
    %138 = vector.broadcast %cst_36 : f32 to vector<8x384xf32>
    %139 = arith.addf %138, %137 : vector<8x384xf32>
    %140 = arith.divf %138, %139 : vector<8x384xf32>
    %141 = vector.extract_strided_slice %140 {offsets = [0, 0], sizes = [8, 128], strides = [1, 1]} : vector<8x384xf32> to vector<8x128xf32>
    %142 = vector.extract_strided_slice %140 {offsets = [0, 128], sizes = [8, 128], strides = [1, 1]} : vector<8x384xf32> to vector<8x128xf32>
    %143 = vector.extract_strided_slice %140 {offsets = [0, 256], sizes = [8, 128], strides = [1, 1]} : vector<8x384xf32> to vector<8x128xf32>
    %144 = vector.extract_strided_slice %134 {offsets = [0, 384], sizes = [8, 128], strides = [1, 1]} : vector<8x512xf32> to vector<8x128xf32>
    %145 = math.tanh %144 : vector<8x128xf32>
    %146 = arith.mulf %142, %122 : vector<8x128xf32>
    %147 = arith.mulf %141, %145 : vector<8x128xf32>
    %148 = arith.addf %146, %147 : vector<8x128xf32>
    %149 = math.tanh %148 : vector<8x128xf32>
    %150 = arith.mulf %143, %149 : vector<8x128xf32>
    %c32 = arith.constant 32 : index
    %c0_37 = arith.constant 0 : index
    %151 = vector.load %arg9[%c32, %c0_37] : memref<64x512xf32, #tpu.memory_space<vmem>>, vector<8x512xf32>
    %152 = arith.truncf %150 : vector<8x128xf32> to vector<8x128xbf16>
    %153 = vector.broadcast %33 : vector<8x1xbf16> to vector<8x128xbf16>
    %154 = arith.mulf %152, %153 : vector<8x128xbf16>
    %155 = vector.broadcast %34 : vector<8x1xbf16> to vector<8x128xbf16>
    %156 = arith.mulf %152, %155 : vector<8x128xbf16>
    %157 = tpu.concatenate %154, %156 in 1 : vector<8x128xbf16>, vector<8x128xbf16> -> vector<8x256xbf16>
    %158 = arith.addf %151, %41 : vector<8x512xf32>
    %cst_38 = arith.constant dense<0.000000e+00> : vector<8x512xf32>
    %159 = tpu.matmul %157, %7, %cst_38 {dimension_numbers = #tpu.dot_dimension_numbers<[1], [0], [0], [1], [0, 0, 1, 1], [], []>} : vector<8x256xbf16>, vector<256x512xbf16>, vector<8x512xf32> -> vector<8x512xf32>
    %160 = arith.addf %158, %159 : vector<8x512xf32>
    %161 = vector.extract_strided_slice %160 {offsets = [0, 0], sizes = [8, 384], strides = [1, 1]} : vector<8x512xf32> to vector<8x384xf32>
    %162 = arith.negf %161 : vector<8x384xf32>
    %163 = math.exp %162 : vector<8x384xf32>
    %cst_39 = arith.constant 1.000000e+00 : f32
    %164 = vector.broadcast %cst_39 : f32 to vector<8x384xf32>
    %165 = arith.addf %164, %163 : vector<8x384xf32>
    %166 = arith.divf %164, %165 : vector<8x384xf32>
    %167 = vector.extract_strided_slice %166 {offsets = [0, 0], sizes = [8, 128], strides = [1, 1]} : vector<8x384xf32> to vector<8x128xf32>
    %168 = vector.extract_strided_slice %166 {offsets = [0, 128], sizes = [8, 128], strides = [1, 1]} : vector<8x384xf32> to vector<8x128xf32>
    %169 = vector.extract_strided_slice %166 {offsets = [0, 256], sizes = [8, 128], strides = [1, 1]} : vector<8x384xf32> to vector<8x128xf32>
    %170 = vector.extract_strided_slice %160 {offsets = [0, 384], sizes = [8, 128], strides = [1, 1]} : vector<8x512xf32> to vector<8x128xf32>
    %171 = math.tanh %170 : vector<8x128xf32>
    %172 = arith.mulf %168, %148 : vector<8x128xf32>
    %173 = arith.mulf %167, %171 : vector<8x128xf32>
    %174 = arith.addf %172, %173 : vector<8x128xf32>
    %175 = math.tanh %174 : vector<8x128xf32>
    %176 = arith.mulf %169, %175 : vector<8x128xf32>
    %c40 = arith.constant 40 : index
    %c0_40 = arith.constant 0 : index
    %177 = vector.load %arg9[%c40, %c0_40] : memref<64x512xf32, #tpu.memory_space<vmem>>, vector<8x512xf32>
    %178 = arith.truncf %176 : vector<8x128xf32> to vector<8x128xbf16>
    %179 = vector.broadcast %33 : vector<8x1xbf16> to vector<8x128xbf16>
    %180 = arith.mulf %178, %179 : vector<8x128xbf16>
    %181 = vector.broadcast %34 : vector<8x1xbf16> to vector<8x128xbf16>
    %182 = arith.mulf %178, %181 : vector<8x128xbf16>
    %183 = tpu.concatenate %180, %182 in 1 : vector<8x128xbf16>, vector<8x128xbf16> -> vector<8x256xbf16>
    %184 = arith.addf %177, %41 : vector<8x512xf32>
    %cst_41 = arith.constant dense<0.000000e+00> : vector<8x512xf32>
    %185 = tpu.matmul %183, %7, %cst_41 {dimension_numbers = #tpu.dot_dimension_numbers<[1], [0], [0], [1], [0, 0, 1, 1], [], []>} : vector<8x256xbf16>, vector<256x512xbf16>, vector<8x512xf32> -> vector<8x512xf32>
    %186 = arith.addf %184, %185 : vector<8x512xf32>
    %187 = vector.extract_strided_slice %186 {offsets = [0, 0], sizes = [8, 384], strides = [1, 1]} : vector<8x512xf32> to vector<8x384xf32>
    %188 = arith.negf %187 : vector<8x384xf32>
    %189 = math.exp %188 : vector<8x384xf32>
    %cst_42 = arith.constant 1.000000e+00 : f32
    %190 = vector.broadcast %cst_42 : f32 to vector<8x384xf32>
    %191 = arith.addf %190, %189 : vector<8x384xf32>
    %192 = arith.divf %190, %191 : vector<8x384xf32>
    %193 = vector.extract_strided_slice %192 {offsets = [0, 0], sizes = [8, 128], strides = [1, 1]} : vector<8x384xf32> to vector<8x128xf32>
    %194 = vector.extract_strided_slice %192 {offsets = [0, 128], sizes = [8, 128], strides = [1, 1]} : vector<8x384xf32> to vector<8x128xf32>
    %195 = vector.extract_strided_slice %192 {offsets = [0, 256], sizes = [8, 128], strides = [1, 1]} : vector<8x384xf32> to vector<8x128xf32>
    %196 = vector.extract_strided_slice %186 {offsets = [0, 384], sizes = [8, 128], strides = [1, 1]} : vector<8x512xf32> to vector<8x128xf32>
    %197 = math.tanh %196 : vector<8x128xf32>
    %198 = arith.mulf %194, %174 : vector<8x128xf32>
    %199 = arith.mulf %193, %197 : vector<8x128xf32>
    %200 = arith.addf %198, %199 : vector<8x128xf32>
    %201 = math.tanh %200 : vector<8x128xf32>
    %202 = arith.mulf %195, %201 : vector<8x128xf32>
    %c48 = arith.constant 48 : index
    %c0_43 = arith.constant 0 : index
    %203 = vector.load %arg9[%c48, %c0_43] : memref<64x512xf32, #tpu.memory_space<vmem>>, vector<8x512xf32>
    %204 = arith.truncf %202 : vector<8x128xf32> to vector<8x128xbf16>
    %205 = vector.broadcast %33 : vector<8x1xbf16> to vector<8x128xbf16>
    %206 = arith.mulf %204, %205 : vector<8x128xbf16>
    %207 = vector.broadcast %34 : vector<8x1xbf16> to vector<8x128xbf16>
    %208 = arith.mulf %204, %207 : vector<8x128xbf16>
    %209 = tpu.concatenate %206, %208 in 1 : vector<8x128xbf16>, vector<8x128xbf16> -> vector<8x256xbf16>
    %210 = arith.addf %203, %41 : vector<8x512xf32>
    %cst_44 = arith.constant dense<0.000000e+00> : vector<8x512xf32>
    %211 = tpu.matmul %209, %7, %cst_44 {dimension_numbers = #tpu.dot_dimension_numbers<[1], [0], [0], [1], [0, 0, 1, 1], [], []>} : vector<8x256xbf16>, vector<256x512xbf16>, vector<8x512xf32> -> vector<8x512xf32>
    %212 = arith.addf %210, %211 : vector<8x512xf32>
    %213 = vector.extract_strided_slice %212 {offsets = [0, 0], sizes = [8, 384], strides = [1, 1]} : vector<8x512xf32> to vector<8x384xf32>
    %214 = arith.negf %213 : vector<8x384xf32>
    %215 = math.exp %214 : vector<8x384xf32>
    %cst_45 = arith.constant 1.000000e+00 : f32
    %216 = vector.broadcast %cst_45 : f32 to vector<8x384xf32>
    %217 = arith.addf %216, %215 : vector<8x384xf32>
    %218 = arith.divf %216, %217 : vector<8x384xf32>
    %219 = vector.extract_strided_slice %218 {offsets = [0, 0], sizes = [8, 128], strides = [1, 1]} : vector<8x384xf32> to vector<8x128xf32>
    %220 = vector.extract_strided_slice %218 {offsets = [0, 128], sizes = [8, 128], strides = [1, 1]} : vector<8x384xf32> to vector<8x128xf32>
    %221 = vector.extract_strided_slice %218 {offsets = [0, 256], sizes = [8, 128], strides = [1, 1]} : vector<8x384xf32> to vector<8x128xf32>
    %222 = vector.extract_strided_slice %212 {offsets = [0, 384], sizes = [8, 128], strides = [1, 1]} : vector<8x512xf32> to vector<8x128xf32>
    %223 = math.tanh %222 : vector<8x128xf32>
    %224 = arith.mulf %220, %200 : vector<8x128xf32>
    %225 = arith.mulf %219, %223 : vector<8x128xf32>
    %226 = arith.addf %224, %225 : vector<8x128xf32>
    %227 = math.tanh %226 : vector<8x128xf32>
    %228 = arith.mulf %221, %227 : vector<8x128xf32>
    %c56 = arith.constant 56 : index
    %c0_46 = arith.constant 0 : index
    %229 = vector.load %arg9[%c56, %c0_46] : memref<64x512xf32, #tpu.memory_space<vmem>>, vector<8x512xf32>
    %230 = arith.truncf %228 : vector<8x128xf32> to vector<8x128xbf16>
    %231 = vector.broadcast %33 : vector<8x1xbf16> to vector<8x128xbf16>
    %232 = arith.mulf %230, %231 : vector<8x128xbf16>
    %233 = vector.broadcast %34 : vector<8x1xbf16> to vector<8x128xbf16>
    %234 = arith.mulf %230, %233 : vector<8x128xbf16>
    %235 = tpu.concatenate %232, %234 in 1 : vector<8x128xbf16>, vector<8x128xbf16> -> vector<8x256xbf16>
    %236 = arith.addf %229, %41 : vector<8x512xf32>
    %cst_47 = arith.constant dense<0.000000e+00> : vector<8x512xf32>
    %237 = tpu.matmul %235, %7, %cst_47 {dimension_numbers = #tpu.dot_dimension_numbers<[1], [0], [0], [1], [0, 0, 1, 1], [], []>} : vector<8x256xbf16>, vector<256x512xbf16>, vector<8x512xf32> -> vector<8x512xf32>
    %238 = arith.addf %236, %237 : vector<8x512xf32>
    %239 = vector.extract_strided_slice %238 {offsets = [0, 0], sizes = [8, 384], strides = [1, 1]} : vector<8x512xf32> to vector<8x384xf32>
    %240 = arith.negf %239 : vector<8x384xf32>
    %241 = math.exp %240 : vector<8x384xf32>
    %cst_48 = arith.constant 1.000000e+00 : f32
    %242 = vector.broadcast %cst_48 : f32 to vector<8x384xf32>
    %243 = arith.addf %242, %241 : vector<8x384xf32>
    %244 = arith.divf %242, %243 : vector<8x384xf32>
    %245 = vector.extract_strided_slice %244 {offsets = [0, 0], sizes = [8, 128], strides = [1, 1]} : vector<8x384xf32> to vector<8x128xf32>
    %246 = vector.extract_strided_slice %244 {offsets = [0, 128], sizes = [8, 128], strides = [1, 1]} : vector<8x384xf32> to vector<8x128xf32>
    %247 = vector.extract_strided_slice %244 {offsets = [0, 256], sizes = [8, 128], strides = [1, 1]} : vector<8x384xf32> to vector<8x128xf32>
    %248 = vector.extract_strided_slice %238 {offsets = [0, 384], sizes = [8, 128], strides = [1, 1]} : vector<8x512xf32> to vector<8x128xf32>
    %249 = math.tanh %248 : vector<8x128xf32>
    %250 = arith.mulf %246, %226 : vector<8x128xf32>
    %251 = arith.mulf %245, %249 : vector<8x128xf32>
    %252 = arith.addf %250, %251 : vector<8x128xf32>
    %253 = math.tanh %252 : vector<8x128xf32>
    %254 = arith.mulf %247, %253 : vector<8x128xf32>
    %255 = vector.extract_strided_slice %254 {offsets = [0, 0], sizes = [2, 128], strides = [1, 1]} : vector<8x128xf32> to vector<2x128xf32>
    %256 = vector.extract_strided_slice %254 {offsets = [2, 0], sizes = [2, 128], strides = [1, 1]} : vector<8x128xf32> to vector<2x128xf32>
    %257 = arith.addf %255, %256 : vector<2x128xf32>
    %cst_49 = arith.constant 5.000000e-01 : f32
    %258 = vector.broadcast %cst_49 : f32 to vector<2x128xf32>
    %259 = arith.mulf %257, %258 : vector<2x128xf32>
    %c0_i32_50 = arith.constant 0 : i32
    %260 = tpu.memref_slice %arg10[%c0_i32_50] : memref<2x!tpu.dma_semaphore, #tpu.memory_space<semaphore_mem>> -> memref<1x!tpu.dma_semaphore, #tpu.memory_space<semaphore_mem>>
    %261 = tpu.memref_squeeze %260 : memref<1x!tpu.dma_semaphore, #tpu.memory_space<semaphore_mem>> -> memref<!tpu.dma_semaphore, #tpu.memory_space<semaphore_mem>>
    tpu.wait_dma2 semaphore(%261 : memref<!tpu.dma_semaphore, #tpu.memory_space<semaphore_mem>>) src(%arg4 : memref<256x384xbf16, #tpu.memory_space<any>>) dst(%arg7 : memref<256x384xbf16, #tpu.memory_space<vmem>>)
    %c1_i32_51 = arith.constant 1 : i32
    %262 = tpu.memref_slice %arg10[%c1_i32_51] : memref<2x!tpu.dma_semaphore, #tpu.memory_space<semaphore_mem>> -> memref<1x!tpu.dma_semaphore, #tpu.memory_space<semaphore_mem>>
    %263 = tpu.memref_squeeze %262 : memref<1x!tpu.dma_semaphore, #tpu.memory_space<semaphore_mem>> -> memref<!tpu.dma_semaphore, #tpu.memory_space<semaphore_mem>>
    tpu.wait_dma2 semaphore(%263 : memref<!tpu.dma_semaphore, #tpu.memory_space<semaphore_mem>>) src(%arg5 : memref<160x128xbf16, #tpu.memory_space<any>>) dst(%arg8 : memref<160x128xbf16, #tpu.memory_space<vmem>>)
    %c0_52 = arith.constant 0 : index
    %c0_53 = arith.constant 0 : index
    %264 = vector.load %arg7[%c0_52, %c0_53] : memref<256x384xbf16, #tpu.memory_space<vmem>>, vector<128x384xbf16>
    %c128_54 = arith.constant 128 : index
    %c0_55 = arith.constant 0 : index
    %265 = vector.load %arg7[%c128_54, %c0_55] : memref<256x384xbf16, #tpu.memory_space<vmem>>, vector<128x384xbf16>
    %c0_56 = arith.constant 0 : index
    %c0_57 = arith.constant 0 : index
    %266 = vector.load %arg8[%c0_56, %c0_57] : memref<160x128xbf16, #tpu.memory_space<vmem>>, vector<16x128xbf16>
    %c16_58 = arith.constant 16 : index
    %c0_59 = arith.constant 0 : index
    %267 = vector.load %arg8[%c16_58, %c0_59] : memref<160x128xbf16, #tpu.memory_space<vmem>>, vector<128x128xbf16>
    %c144_60 = arith.constant 144 : index
    %c0_61 = arith.constant 0 : index
    %268 = vector.load %arg8[%c144_60, %c0_61] : memref<160x128xbf16, #tpu.memory_space<vmem>>, vector<16x128xbf16>
    %269 = arith.truncf %15 : vector<32x16xf32> to vector<32x16xbf16>
    %cst_62 = arith.constant dense<0.000000e+00> : vector<32x128xf32>
    %270 = tpu.matmul %269, %266, %cst_62 {dimension_numbers = #tpu.dot_dimension_numbers<[1], [0], [0], [1], [0, 0, 1, 1], [], []>} : vector<32x16xbf16>, vector<16x128xbf16>, vector<32x128xf32> -> vector<32x128xf32>
    %271 = vector.broadcast %12 : vector<1x128xf32> to vector<32x128xf32>
    %272 = arith.addf %270, %271 : vector<32x128xf32>
    %273 = vector.shape_cast %272 : vector<32x128xf32> to vector<2x16x128xf32>
    %cst_63 = arith.constant dense<0.000000e+00> : vector<16x128xf32>
    %274 = tpu.matmul %268, %267, %cst_63 {dimension_numbers = #tpu.dot_dimension_numbers<[1], [0], [0], [1], [0, 0, 1, 1], [], []>} : vector<16x128xbf16>, vector<128x128xbf16>, vector<16x128xf32> -> vector<16x128xf32>
    %275 = vector.broadcast %13 : vector<1x128xf32> to vector<16x128xf32>
    %276 = arith.addf %274, %275 : vector<16x128xf32>
    %277 = tpu.iota {dimensions = array<i32: 1>} : vector<1x16xi32>
    %c7_i32 = arith.constant 7 : i32
    %278 = vector.broadcast %c7_i32 : i32 to vector<1x16xi32>
    %279 = arith.cmpi sge, %277, %278 : vector<1x16xi32>
    %cst_64 = arith.constant -1.000000e+30 : f32
    %cst_65 = arith.constant 0.000000e+00 : f32
    %280 = vector.broadcast %cst_64 : f32 to vector<1x16xf32>
    %281 = vector.broadcast %cst_65 : f32 to vector<1x16xf32>
    %282 = arith.select %279, %280, %281 : vector<1x16xi1>, vector<1x16xf32>
    %283 = vector.shape_cast %18 : vector<2x16xf32> to vector<2x16x1xf32>
    %284 = vector.broadcast %283 : vector<2x16x1xf32> to vector<2x16x128xf32>
    %285 = arith.mulf %284, %273 : vector<2x16x128xf32>
    %cst_66 = arith.constant dense<0.000000e+00> : vector<2x128xf32>
    %286 = vector.multi_reduction <add>, %285, %cst_66 [1] : vector<2x16x128xf32> to vector<2x128xf32>
    %cst_67 = arith.constant 0.000000e+00 : f32
    %287 = vector.broadcast %cst_67 : f32 to vector<2x128xf32>
    %288 = arith.truncf %287 : vector<2x128xf32> to vector<2x128xbf16>
    %cst_68 = arith.constant dense<0.000000e+00> : vector<2x384xf32>
    %289 = tpu.matmul %288, %264, %cst_68 {dimension_numbers = #tpu.dot_dimension_numbers<[1], [0], [0], [1], [0, 0, 1, 1], [], []>} : vector<2x128xbf16>, vector<128x384xbf16>, vector<2x384xf32> -> vector<2x384xf32>
    %290 = vector.broadcast %10 : vector<1x384xf32> to vector<2x384xf32>
    %291 = arith.addf %289, %290 : vector<2x384xf32>
    %292 = arith.truncf %259 : vector<2x128xf32> to vector<2x128xbf16>
    %cst_69 = arith.constant dense<0.000000e+00> : vector<2x384xf32>
    %293 = tpu.matmul %292, %265, %cst_69 {dimension_numbers = #tpu.dot_dimension_numbers<[1], [0], [0], [1], [0, 0, 1, 1], [], []>} : vector<2x128xbf16>, vector<128x384xbf16>, vector<2x384xf32> -> vector<2x384xf32>
    %294 = vector.broadcast %11 : vector<1x384xf32> to vector<2x384xf32>
    %295 = arith.addf %293, %294 : vector<2x384xf32>
    %296 = vector.extract_strided_slice %291 {offsets = [0, 0], sizes = [2, 128], strides = [1, 1]} : vector<2x384xf32> to vector<2x128xf32>
    %297 = vector.extract_strided_slice %295 {offsets = [0, 0], sizes = [2, 128], strides = [1, 1]} : vector<2x384xf32> to vector<2x128xf32>
    %298 = arith.addf %296, %297 : vector<2x128xf32>
    %299 = arith.negf %298 : vector<2x128xf32>
    %300 = math.exp %299 : vector<2x128xf32>
    %cst_70 = arith.constant 1.000000e+00 : f32
    %301 = vector.broadcast %cst_70 : f32 to vector<2x128xf32>
    %302 = arith.addf %301, %300 : vector<2x128xf32>
    %303 = arith.divf %301, %302 : vector<2x128xf32>
    %304 = vector.extract_strided_slice %291 {offsets = [0, 128], sizes = [2, 128], strides = [1, 1]} : vector<2x384xf32> to vector<2x128xf32>
    %305 = vector.extract_strided_slice %295 {offsets = [0, 128], sizes = [2, 128], strides = [1, 1]} : vector<2x384xf32> to vector<2x128xf32>
    %306 = arith.addf %304, %305 : vector<2x128xf32>
    %307 = arith.negf %306 : vector<2x128xf32>
    %308 = math.exp %307 : vector<2x128xf32>
    %cst_71 = arith.constant 1.000000e+00 : f32
    %309 = vector.broadcast %cst_71 : f32 to vector<2x128xf32>
    %310 = arith.addf %309, %308 : vector<2x128xf32>
    %311 = arith.divf %309, %310 : vector<2x128xf32>
    %312 = vector.extract_strided_slice %291 {offsets = [0, 256], sizes = [2, 128], strides = [1, 1]} : vector<2x384xf32> to vector<2x128xf32>
    %313 = vector.extract_strided_slice %295 {offsets = [0, 256], sizes = [2, 128], strides = [1, 1]} : vector<2x384xf32> to vector<2x128xf32>
    %314 = arith.mulf %303, %313 : vector<2x128xf32>
    %315 = arith.addf %312, %314 : vector<2x128xf32>
    %316 = math.tanh %315 : vector<2x128xf32>
    %cst_72 = arith.constant 1.000000e+00 : f32
    %317 = vector.broadcast %cst_72 : f32 to vector<2x128xf32>
    %318 = arith.subf %317, %311 : vector<2x128xf32>
    %319 = arith.mulf %318, %316 : vector<2x128xf32>
    %320 = arith.mulf %311, %259 : vector<2x128xf32>
    %321 = arith.addf %319, %320 : vector<2x128xf32>
    %cst_73 = arith.constant dense<0.000000e+00> : vector<2x16xf32>
    %322 = tpu.matmul %321, %276, %cst_73 {dimension_numbers = #tpu.dot_dimension_numbers<[1], [1], [0], [0], [0, 0, 1, 0], [], []>} : vector<2x128xf32>, vector<16x128xf32>, vector<2x16xf32> -> vector<2x16xf32>
    %cst_74 = arith.constant 0.0883883461 : f32
    %323 = vector.broadcast %cst_74 : f32 to vector<2x16xf32>
    %324 = arith.mulf %322, %323 : vector<2x16xf32>
    %325 = vector.broadcast %282 : vector<1x16xf32> to vector<2x16xf32>
    %326 = arith.addf %324, %325 : vector<2x16xf32>
    %cst_75 = arith.constant dense<0xFF800000> : vector<2xf32>
    %327 = vector.multi_reduction <maximumf>, %326, %cst_75 [1] : vector<2x16xf32> to vector<2xf32>
    %328 = vector.shape_cast %327 : vector<2xf32> to vector<2x1xf32>
    %329 = vector.broadcast %328 : vector<2x1xf32> to vector<2x16xf32>
    %330 = arith.subf %326, %329 : vector<2x16xf32>
    %331 = math.exp %330 : vector<2x16xf32>
    %cst_76 = arith.constant dense<0.000000e+00> : vector<2xf32>
    %332 = vector.multi_reduction <add>, %331, %cst_76 [1] : vector<2x16xf32> to vector<2xf32>
    %333 = vector.shape_cast %332 : vector<2xf32> to vector<2x1xf32>
    %334 = vector.broadcast %333 : vector<2x1xf32> to vector<2x16xf32>
    %335 = arith.divf %331, %334 : vector<2x16xf32>
    %cst_77 = arith.constant dense<0.000000e+00> : vector<2x128xf32>
    %336 = tpu.matmul %335, %276, %cst_77 {dimension_numbers = #tpu.dot_dimension_numbers<[1], [0], [0], [1], [0, 0, 1, 1], [], []>} : vector<2x16xf32>, vector<16x128xf32>, vector<2x128xf32> -> vector<2x128xf32>
    %337 = arith.truncf %336 : vector<2x128xf32> to vector<2x128xbf16>
    %cst_78 = arith.constant dense<0.000000e+00> : vector<2x384xf32>
    %338 = tpu.matmul %337, %264, %cst_78 {dimension_numbers = #tpu.dot_dimension_numbers<[1], [0], [0], [1], [0, 0, 1, 1], [], []>} : vector<2x128xbf16>, vector<128x384xbf16>, vector<2x384xf32> -> vector<2x384xf32>
    %339 = vector.broadcast %10 : vector<1x384xf32> to vector<2x384xf32>
    %340 = arith.addf %338, %339 : vector<2x384xf32>
    %341 = arith.truncf %321 : vector<2x128xf32> to vector<2x128xbf16>
    %cst_79 = arith.constant dense<0.000000e+00> : vector<2x384xf32>
    %342 = tpu.matmul %341, %265, %cst_79 {dimension_numbers = #tpu.dot_dimension_numbers<[1], [0], [0], [1], [0, 0, 1, 1], [], []>} : vector<2x128xbf16>, vector<128x384xbf16>, vector<2x384xf32> -> vector<2x384xf32>
    %343 = vector.broadcast %11 : vector<1x384xf32> to vector<2x384xf32>
    %344 = arith.addf %342, %343 : vector<2x384xf32>
    %345 = vector.extract_strided_slice %340 {offsets = [0, 0], sizes = [2, 128], strides = [1, 1]} : vector<2x384xf32> to vector<2x128xf32>
    %346 = vector.extract_strided_slice %344 {offsets = [0, 0], sizes = [2, 128], strides = [1, 1]} : vector<2x384xf32> to vector<2x128xf32>
    %347 = arith.addf %345, %346 : vector<2x128xf32>
    %348 = arith.negf %347 : vector<2x128xf32>
    %349 = math.exp %348 : vector<2x128xf32>
    %cst_80 = arith.constant 1.000000e+00 : f32
    %350 = vector.broadcast %cst_80 : f32 to vector<2x128xf32>
    %351 = arith.addf %350, %349 : vector<2x128xf32>
    %352 = arith.divf %350, %351 : vector<2x128xf32>
    %353 = vector.extract_strided_slice %340 {offsets = [0, 128], sizes = [2, 128], strides = [1, 1]} : vector<2x384xf32> to vector<2x128xf32>
    %354 = vector.extract_strided_slice %344 {offsets = [0, 128], sizes = [2, 128], strides = [1, 1]} : vector<2x384xf32> to vector<2x128xf32>
    %355 = arith.addf %353, %354 : vector<2x128xf32>
    %356 = arith.negf %355 : vector<2x128xf32>
    %357 = math.exp %356 : vector<2x128xf32>
    %cst_81 = arith.constant 1.000000e+00 : f32
    %358 = vector.broadcast %cst_81 : f32 to vector<2x128xf32>
    %359 = arith.addf %358, %357 : vector<2x128xf32>
    %360 = arith.divf %358, %359 : vector<2x128xf32>
    %361 = vector.extract_strided_slice %340 {offsets = [0, 256], sizes = [2, 128], strides = [1, 1]} : vector<2x384xf32> to vector<2x128xf32>
    %362 = vector.extract_strided_slice %344 {offsets = [0, 256], sizes = [2, 128], strides = [1, 1]} : vector<2x384xf32> to vector<2x128xf32>
    %363 = arith.mulf %352, %362 : vector<2x128xf32>
    %364 = arith.addf %361, %363 : vector<2x128xf32>
    %365 = math.tanh %364 : vector<2x128xf32>
    %cst_82 = arith.constant 1.000000e+00 : f32
    %366 = vector.broadcast %cst_82 : f32 to vector<2x128xf32>
    %367 = arith.subf %366, %360 : vector<2x128xf32>
    %368 = arith.mulf %367, %365 : vector<2x128xf32>
    %369 = arith.mulf %360, %321 : vector<2x128xf32>
    %370 = arith.addf %368, %369 : vector<2x128xf32>
    %cst_83 = arith.constant dense<0.000000e+00> : vector<2x16xf32>
    %371 = tpu.matmul %370, %276, %cst_83 {dimension_numbers = #tpu.dot_dimension_numbers<[1], [1], [0], [0], [0, 0, 1, 0], [], []>} : vector<2x128xf32>, vector<16x128xf32>, vector<2x16xf32> -> vector<2x16xf32>
    %cst_84 = arith.constant 0.0883883461 : f32
    %372 = vector.broadcast %cst_84 : f32 to vector<2x16xf32>
    %373 = arith.mulf %371, %372 : vector<2x16xf32>
    %374 = vector.broadcast %282 : vector<1x16xf32> to vector<2x16xf32>
    %375 = arith.addf %373, %374 : vector<2x16xf32>
    %cst_85 = arith.constant dense<0xFF800000> : vector<2xf32>
    %376 = vector.multi_reduction <maximumf>, %375, %cst_85 [1] : vector<2x16xf32> to vector<2xf32>
    %377 = vector.shape_cast %376 : vector<2xf32> to vector<2x1xf32>
    %378 = vector.broadcast %377 : vector<2x1xf32> to vector<2x16xf32>
    %379 = arith.subf %375, %378 : vector<2x16xf32>
    %380 = math.exp %379 : vector<2x16xf32>
    %cst_86 = arith.constant dense<0.000000e+00> : vector<2xf32>
    %381 = vector.multi_reduction <add>, %380, %cst_86 [1] : vector<2x16xf32> to vector<2xf32>
    %382 = vector.shape_cast %381 : vector<2xf32> to vector<2x1xf32>
    %383 = vector.broadcast %382 : vector<2x1xf32> to vector<2x16xf32>
    %384 = arith.divf %380, %383 : vector<2x16xf32>
    %cst_87 = arith.constant dense<0.000000e+00> : vector<2x128xf32>
    %385 = tpu.matmul %384, %276, %cst_87 {dimension_numbers = #tpu.dot_dimension_numbers<[1], [0], [0], [1], [0, 0, 1, 1], [], []>} : vector<2x16xf32>, vector<16x128xf32>, vector<2x128xf32> -> vector<2x128xf32>
    %386 = arith.mulf %336, %385 : vector<2x128xf32>
    %387 = arith.truncf %385 : vector<2x128xf32> to vector<2x128xbf16>
    %cst_88 = arith.constant dense<0.000000e+00> : vector<2x384xf32>
    %388 = tpu.matmul %387, %264, %cst_88 {dimension_numbers = #tpu.dot_dimension_numbers<[1], [0], [0], [1], [0, 0, 1, 1], [], []>} : vector<2x128xbf16>, vector<128x384xbf16>, vector<2x384xf32> -> vector<2x384xf32>
    %389 = vector.broadcast %10 : vector<1x384xf32> to vector<2x384xf32>
    %390 = arith.addf %388, %389 : vector<2x384xf32>
    %391 = arith.truncf %370 : vector<2x128xf32> to vector<2x128xbf16>
    %cst_89 = arith.constant dense<0.000000e+00> : vector<2x384xf32>
    %392 = tpu.matmul %391, %265, %cst_89 {dimension_numbers = #tpu.dot_dimension_numbers<[1], [0], [0], [1], [0, 0, 1, 1], [], []>} : vector<2x128xbf16>, vector<128x384xbf16>, vector<2x384xf32> -> vector<2x384xf32>
    %393 = vector.broadcast %11 : vector<1x384xf32> to vector<2x384xf32>
    %394 = arith.addf %392, %393 : vector<2x384xf32>
    %395 = vector.extract_strided_slice %390 {offsets = [0, 0], sizes = [2, 128], strides = [1, 1]} : vector<2x384xf32> to vector<2x128xf32>
    %396 = vector.extract_strided_slice %394 {offsets = [0, 0], sizes = [2, 128], strides = [1, 1]} : vector<2x384xf32> to vector<2x128xf32>
    %397 = arith.addf %395, %396 : vector<2x128xf32>
    %398 = arith.negf %397 : vector<2x128xf32>
    %399 = math.exp %398 : vector<2x128xf32>
    %cst_90 = arith.constant 1.000000e+00 : f32
    %400 = vector.broadcast %cst_90 : f32 to vector<2x128xf32>
    %401 = arith.addf %400, %399 : vector<2x128xf32>
    %402 = arith.divf %400, %401 : vector<2x128xf32>
    %403 = vector.extract_strided_slice %390 {offsets = [0, 128], sizes = [2, 128], strides = [1, 1]} : vector<2x384xf32> to vector<2x128xf32>
    %404 = vector.extract_strided_slice %394 {offsets = [0, 128], sizes = [2, 128], strides = [1, 1]} : vector<2x384xf32> to vector<2x128xf32>
    %405 = arith.addf %403, %404 : vector<2x128xf32>
    %406 = arith.negf %405 : vector<2x128xf32>
    %407 = math.exp %406 : vector<2x128xf32>
    %cst_91 = arith.constant 1.000000e+00 : f32
    %408 = vector.broadcast %cst_91 : f32 to vector<2x128xf32>
    %409 = arith.addf %408, %407 : vector<2x128xf32>
    %410 = arith.divf %408, %409 : vector<2x128xf32>
    %411 = vector.extract_strided_slice %390 {offsets = [0, 256], sizes = [2, 128], strides = [1, 1]} : vector<2x384xf32> to vector<2x128xf32>
    %412 = vector.extract_strided_slice %394 {offsets = [0, 256], sizes = [2, 128], strides = [1, 1]} : vector<2x384xf32> to vector<2x128xf32>
    %413 = arith.mulf %402, %412 : vector<2x128xf32>
    %414 = arith.addf %411, %413 : vector<2x128xf32>
    %415 = math.tanh %414 : vector<2x128xf32>
    %cst_92 = arith.constant 1.000000e+00 : f32
    %416 = vector.broadcast %cst_92 : f32 to vector<2x128xf32>
    %417 = arith.subf %416, %410 : vector<2x128xf32>
    %418 = arith.mulf %417, %415 : vector<2x128xf32>
    %419 = arith.mulf %410, %370 : vector<2x128xf32>
    %420 = arith.addf %418, %419 : vector<2x128xf32>
    %cst_93 = arith.constant dense<0.000000e+00> : vector<2x16xf32>
    %421 = tpu.matmul %420, %276, %cst_93 {dimension_numbers = #tpu.dot_dimension_numbers<[1], [1], [0], [0], [0, 0, 1, 0], [], []>} : vector<2x128xf32>, vector<16x128xf32>, vector<2x16xf32> -> vector<2x16xf32>
    %cst_94 = arith.constant 0.0883883461 : f32
    %422 = vector.broadcast %cst_94 : f32 to vector<2x16xf32>
    %423 = arith.mulf %421, %422 : vector<2x16xf32>
    %424 = vector.broadcast %282 : vector<1x16xf32> to vector<2x16xf32>
    %425 = arith.addf %423, %424 : vector<2x16xf32>
    %cst_95 = arith.constant dense<0xFF800000> : vector<2xf32>
    %426 = vector.multi_reduction <maximumf>, %425, %cst_95 [1] : vector<2x16xf32> to vector<2xf32>
    %427 = vector.shape_cast %426 : vector<2xf32> to vector<2x1xf32>
    %428 = vector.broadcast %427 : vector<2x1xf32> to vector<2x16xf32>
    %429 = arith.subf %425, %428 : vector<2x16xf32>
    %430 = math.exp %429 : vector<2x16xf32>
    %cst_96 = arith.constant dense<0.000000e+00> : vector<2xf32>
    %431 = vector.multi_reduction <add>, %430, %cst_96 [1] : vector<2x16xf32> to vector<2xf32>
    %432 = vector.shape_cast %431 : vector<2xf32> to vector<2x1xf32>
    %433 = vector.broadcast %432 : vector<2x1xf32> to vector<2x16xf32>
    %434 = arith.divf %430, %433 : vector<2x16xf32>
    %cst_97 = arith.constant dense<0.000000e+00> : vector<2x128xf32>
    %435 = tpu.matmul %434, %276, %cst_97 {dimension_numbers = #tpu.dot_dimension_numbers<[1], [0], [0], [1], [0, 0, 1, 1], [], []>} : vector<2x16xf32>, vector<16x128xf32>, vector<2x128xf32> -> vector<2x128xf32>
    %436 = arith.mulf %386, %435 : vector<2x128xf32>
    %437 = vector.broadcast %0 : f32 to vector<2x128xf32>
    %438 = arith.mulf %436, %437 : vector<2x128xf32>
    %439 = vector.broadcast %1 : f32 to vector<2x128xf32>
    %440 = arith.mulf %259, %439 : vector<2x128xf32>
    %441 = arith.addf %438, %440 : vector<2x128xf32>
    %442 = arith.mulf %286, %441 : vector<2x128xf32>
    %443 = vector.shape_cast %442 : vector<2x128xf32> to vector<2x1x128xf32>
    %444 = vector.broadcast %443 : vector<2x1x128xf32> to vector<2x16x128xf32>
    %445 = arith.mulf %444, %273 : vector<2x16x128xf32>
    %cst_98 = arith.constant dense<0.000000e+00> : vector<2x16xf32>
    %446 = vector.multi_reduction <add>, %445, %cst_98 [2] : vector<2x16x128xf32> to vector<2x16xf32>
    %447 = vector.shape_cast %18 : vector<2x16xf32> to vector<2x1x16xf32>
    %448 = vector.broadcast %447 : vector<2x1x16xf32> to vector<2x16x16xf32>
    %449 = arith.mulf %17, %448 : vector<2x16x16xf32>
    %cst_99 = arith.constant dense<0.000000e+00> : vector<2x16xf32>
    %450 = vector.multi_reduction <add>, %449, %cst_99 [2] : vector<2x16x16xf32> to vector<2x16xf32>
    %451 = arith.addf %450, %18 : vector<2x16xf32>
    %cst_100 = arith.constant 0.000000e+00 : f32
    %452 = vector.broadcast %cst_100 : f32 to vector<2x16xf32>
    %453 = arith.cmpf ogt, %451, %452 : vector<2x16xf32>
    %cst_101 = arith.constant 1.000000e+00 : f32
    %454 = vector.broadcast %cst_101 : f32 to vector<2x16xf32>
    %455 = arith.select %453, %454, %451 : vector<2x16xi1>, vector<2x16xf32>
    %456 = arith.subf %455, %18 : vector<2x16xf32>
    %457 = arith.addf %18, %456 : vector<2x16xf32>
    %458 = vector.shape_cast %456 : vector<2x16xf32> to vector<2x1x16xf32>
    %459 = vector.broadcast %458 : vector<2x1x16xf32> to vector<2x16x16xf32>
    %460 = arith.mulf %17, %459 : vector<2x16x16xf32>
    %cst_102 = arith.constant dense<0.000000e+00> : vector<2x16xf32>
    %461 = vector.multi_reduction <add>, %460, %cst_102 [2] : vector<2x16x16xf32> to vector<2x16xf32>
    %462 = arith.addf %461, %457 : vector<2x16xf32>
    %cst_103 = arith.constant 0.000000e+00 : f32
    %463 = vector.broadcast %cst_103 : f32 to vector<2x16xf32>
    %464 = arith.cmpf ogt, %462, %463 : vector<2x16xf32>
    %cst_104 = arith.constant 1.000000e+00 : f32
    %465 = vector.broadcast %cst_104 : f32 to vector<2x16xf32>
    %466 = arith.select %464, %465, %462 : vector<2x16xi1>, vector<2x16xf32>
    %467 = arith.subf %466, %457 : vector<2x16xf32>
    %468 = arith.addf %457, %467 : vector<2x16xf32>
    %469 = vector.shape_cast %467 : vector<2x16xf32> to vector<2x1x16xf32>
    %470 = vector.broadcast %469 : vector<2x1x16xf32> to vector<2x16x16xf32>
    %471 = arith.mulf %17, %470 : vector<2x16x16xf32>
    %cst_105 = arith.constant dense<0.000000e+00> : vector<2x16xf32>
    %472 = vector.multi_reduction <add>, %471, %cst_105 [2] : vector<2x16x16xf32> to vector<2x16xf32>
    %473 = arith.addf %472, %468 : vector<2x16xf32>
    %cst_106 = arith.constant 0.000000e+00 : f32
    %474 = vector.broadcast %cst_106 : f32 to vector<2x16xf32>
    %475 = arith.cmpf ogt, %473, %474 : vector<2x16xf32>
    %cst_107 = arith.constant 1.000000e+00 : f32
    %476 = vector.broadcast %cst_107 : f32 to vector<2x16xf32>
    %477 = arith.select %475, %476, %473 : vector<2x16xi1>, vector<2x16xf32>
    %478 = arith.subf %477, %468 : vector<2x16xf32>
    %479 = arith.addf %468, %478 : vector<2x16xf32>
    %cst_108 = arith.constant 0.000000e+00 : f32
    %480 = vector.broadcast %cst_108 : f32 to vector<2x16xf32>
    %481 = arith.maximumf %446, %480 : vector<2x16xf32>
    %482 = arith.mulf %446, %20 : vector<2x16xf32>
    %483 = arith.subf %481, %482 : vector<2x16xf32>
    %484 = math.absf %446 : vector<2x16xf32>
    %cst_109 = arith.constant 0.000000e+00 : f32
    %485 = vector.broadcast %cst_109 : f32 to vector<2x16xf32>
    %486 = arith.subf %485, %484 : vector<2x16xf32>
    %487 = math.exp %486 : vector<2x16xf32>
    %cst_110 = arith.constant 1.000000e+00 : f32
    %488 = vector.broadcast %cst_110 : f32 to vector<2x16xf32>
    %489 = arith.addf %488, %487 : vector<2x16xf32>
    %490 = math.log %489 : vector<2x16xf32>
    %491 = arith.addf %483, %490 : vector<2x16xf32>
    %492 = vector.shape_cast %491 : vector<2x16xf32> to vector<1x2x16xf32>
    %cst_111 = arith.constant dense<0.000000e+00> : vector<1xf32>
    %493 = vector.multi_reduction <add>, %492, %cst_111 [1, 2] : vector<1x2x16xf32> to vector<1xf32>
    %494 = vector.shape_cast %493 : vector<1xf32> to vector<1x1x1xf32>
    %495 = vector.extract %494[0, 0, 0] : f32 from vector<1x1x1xf32>
    %cst_112 = arith.constant 3.200000e+01 : f32
    %496 = arith.divf %495, %cst_112 : f32
    %cst_113 = arith.constant 1.000000e+00 : f32
    %497 = vector.broadcast %cst_113 : f32 to vector<2x16xf32>
    %498 = arith.subf %497, %19 : vector<2x16xf32>
    %cst_114 = arith.constant -9.99999979E+10 : f32
    %499 = vector.broadcast %cst_114 : f32 to vector<2x16xf32>
    %500 = arith.mulf %498, %499 : vector<2x16xf32>
    %501 = arith.addf %446, %500 : vector<2x16xf32>
    %cst_115 = arith.constant 1.000000e+00 : f32
    %502 = vector.broadcast %cst_115 : f32 to vector<2x16xf32>
    %503 = arith.subf %502, %479 : vector<2x16xf32>
    %cst_116 = arith.constant -9.99999979E+10 : f32
    %504 = vector.broadcast %cst_116 : f32 to vector<2x16xf32>
    %505 = arith.mulf %503, %504 : vector<2x16xf32>
    %506 = arith.addf %501, %505 : vector<2x16xf32>
    %507 = arith.negf %506 : vector<2x16xf32>
    %508 = math.exp %507 : vector<2x16xf32>
    %cst_117 = arith.constant 1.000000e+00 : f32
    %509 = vector.broadcast %cst_117 : f32 to vector<2x16xf32>
    %510 = arith.addf %509, %508 : vector<2x16xf32>
    %511 = arith.divf %509, %510 : vector<2x16xf32>
    %512 = arith.mulf %511, %19 : vector<2x16xf32>
    %cst_118 = arith.constant dense<0xFF800000> : vector<2xf32>
    %513 = vector.multi_reduction <maximumf>, %506, %cst_118 [1] : vector<2x16xf32> to vector<2xf32>
    %514 = vector.shape_cast %513 : vector<2xf32> to vector<2x1xf32>
    %515 = tpu.iota {dimensions = array<i32: 1>} : vector<2x16xi32>
    %516 = vector.broadcast %514 : vector<2x1xf32> to vector<2x16xf32>
    %517 = arith.cmpf oeq, %506, %516 : vector<2x16xf32>
    %c16_i32 = arith.constant 16 : i32
    %518 = vector.broadcast %c16_i32 : i32 to vector<2x16xi32>
    %519 = arith.select %517, %515, %518 : vector<2x16xi1>, vector<2x16xi32>
    %cst_119 = arith.constant dense<2147483647> : vector<2xi32>
    %520 = vector.multi_reduction <minsi>, %519, %cst_119 [1] : vector<2x16xi32> to vector<2xi32>
    %521 = vector.shape_cast %520 : vector<2xi32> to vector<2x1xi32>
    %522 = arith.sitofp %521 : vector<2x1xi32> to vector<2x1xf32>
    %cst_120 = arith.constant 0.000000e+00 : f32
    %523 = vector.broadcast %cst_120 : f32 to vector<8x128xf32>
    %c0_121 = arith.constant 0 : index
    %c0_122 = arith.constant 0 : index
    %524 = vector.load %arg6[%c0_121, %c0_122] : memref<8x128xf32, #tpu.memory_space<vmem>>, vector<8x128xf32>
    tpu.vector_store %arg6[%c0_121, %c0_122], %523 {strides = array<i32>} : memref<8x128xf32, #tpu.memory_space<vmem>>, vector<8x128xf32>,
    %c0_123 = arith.constant 0 : index
    %c0_124 = arith.constant 0 : index
    %525 = vector.load %arg6[%c0_123, %c0_124] : memref<8x128xf32, #tpu.memory_space<vmem>>, vector<2x16xf32>
    tpu.vector_store %arg6[%c0_123, %c0_124], %512 {strides = array<i32>} : memref<8x128xf32, #tpu.memory_space<vmem>>, vector<2x16xf32>,
    %c0_125 = arith.constant 0 : index
    %c16_126 = arith.constant 16 : index
    %526 = vector.load %arg6[%c0_125, %c16_126] : memref<8x128xf32, #tpu.memory_space<vmem>>, vector<2x1xf32>
    tpu.vector_store %arg6[%c0_125, %c16_126], %522 {strides = array<i32>} : memref<8x128xf32, #tpu.memory_space<vmem>>, vector<2x1xf32>,
    %cst_127 = arith.constant 0.000000e+00 : f32
    %527 = vector.broadcast %cst_127 : f32 to vector<2x1xf32>
    %528 = vector.broadcast %496 : f32 to vector<2x1xf32>
    %529 = arith.addf %527, %528 : vector<2x1xf32>
    %c0_128 = arith.constant 0 : index
    %c17 = arith.constant 17 : index
    %530 = vector.load %arg6[%c0_128, %c17] : memref<8x128xf32, #tpu.memory_space<vmem>>, vector<2x1xf32>
    tpu.vector_store %arg6[%c0_128, %c17], %529 {strides = array<i32>} : memref<8x128xf32, #tpu.memory_space<vmem>>, vector<2x1xf32>,
    return
  }
}

</mosaic_0001>

<bundles_post_ra>
// kernel: tpu_custom_call.1
= control target key start
LH: loop header
LB: loop body
LE: loop exit
PB: predicated region body
PF: predicated region fallthrough
CT: control target
= control target key end

     0   :  { %11 = vsyncpa [#allocation7], 0  ;;  %s6775_s0 = inlined_call_operand.hbm [shape: bf16[320,512], index: 0, kind: input, shape index: {}]   ;;  %s6776_s1 = inlined_call_operand.vmem [shape: f32[8,512], index: 1, kind: input, shape index: {}]   ;;  %s6777_s2 = inlined_call_operand.vmem [shape: f32[152,64], index: 2, kind: input, shape index: {}]   ;;  %s6778_s3 = inlined_call_operand.vmem [shape: f32[2], index: 3, kind: input, shape index: {}]   ;;  %s6779_s4 = inlined_call_operand.hbm [shape: bf16[256,384], index: 4, kind: input, shape index: {}]   ;;  %s6780_s5 = inlined_call_operand.vmem [shape: bf16[160,128], index: 5, kind: input, shape index: {}]   ;;  %s6781_s6 = inlined_call_operand.hbm [shape: f32[8,128], index: 6, kind: output, shape index: {}]  }
   0x1   :  { %12 = vsyncpa [#allocation9], 0 }
   0x2   :  { %13 = vsyncpa [#allocation8], 0  ;;  %s4902_s21 = smov [#allocation6]   ;;  %s36_s25 = sshll.u32 %s6778_s3, 4  ;;  %s37_s25 = int_to_ptr.vmem [resolvable:$true] %s36_s25 }
   0x3   :  { %s19_s22 = sshll.u32 %s4902_s21, 4  ;;  %s4836_s28 = scalar_lea.hbm %s6775_s0, 10240  ;;  %s20_s22 = int_to_ptr.vmem [resolvable:$true] %s19_s22 }
   0x4   :  { %p4837_p0 = scmp.ne.s32.totalorder %s6775_s0, %s4836_s28  ;;  %p4840_p1 = scmp.lt.u32.totalorder %s4836_s28, %s6775_s0 }
   0x6   :  { %p4842_p2 = pnand %p4840_p1, %p4837_p0 }
   0x8   :  { %4845 = shalt.err (!%p4842_p2)
}
   0x9   :  { %s4846_s9 = scalar_lea.vmem %s20_s22, 10240  ;;  %p4851_p4 = scmp.lt.s32.totalorder %s20_s22, %s20_s22 }
   0xa   :  { %p4847_p3 = scmp.ne.s32.totalorder %s20_s22, %s4846_s9  ;;  %p4852_p5 = scmp.lt.s32.totalorder %s4846_s9, %s4846_s9 }
   0xc   :  { %p4853_p6 = por %p4852_p5, %p4851_p4 }
   0xe   :  { %p4854_p7 = pnand %p4853_p6, %p4847_p3 }
  0x10   :  { %4857 = shalt.err (!%p4854_p7)
}
  0x11   :  { %s4903_s3 = smov 256   ;;  %s4904_s10 = smov 16  }
  0x12   :  { %25 = dma.hbm_to_vmem [thread:$0]  %s6775_s0, 10240, %s20_s22, [#allocation7], %s4903_s3, %s4903_s3, %s4904_s10  }
  0x13   :  { %s4858_s13 = scalar_lea.vmem %s37_s25, 16  ;;  %p4863_p9 = scmp.lt.s32.totalorder %s37_s25, %s37_s25 }
  0x14   :  { %p4859_p8 = scmp.ne.s32.totalorder %s37_s25, %s4858_s13  ;;  %p4864_p10 = scmp.lt.s32.totalorder %s4858_s13, %s4858_s13 }
  0x16   :  { %p4865_p11 = por %p4864_p10, %p4863_p9 }
  0x18   :  { %p4866_p12 = pnand %p4865_p11, %p4859_p8 }
  0x1a   :  { %4869 = shalt.err (!%p4866_p12)
}
  0x1b   :  { %s4905_s14 = smov [#allocation10]  }
  0x1c   :  { %39 = dma.vmem_to_smem %s37_s25, 16, %s4905_s14, [#allocation9]  }
  0x1d   :  { %4892 = dma.done.wait [#allocation7], 10240  }
  0x1e   :  { %4893 = vsyncadd [#allocation7], 4294957056 }
  0x1f   :  { %4894 = dma.done.wait [#allocation9], 16  }
  0x20   :  { %4895 = vsyncadd [#allocation9], 4294967280 }
  0x21   :  { %46 = sfence }
  0x22   :  { %s4972_s15 = sld [smem:[#allocation10]]  ;;  %s4974_s16 = sld [smem:[#allocation10 + $0x1]] }
  0x23   :  { %s54_s0 = sld [smem:[#allocation0]]   ;;  %s4906_s17 = smov [#allocation2]  }
  0x24   :  { %s62_s18 = sshll.u32 %s4906_s17, 4  ;;  %s4907_s19 = smov 384   ;;  %s63_s18 = int_to_ptr.vmem [resolvable:$true] %s62_s18 }
  0x25   :  { %66 = sst [smem:[#allocation13]] %s4907_s19  ;;  %s4908_s20 = smov 3  }
  0x26   :  { %68 = sst [smem:[#allocation13 + $0x1]] %s4907_s19  ;;  %s4909_s21 = smov 64  }
  0x27   :  { %70 = sst [smem:[#allocation13 + $0x2]] %s4908_s20  ;;  %s4910_s23 = smov 128  }
  0x28   :  { %72 = sst [smem:[#allocation13 + $0x3]] %s4909_s21  ;;  %s4911_s25 = smov 2  }
  0x29   :  { %s3976_s22 = sshll.u32 %s54_s0, 26  ;;  %74 = sst [smem:[#allocation13 + $0x4]] %s4910_s23 }
  0x2a   :  { %s3977_s24 = sadd.s32 134217728, %s3976_s22  ;;  %76 = sst [smem:[#allocation13 + $0x5]] %s4911_s25 }
  0x2b   :  { %s4912_s26 = smov 192   ;;  %80 = sst [smem:[#allocation13 + $0x7]] %s4909_s21 }
  0x2c   :  { %78 = sst [smem:[#allocation13 + $0x6]] %s4912_s26  ;;  %s4913_s27 = smov 4  }
  0x2d   :  { %82 = sst [smem:[#allocation13 + $0x8]] %s4913_s27  ;;  %s4914_s28 = smov [#allocation5]  }
  0x2e   :  { %s4915_s29 = smov [#allocation12]  }
  0x2f   :  { %84 = dma.general %s6779_s4, 6144, %s63_s18, %s4914_s28, %s4915_s29, [#allocation13], %s3977_s24, 0  }
  0x30   :  { %v4982_v0 = vld [vmem:[%s6780_s5] sm:$0xff]  ;;  %v4987_v1 = vld [vmem:[%s6780_s5 + $0x8] sm:$0xff]  ;;  %v4992_v2 = vld [vmem:[%s6780_s5 + $0x10] sm:$0xff] }
  0x31   :  { %6936 = vst [vmem:[#allocation20_spill] sm:$0xff] %v4982_v0  ;;  %6937 = vst [vmem:[#allocation21_spill] sm:$0xff] %v4987_v1  ;;  %v4997_v3 = vld [vmem:[%s6780_s5 + $0x18] sm:$0xff]  ;;  %v5002_v4 = vld [vmem:[%s6780_s5 + $0x20] sm:$0xff] }
  0x32   :  { %6938 = vst [vmem:[#allocation22_spill] sm:$0xff] %v4992_v2  ;;  %6939 = vst [vmem:[#allocation23_spill] sm:$0xff] %v4997_v3  ;;  %v5007_v5 = vld [vmem:[%s6780_s5 + $0x28] sm:$0xff]  ;;  %v5012_v6 = vld [vmem:[%s6780_s5 + $0x30] sm:$0xff] }
  0x33   :  { %6940 = vst [vmem:[#allocation24_spill] sm:$0xff] %v5002_v4  ;;  %6941 = vst [vmem:[#allocation25_spill] sm:$0xff] %v5007_v5  ;;  %v5017_v7 = vld [vmem:[%s6780_s5 + $0x38] sm:$0xff]  ;;  %v5022_v8 = vld [vmem:[%s6780_s5 + $0x40] sm:$0xff] }
  0x34   :  { %6942 = vst [vmem:[#allocation26_spill] sm:$0xff] %v5012_v6  ;;  %6943 = vst [vmem:[#allocation27_spill] sm:$0xff] %v5017_v7  ;;  %v5027_v9 = vld [vmem:[%s6780_s5 + $0x48] sm:$0xff] }
  0x35   :  { %6944 = vst [vmem:[#allocation28_spill] sm:$0xff] %v5022_v8  ;;  %6945 = vst [vmem:[#allocation29_spill] sm:$0xff] %v5027_v9 }
  0x36   :  { %145 = vsyncadd [#allocation5 + $0x1], 1280  ;;  %v5032_v10 = vld [vmem:[%s6776_s1 + $0x2] ss:$8 sm:$0x7]  ;;  %v6783_v12 = vmov 0  }
  0x37   :  { %6946 = vst [vmem:[#allocation30_spill] sm:$0xff] %v5032_v10  ;;  %v5037_v11 = vld [vmem:[%s6776_s1 + $0x3] ss:$8 sm:$0x7]  ;;  %449 = vmatprep.mubr.bf16.mxu0 %v6783_v12  ;;  %522 = vmatprep.mubr.bf16.mxu1 %v6783_v12  ;;  %v5044_v13 = vld [vmem:[%s6776_s1 + $0x5] ss:$0 sm:$0xff] }
  0x38   :  { %6947 = vst [vmem:[#allocation31_spill] sm:$0xff] %v5037_v11  ;;  %6948 = vst [vmem:[#allocation32_spill] sm:$0xff] %v5044_v13  ;;  %v5049_v14 = vld [vmem:[%s6777_s2 + $0x40] sm:$0xff]  ;;  %v5054_v15 = vld [vmem:[%s6777_s2 + $0x48] sm:$0xff]  ;;  %vm404_vm0 = vcmask 523264   ;;  %v6795_v9 = vmov 0.0  }
  0x39   :  { %6949 = vst [vmem:[#allocation33_spill] sm:$0xff] %v5049_v14  ;;  %6950 = vst [vmem:[#allocation34_spill] sm:$0xff] %v5054_v15  ;;  %v5059_v16 = vld [vmem:[%s6777_s2 + $0x50] sm:$0xff]  ;;  %v5064_v17 = vld [vmem:[%s6777_s2 + $0x58] sm:$0xff]  ;;  %v6983_v14 = vmov 0.0  }
  0x3a   :  { %6951 = vst [vmem:[#allocation35_spill] sm:$0xff] %v5059_v16  ;;  %6952 = vst [vmem:[#allocation36_spill] sm:$0xff] %v5064_v17  ;;  %v5069_v18 = vld [vmem:[%s6777_s2 + $0x60] sm:$0xff]  ;;  %v5074_v19 = vld [vmem:[%s6777_s2 + $0x68] sm:$0xff] }
  0x3b   :  { %6953 = vst [vmem:[#allocation37_spill] sm:$0xff] %v5069_v18  ;;  %6954 = vst [vmem:[#allocation38_spill] sm:$0xff] %v5074_v19  ;;  %v5079_v20 = vld [vmem:[%s6777_s2 + $0x70] sm:$0xff]  ;;  %v5084_v21 = vld [vmem:[%s6777_s2 + $0x78] sm:$0xff] }
  0x3c   :  { %6955 = vst [vmem:[#allocation39_spill] sm:$0xff] %v5079_v20  ;;  %6956 = vst [vmem:[#allocation40_spill] sm:$0xff] %v5084_v21  ;;  %v5089_v22 = vld [vmem:[%s6777_s2 + $0x80] sm:$0x3]  ;;  %v5094_v23 = vld [vmem:[%s6777_s2 + $0x88] sm:$0x3] }
  0x3d   :  { %6957 = vst [vmem:[#allocation41_spill] sm:$0xff] %v5089_v22  ;;  %6958 = vst [vmem:[#allocation42_spill] sm:$0xff] %v5094_v23  ;;  %v5099_v24 = vld [vmem:[%s6777_s2 + $0x90] sm:$0x3]  ;;  %v4448_v25 = vld [vmem:[#allocation6 + $0x4] ss:$16 sps:$4 sm:$0xff]  }
  0x3e   :  { %6959 = vst [vmem:[#allocation43_spill] sm:$0xff] %v5099_v24  ;;  %v4450_v26 = vld [vmem:[#allocation6 + $0xc] ss:$16 sps:$4 sm:$0xff]   ;;  %v4452_v27 = vld [vmem:[#allocation6] ss:$16 sps:$4 sm:$0xff]   ;;  %417 = vmatprep.subr.bf16.mxu0 %v4448_v25 }
  0x3f   :  { %v4453_v28 = vld [vmem:[#allocation6 + $0x8] ss:$16 sps:$4 sm:$0xff]   ;;  %v4454_v29 = vld [vmem:[#allocation6 + $0x24] ss:$16 sps:$4 sm:$0xff]   ;;  %490 = vmatprep.subr.bf16.mxu1 %v4450_v26  ;;  %418 = vmatpush1.bf16.msra.mxu0 %v4452_v27  ;;  %v4456_v30 = vld [vmem:[#allocation6 + $0x2c] ss:$16 sps:$4 sm:$0xff]  }
  0x40   :  { %491 = vmatpush1.bf16.msra.mxu1 %v4453_v28  ;;  %419 = vmatprep.subr.bf16.mxu0 %v4454_v29  ;;  %v4458_v31 = vld [vmem:[#allocation6 + $0x20] ss:$16 sps:$4 sm:$0xff]   ;;  %v4459_v32 = vld [vmem:[#allocation6 + $0x28] ss:$16 sps:$4 sm:$0xff]   ;;  %v4460_v33 = vld [vmem:[#allocation6 + $0x44] ss:$16 sps:$4 sm:$0xff]  }
  0x41   :  { %492 = vmatprep.subr.bf16.mxu1 %v4456_v30  ;;  %v4462_v34 = vld [vmem:[#allocation6 + $0x4c] ss:$16 sps:$4 sm:$0xff]   ;;  %v4464_v35 = vld [vmem:[#allocation6 + $0x40] ss:$16 sps:$4 sm:$0xff]   ;;  %v4465_v36 = vld [vmem:[#allocation6 + $0x48] ss:$16 sps:$4 sm:$0xff]  }
  0x42   :  { %v4466_v37 = vld [vmem:[#allocation6 + $0x64] ss:$16 sps:$4 sm:$0xff]   ;;  %v4468_v38 = vld [vmem:[#allocation6 + $0x6c] ss:$16 sps:$4 sm:$0xff]   ;;  %v4470_v39 = vld [vmem:[#allocation6 + $0x60] ss:$16 sps:$4 sm:$0xff]  }
  0x43   :  { %420 = vmatpush1.bf16.msra.mxu0 %v4458_v31  ;;  %v235_v40 = vld [vmem:[%s6777_s2] sm:$0xff]  ;;  %v236_v41 = vld [vmem:[%s6777_s2 + $0x8] sm:$0xff]  ;;  %v237_v30 = vld [vmem:[%s6777_s2 + $0x10] sm:$0xff] }
  0x44   :  { %493 = vmatpush1.bf16.msra.mxu1 %v4459_v32  ;;  %421 = vmatprep.subr.bf16.mxu0 %v4460_v33  ;;  %v4471_v42 = vld [vmem:[#allocation6 + $0x68] ss:$16 sps:$4 sm:$0xff]   ;;  %v5107_v43 = vld [vmem:[#allocation6 + $0x84] ss:$16 sps:$4 sm:$0xff]   ;;  %v5109_v44 = vld [vmem:[#allocation6 + $0x8c] ss:$16 sps:$4 sm:$0xff]   ;;  %v320_v45 = vpack.c.bf16 %v236_v41, %v235_v40 }
  0x45   :  { %494 = vmatprep.subr.bf16.mxu1 %v4462_v34  ;;  %6960 = vst [vmem:[#allocation44_spill] sm:$0xff] %v5107_v43  ;;  %6961 = vst [vmem:[#allocation45_spill] sm:$0xff] %v5109_v44  ;;  %v5111_v46 = vld [vmem:[#allocation6 + $0x80] ss:$16 sps:$4 sm:$0xff]   ;;  %v5113_v47 = vld [vmem:[#allocation6 + $0x88] ss:$16 sps:$4 sm:$0xff]  }
  0x46   :  { %v5116_v48 = vld [vmem:[#allocation6 + $0xa4] ss:$16 sps:$4 sm:$0xff]   ;;  %v5119_v49 = vld [vmem:[#allocation6 + $0xac] ss:$16 sps:$4 sm:$0xff]   ;;  %v5124_v50 = vld [vmem:[#allocation6 + $0xa0] ss:$16 sps:$4 sm:$0xff]  }
  0x47   :  { %422 = vmatpush1.bf16.msra.mxu0 %v4464_v35  ;;  %v5128_v51 = vld [vmem:[#allocation6 + $0xa8] ss:$16 sps:$4 sm:$0xff]   ;;  %v5130_v52 = vld [vmem:[#allocation6 + $0xc4] ss:$16 sps:$4 sm:$0xff]   ;;  %v5133_v53 = vld [vmem:[#allocation6 + $0xcc] ss:$16 sps:$4 sm:$0xff]  }
  0x48   :  { %495 = vmatpush1.bf16.msra.mxu1 %v4465_v36  ;;  %423 = vmatprep.subr.bf16.mxu0 %v4466_v37  ;;  %v5138_v54 = vld [vmem:[#allocation6 + $0xc0] ss:$16 sps:$4 sm:$0xff]   ;;  %v5140_v55 = vld [vmem:[#allocation6 + $0xc8] ss:$16 sps:$4 sm:$0xff]   ;;  %v5144_v56 = vld [vmem:[#allocation6 + $0xe4] ss:$16 sps:$4 sm:$0xff]  }
  0x49   :  { %496 = vmatprep.subr.bf16.mxu1 %v4468_v38  ;;  %v5147_v57 = vld [vmem:[#allocation6 + $0xec] ss:$16 sps:$4 sm:$0xff]   ;;  %v5150_v58 = vld [vmem:[#allocation6 + $0xe0] ss:$16 sps:$4 sm:$0xff]   ;;  %v5154_v59 = vld [vmem:[#allocation6 + $0xe8] ss:$16 sps:$4 sm:$0xff]  }
  0x4a   :  { %v5156_v60 = vld [vmem:[#allocation6 + $0x104] ss:$16 sps:$4 sm:$0xff]   ;;  %v5159_v61 = vld [vmem:[#allocation6 + $0x10c] ss:$16 sps:$4 sm:$0xff]   ;;  %v5162_v62 = vld [vmem:[#allocation6 + $0x100] ss:$16 sps:$4 sm:$0xff]  }
  0x4b   :  { %424 = vmatpush1.bf16.msra.mxu0 %v4470_v39  ;;  %v5164_v63 = vld [vmem:[#allocation6 + $0x108] ss:$16 sps:$4 sm:$0xff]   ;;  %v5168_v25 = vld [vmem:[#allocation6 + $0x124] ss:$16 sps:$4 sm:$0xff]   ;;  %v5171_v26 = vld [vmem:[#allocation6 + $0x12c] ss:$16 sps:$4 sm:$0xff]  }
  0x4c   :  { %497 = vmatpush1.bf16.msra.mxu1 %v4471_v42  ;;  %925 = vmatprep.subr.bf16.mxu0 %v5107_v43  ;;  %v5173_v27 = vld [vmem:[#allocation6 + $0x120] ss:$16 sps:$4 sm:$0xff]   ;;  %v5176_v28 = vld [vmem:[#allocation6 + $0x128] ss:$16 sps:$4 sm:$0xff]   ;;  %v5180_v29 = vld [vmem:[#allocation6 + $0x144] ss:$16 sps:$4 sm:$0xff]   ;;  %v6787_v42 = vlaneseq }
  0x4d   :  { %966 = vmatprep.subr.bf16.mxu1 %v5109_v44  ;;  %v5186_v31 = vld [vmem:[#allocation6 + $0x14c] ss:$16 sps:$4 sm:$0xff]   ;;  %v5192_v34 = vld [vmem:[#allocation6 + $0x140] ss:$16 sps:$4 sm:$0xff]   ;;  %v5196_v35 = vld [vmem:[#allocation6 + $0x148] ss:$16 sps:$4 sm:$0xff]  }
  0x4e   :  { %3999 = vmatmul.mubr.msk.bf16.vlgmr.msra.gmra.mrb[0].mxu0 %vm404_vm0, %v320_v45  ;;  %v238_v32 = vld [vmem:[%s6777_s2 + $0x18] sm:$0xff]  ;;  %v5198_v36 = vld [vmem:[#allocation6 + $0x164] ss:$16 sps:$4 sm:$0xff]   ;;  %v5210_v39 = vld [vmem:[#allocation6 + $0x160] ss:$16 sps:$4 sm:$0xff]   ;;  %v5229_v24 = vshrl.u32 %v6787_v42, 7 }
  0x4f   :  { %4003 = vmatmul.mubr.msk.bf16.vlgmr.msra.gmra.mrb[0].mxu1 %vm404_vm0, %v320_v45  ;;  %926 = vmatpush1.bf16.msra.mxu0 %v5111_v46  ;;  %v321_v33 = vpack.c.bf16 %v238_v32, %v237_v30  ;;  %v5201_v37 = vld [vmem:[#allocation6 + $0x16c] ss:$16 sps:$4 sm:$0xff]   ;;  %v239_v38 = vld [vmem:[%s6777_s2 + $0x20] sm:$0xff]  ;;  %v5212_v40 = vld [vmem:[#allocation6 + $0x168] ss:$16 sps:$4 sm:$0xff]  }
  0x50   :  { %967 = vmatpush1.bf16.msra.mxu1 %v5113_v47  ;;  %927 = vmatprep.subr.bf16.mxu0 %v5116_v48  ;;  %v240_v41 = vld [vmem:[%s6777_s2 + $0x28] sm:$0xff]  ;;  %v5220_v45 = vld [vmem:[#allocation6 + $0x184] ss:$16 sps:$4 sm:$0xff]   ;;  %6962 = vst [vmem:[#allocation46_spill] sm:$0xff] %v5229_v24  ;;  %v242_v42 = vld [vmem:[%s6777_s2 + $0x38] sm:$0xff]  ;;  %vm259_vm1 = vcmp.ge.s32.totalorder %v5229_v24, 2 }
  0x51   :  { %968 = vmatprep.subr.bf16.mxu1 %v5119_v49  ;;  %459 = vmatprep.mubr.bf16.mxu0 %v6783_v12  ;;  %v5223_v30 = vld [vmem:[#allocation6 + $0x18c] ss:$16 sps:$4 sm:$0xff]   ;;  %v322_v32 = vpack.c.bf16 %v240_v41, %v239_v38  ;;  %v5235_v23 = vld [vmem:[#allocation6 + $0x1a4] ss:$16 sps:$4 sm:$0xff]   ;;  %v6963_v41 = vmov 0   ;;  %vm260_vm2 = vcmp.lt.s32.totalorder %v5229_v24, 4 }
  0x52   :  { %532 = vmatprep.mubr.bf16.mxu1 %v6783_v12  ;;  %v5238_v21 = vld [vmem:[#allocation6 + $0x1ac] ss:$16 sps:$4 sm:$0xff]   ;;  %v241_v38 = vld [vmem:[%s6777_s2 + $0x30] sm:$0xff]  ;;  %v5256_v19 = vld [vmem:[#allocation6 + $0x1a8] ss:$16 sps:$4 sm:$0xff]   ;;  %vm256_vm4 = vcmp.lt.s32.totalorder %v5229_v24, 2 }
  0x53   :  { %928 = vmatpush1.bf16.msra.mxu0 %v5124_v50  ;;  %v5250_v20 = vld [vmem:[#allocation6 + $0x1a0] ss:$16 sps:$4 sm:$0xff]   ;;  %v5262_v18 = vld [vmem:[#allocation6 + $0x1cc] ss:$16 sps:$4 sm:$0xff]   ;;  %v323_v22 = vpack.c.bf16 %v242_v42, %v241_v38  ;;  %vm261_vm3 = vmand %vm259_vm1, %vm260_vm2  ;;  %v5327_v0 = vsel %vm256_vm4, 1.0, %v6983_v14 }
  0x54   :  { %969 = vmatpush1.bf16.msra.mxu1 %v5128_v51  ;;  %929 = vmatprep.subr.bf16.mxu0 %v5130_v52  ;;  %v5265_v11 = vld [vmem:[#allocation6 + $0x1c0] ss:$16 sps:$4 sm:$0xff]   ;;  %v5269_v10 = vld [vmem:[#allocation6 + $0x1c8] ss:$16 sps:$4 sm:$0xff]   ;;  %v5271_v13 = vld [vmem:[#allocation6 + $0x1e4] ss:$16 sps:$4 sm:$0xff]  }
  0x55   :  { %970 = vmatprep.subr.bf16.mxu1 %v5133_v53  ;;  %6964 = vst [vmem:[#allocation47_spill] sm:$0xff] %v5265_v11  ;;  %6965 = vst [vmem:[#allocation48_spill] sm:$0xff] %v5269_v10  ;;  %v5274_v8 = vsel %vm261_vm3, 1.0, %v6795_v9  ;;  %v5277_v42 = vld [vmem:[#allocation6 + $0x1ec] ss:$16 sps:$4 sm:$0xff]  }
  0x56   :  { %4000 = vmatmul.mubr.msk.bf16.gmra.mrb[4].mxu0 %vm404_vm0, %v321_v33  ;;  %6966 = vst [vmem:[#allocation49_spill] sm:$0xff] %v5271_v13  ;;  %6967 = vst [vmem:[#allocation50_spill] sm:$0xff] %v5274_v8  ;;  %v5282_v38 = vpack.c.bf16 %v5274_v8, %v5274_v8  ;;  %v5286_v7 = vld [vmem:[#allocation6 + $0x1e0] ss:$16 sps:$4 sm:$0xff]   ;;  %v5291_v9 = vld [vmem:[#allocation6 + $0x1e8] ss:$16 sps:$4 sm:$0xff]  }
  0x57   :  { %930 = vmatpush1.bf16.msra.mxu0 %v5138_v54  ;;  %4004 = vmatmul.mubr.msk.bf16.gmra.mrb[4].mxu1 %vm404_vm0, %v321_v33  ;;  %v5226_v33 = vld [vmem:[#allocation6 + $0x180] ss:$16 sps:$4 sm:$0xff]   ;;  %6968 = vst [vmem:[#allocation51_spill] sm:$0xff] %v5277_v42  ;;  %6970 = vst [vmem:[#allocation53_spill] sm:$0xff] %v5286_v7  ;;  %v5293_v5 = vld [vmem:[#allocation6 + $0x204] ss:$16 sps:$4 sm:$0xff]  }
  0x58   :  { %971 = vmatpush1.bf16.msra.mxu1 %v5140_v55  ;;  %931 = vmatprep.subr.bf16.mxu0 %v5144_v56  ;;  %6969 = vst [vmem:[#allocation52_spill] sm:$0xff] %v5282_v38  ;;  %v600_v6 = vmul.bf16 0, %v5282_v38  ;;  %6971 = vst [vmem:[#allocation54_spill] sm:$0xff] %v5291_v9  ;;  %v5296_v4 = vld [vmem:[#allocation6 + $0x20c] ss:$16 sps:$4 sm:$0xff]  }
  0x59   :  { %972 = vmatprep.subr.bf16.mxu1 %v5147_v57  ;;  %469 = vmatprep.mubr.bf16.mxu0 %v6783_v12  ;;  %6972 = vst [vmem:[#allocation55_spill] sm:$0xff] %v5293_v5  ;;  %6973 = vst [vmem:[#allocation56_spill] sm:$0xff] %v5296_v4  ;;  %v5303_v3 = vld [vmem:[#allocation6 + $0x208] ss:$16 sps:$4 sm:$0xff]   ;;  %v5305_v2 = vld [vmem:[#allocation6 + $0x224] ss:$16 sps:$4 sm:$0xff]  }
  0x5a   :  { %542 = vmatprep.mubr.bf16.mxu1 %v6783_v12  ;;  %v5233_v12 = vld [vmem:[#allocation6 + $0x188] ss:$16 sps:$4 sm:$0xff]   ;;  %6975 = vst [vmem:[#allocation58_spill] sm:$0xff] %v5303_v3  ;;  %6976 = vst [vmem:[#allocation59_spill] sm:$0xff] %v5305_v2  ;;  %v5311_v1 = vld [vmem:[#allocation6 + $0x220] ss:$16 sps:$4 sm:$0xff]  }
  0x5b   :  { %932 = vmatpush1.bf16.msra.mxu0 %v5150_v58  ;;  %6978 = vst [vmem:[#allocation61_spill] sm:$0xff] %v5311_v1  ;;  %v5317_v17 = vld [vmem:[#allocation6 + $0x244] ss:$16 sps:$4 sm:$0xff]   ;;  %v5321_v16 = vld [vmem:[#allocation6 + $0x24c] ss:$16 sps:$4 sm:$0xff]  }
  0x5c   :  { %973 = vmatpush1.bf16.msra.mxu1 %v5154_v59  ;;  %933 = vmatprep.subr.bf16.mxu0 %v5156_v60  ;;  %6980 = vst [vmem:[#allocation63_spill] sm:$0xff] %v5317_v17  ;;  %6981 = vst [vmem:[#allocation64_spill] sm:$0xff] %v5321_v16  ;;  %v5324_v15 = vld [vmem:[#allocation6 + $0x240] ss:$16 sps:$4 sm:$0xff]   ;;  %v5331_v38 = vld [vmem:[#allocation6 + $0x248] ss:$16 sps:$4 sm:$0xff]  }
  0x5d   :  { %974 = vmatprep.subr.bf16.mxu1 %v5159_v61  ;;  %6982 = vst [vmem:[#allocation65_spill] sm:$0xff] %v5324_v15  ;;  %6984 = vst [vmem:[#allocation66_spill] sm:$0xff] %v5331_v38  ;;  %v5333_v8 = vld [vmem:[#allocation6 + $0x264] ss:$16 sps:$4 sm:$0xff]   ;;  %v5336_v24 = vld [vmem:[#allocation6 + $0x26c] ss:$16 sps:$4 sm:$0xff]  }
  0x5e   :  { %4001 = vmatmul.mubr.msk.bf16.gmra.mrb[8].mxu0 %vm404_vm0, %v322_v32  ;;  %6985 = vst [vmem:[#allocation67_spill] sm:$0xff] %v5333_v8  ;;  %6986 = vst [vmem:[#allocation68_spill] sm:$0xff] %v5336_v24  ;;  %v5343_v14 = vld [vmem:[#allocation6 + $0x260] ss:$16 sps:$4 sm:$0xff]  }
  0x5f   :  { %934 = vmatpush1.bf16.msra.mxu0 %v5162_v62  ;;  %4005 = vmatmul.mubr.msk.bf16.gmra.mrb[8].mxu1 %vm404_vm0, %v322_v32  ;;  %v5258_v32 = vld [vmem:[#allocation6 + $0x1c4] ss:$16 sps:$4 sm:$0xff]   ;;  %6987 = vst [vmem:[#allocation69_spill] sm:$0xff] %v5343_v14 }
  0x60   :  { %975 = vmatpush1.bf16.msra.mxu1 %v5164_v63  ;;  %935 = vmatprep.subr.bf16.mxu0 %v5168_v25 }
  0x61   :  { %976 = vmatprep.subr.bf16.mxu1 %v5171_v26  ;;  %479 = vmatprep.mubr.bf16.mxu0 %v6963_v41 }
  0x62   :  { %552 = vmatprep.mubr.bf16.mxu1 %v6963_v41  ;;  %v5308_v41 = vld [vmem:[#allocation6 + $0x22c] ss:$16 sps:$4 sm:$0xff]  }
  0x63   :  { %936 = vmatpush1.bf16.msra.mxu0 %v5173_v27  ;;  %6977 = vst [vmem:[#allocation60_spill] sm:$0xff] %v5308_v41 }
  0x64   :  { %977 = vmatpush1.bf16.msra.mxu1 %v5176_v28  ;;  %937 = vmatprep.subr.bf16.mxu0 %v5180_v29 }
  0x65   :  { %978 = vmatprep.subr.bf16.mxu1 %v5186_v31 }
  0x66   :  { %4002 = vmatmul.mubr.msk.bf16.gmra.mrb[12].mxu0 %vm404_vm0, %v323_v22 }
  0x67   :  { %938 = vmatpush1.bf16.msra.mxu0 %v5192_v34  ;;  %4006 = vmatmul.mubr.msk.bf16.gmra.mrb[12].mxu1 %vm404_vm0, %v323_v22  ;;  %v5299_v22 = vld [vmem:[#allocation6 + $0x200] ss:$16 sps:$4 sm:$0xff]  }
  0x68   :  { %979 = vmatpush1.bf16.msra.mxu1 %v5196_v35  ;;  %939 = vmatprep.subr.bf16.mxu0 %v5198_v36  ;;  %6974 = vst [vmem:[#allocation57_spill] sm:$0xff] %v5299_v22 }
  0x69   :  { %980 = vmatprep.subr.bf16.mxu1 %v5201_v37  ;;  %957 = vmatprep.mubr.bf16.mxu0 %v600_v6 }
  0x6a   :  { %998 = vmatprep.mubr.bf16.mxu1 %v600_v6  ;;  %v5315_v6 = vld [vmem:[#allocation6 + $0x228] ss:$16 sps:$4 sm:$0xff]  }
  0x6b   :  { %940 = vmatpush1.bf16.msra.mxu0 %v5210_v39  ;;  %6979 = vst [vmem:[#allocation62_spill] sm:$0xff] %v5315_v6 }
  0x6c   :  { %981 = vmatpush1.bf16.msra.mxu1 %v5212_v40  ;;  %941 = vmatprep.subr.bf16.mxu0 %v5220_v45 }
  0x6d   :  { %982 = vmatprep.subr.bf16.mxu1 %v5223_v30 }
  0x6f   :  { %942 = vmatpush1.bf16.msra.mxu0 %v5226_v33 }
  0x70   :  { %983 = vmatpush1.bf16.msra.mxu1 %v5233_v12  ;;  %943 = vmatprep.subr.bf16.mxu0 %v5235_v23 }
  0x71   :  { %984 = vmatprep.subr.bf16.mxu1 %v5238_v21 }
  0x73   :  { %944 = vmatpush1.bf16.msra.mxu0 %v5250_v20 }
  0x74   :  { %985 = vmatpush1.bf16.msra.mxu1 %v5256_v19  ;;  %945 = vmatprep.subr.bf16.mxu0 %v5258_v32 }
  0x75   :  { %986 = vmatprep.subr.bf16.mxu1 %v5262_v18 }
  0x77   :  { %946 = vmatpush1.bf16.msra.mxu0 %v5265_v11 }
  0x78   :  { %987 = vmatpush1.bf16.msra.mxu1 %v5269_v10  ;;  %947 = vmatprep.subr.bf16.mxu0 %v5271_v13 }
  0x79   :  { %988 = vmatprep.subr.bf16.mxu1 %v5277_v42 }
  0x7b   :  { %948 = vmatpush1.bf16.msra.mxu0 %v5286_v7 }
  0x7c   :  { %989 = vmatpush1.bf16.msra.mxu1 %v5291_v9  ;;  %949 = vmatprep.subr.bf16.mxu0 %v5293_v5 }
  0x7d   :  { %990 = vmatprep.subr.bf16.mxu1 %v5296_v4 }
  0x7f   :  { %950 = vmatpush1.bf16.msra.mxu0 %v5299_v22 }
  0x80   :  { %991 = vmatpush1.bf16.msra.mxu1 %v5303_v3  ;;  %951 = vmatprep.subr.bf16.mxu0 %v5305_v2 }
  0x81   :  { %992 = vmatprep.subr.bf16.mxu1 %v5308_v41 }
  0x83   :  { %952 = vmatpush1.bf16.msra.mxu0 %v5311_v1  ;;  %v5340_v1 = vpack.c.bf16 %v5327_v0, %v5327_v0 }
  0x84   :  { %993 = vmatpush1.bf16.msra.mxu1 %v5315_v6  ;;  %953 = vmatprep.subr.bf16.mxu0 %v5317_v17  ;;  %v5347_v17 = vld [vmem:[#allocation6 + $0x268] ss:$16 sps:$4 sm:$0xff]  }
  0x85   :  { %994 = vmatprep.subr.bf16.mxu1 %v5321_v16  ;;  %6988 = vst [vmem:[#allocation70_spill] sm:$0xff] %v5347_v17  ;;  %v599_v16 = vmul.bf16 0, %v5340_v1 }
  0x87   :  { %954 = vmatpush1.bf16.msra.mxu0 %v5324_v15 }
  0x88   :  { %995 = vmatpush1.bf16.msra.mxu1 %v5331_v38  ;;  %955 = vmatprep.subr.bf16.mxu0 %v5333_v8 }
  0x89   :  { %996 = vmatprep.subr.bf16.mxu1 %v5336_v24 }
  0x8b   :  { %956 = vmatpush1.bf16.msra.mxu0 %v5343_v14 }
  0x8c   :  { %997 = vmatpush1.bf16.msra.mxu1 %v5347_v17  ;;  %1046 = vmatprep.subr.bf16.mxu0 %v5107_v43 }
  0x8d   :  { %1087 = vmatprep.subr.bf16.mxu1 %v5109_v44 }
  0x8e   :  { %958 = vmatmul.mubr.bf16.vlgmr.msra.gmra.mrb[16].mxu0 %v599_v16 }
  0x8f   :  { %999 = vmatmul.mubr.bf16.vlgmr.msra.gmra.mrb[16].mxu1 %v599_v16  ;;  %1047 = vmatpush1.bf16.msra.mxu0 %v5111_v46  ;;  %v6989_v16 = vld [vmem:[#allocation61_spill] sm:$0xff] }
  0x90   :  { %1088 = vmatpush1.bf16.msra.mxu1 %v5113_v47  ;;  %1048 = vmatprep.subr.bf16.mxu0 %v5116_v48 }
  0x91   :  { %1089 = vmatprep.subr.bf16.mxu1 %v5119_v49 }
  0x93   :  { %1049 = vmatpush1.bf16.msra.mxu0 %v5124_v50 }
  0x94   :  { %1090 = vmatpush1.bf16.msra.mxu1 %v5128_v51  ;;  %1050 = vmatprep.subr.bf16.mxu0 %v5130_v52 }
  0x95   :  { %1091 = vmatprep.subr.bf16.mxu1 %v5133_v53 }
  0x97   :  { %1051 = vmatpush1.bf16.msra.mxu0 %v5138_v54 }
  0x98   :  { %1092 = vmatpush1.bf16.msra.mxu1 %v5140_v55  ;;  %1052 = vmatprep.subr.bf16.mxu0 %v5144_v56 }
  0x99   :  { %1093 = vmatprep.subr.bf16.mxu1 %v5147_v57 }
  0x9b   :  { %1053 = vmatpush1.bf16.msra.mxu0 %v5150_v58 }
  0x9c   :  { %1094 = vmatpush1.bf16.msra.mxu1 %v5154_v59  ;;  %1054 = vmatprep.subr.bf16.mxu0 %v5156_v60 }
  0x9d   :  { %1095 = vmatprep.subr.bf16.mxu1 %v5159_v61 }
  0x9f   :  { %1055 = vmatpush1.bf16.msra.mxu0 %v5162_v62 }
  0xa0   :  { %1096 = vmatpush1.bf16.msra.mxu1 %v5164_v63  ;;  %1056 = vmatprep.subr.bf16.mxu0 %v5168_v25 }
  0xa1   :  { %1097 = vmatprep.subr.bf16.mxu1 %v5171_v26 }
  0xa3   :  { %1057 = vmatpush1.bf16.msra.mxu0 %v5173_v27 }
  0xa4   :  { %1098 = vmatpush1.bf16.msra.mxu1 %v5176_v28  ;;  %1058 = vmatprep.subr.bf16.mxu0 %v5180_v29 }
  0xa5   :  { %1099 = vmatprep.subr.bf16.mxu1 %v5186_v31 }
  0xa7   :  { %1059 = vmatpush1.bf16.msra.mxu0 %v5192_v34 }
  0xa8   :  { %1100 = vmatpush1.bf16.msra.mxu1 %v5196_v35  ;;  %1060 = vmatprep.subr.bf16.mxu0 %v5198_v36 }
  0xa9   :  { %1101 = vmatprep.subr.bf16.mxu1 %v5201_v37 }
  0xab   :  { %1061 = vmatpush1.bf16.msra.mxu0 %v5210_v39 }
  0xac   :  { %1102 = vmatpush1.bf16.msra.mxu1 %v5212_v40  ;;  %1062 = vmatprep.subr.bf16.mxu0 %v5220_v45 }
  0xad   :  { %1103 = vmatprep.subr.bf16.mxu1 %v5223_v30 }
  0xaf   :  { %1063 = vmatpush1.bf16.msra.mxu0 %v5226_v33 }
  0xb0   :  { %1104 = vmatpush1.bf16.msra.mxu1 %v5233_v12  ;;  %1064 = vmatprep.subr.bf16.mxu0 %v5235_v23 }
  0xb1   :  { %1105 = vmatprep.subr.bf16.mxu1 %v5238_v21 }
  0xb3   :  { %1065 = vmatpush1.bf16.msra.mxu0 %v5250_v20 }
  0xb4   :  { %1106 = vmatpush1.bf16.msra.mxu1 %v5256_v19  ;;  %1066 = vmatprep.subr.bf16.mxu0 %v5258_v32 }
  0xb5   :  { %1107 = vmatprep.subr.bf16.mxu1 %v5262_v18 }
  0xb7   :  { %1067 = vmatpush1.bf16.msra.mxu0 %v5265_v11 }
  0xb8   :  { %1108 = vmatpush1.bf16.msra.mxu1 %v5269_v10  ;;  %1068 = vmatprep.subr.bf16.mxu0 %v5271_v13 }
  0xb9   :  { %1109 = vmatprep.subr.bf16.mxu1 %v5277_v42  ;;  %v6990_v42 = vld [vmem:[#allocation63_spill] sm:$0xff] }
  0xbb   :  { %1069 = vmatpush1.bf16.msra.mxu0 %v5286_v7  ;;  %v6991_v7 = vld [vmem:[#allocation64_spill] sm:$0xff] }
  0xbc   :  { %1110 = vmatpush1.bf16.msra.mxu1 %v5291_v9  ;;  %1070 = vmatprep.subr.bf16.mxu0 %v5293_v5 }
  0xbd   :  { %1111 = vmatprep.subr.bf16.mxu1 %v5296_v4  ;;  %v6996_v4 = vld [vmem:[#allocation50_spill] sm:$0xff] }
  0xbf   :  { %1071 = vmatpush1.bf16.msra.mxu0 %v5299_v22 }
  0xc0   :  { %1112 = vmatpush1.bf16.msra.mxu1 %v5303_v3  ;;  %1072 = vmatprep.subr.bf16.mxu0 %v5305_v2 }
  0xc1   :  { %1113 = vmatprep.subr.bf16.mxu1 %v5308_v41 }
  0xc3   :  { %1073 = vmatpush1.bf16.msra.mxu0 %v6989_v16 }
  0xc4   :  { %1114 = vmatpush1.bf16.msra.mxu1 %v5315_v6  ;;  %1074 = vmatprep.subr.bf16.mxu0 %v6990_v42  ;;  %v6992_v42 = vld [vmem:[#allocation46_spill] sm:$0xff] }
  0xc5   :  { %1115 = vmatprep.subr.bf16.mxu1 %v6991_v7  ;;  %v226_v7 = vld [vmem:[%s6776_s1] ss:$8 sm:$0xf] }
  0xc7   :  { %1075 = vmatpush1.bf16.msra.mxu0 %v5324_v15  ;;  %v5423_v15 = vsub.s32 0, %v6992_v42 }
  0xc8   :  { %1116 = vmatpush1.bf16.msra.mxu1 %v5331_v38  ;;  %1076 = vmatprep.subr.bf16.mxu0 %v5333_v8  ;;  %v3978_v8 = vld [vmem:[%s6776_s1 + $0x1] ss:$8 sm:$0xf] }
  0xc9   :  { %1117 = vmatprep.subr.bf16.mxu1 %v5336_v24  ;;  %6993 = vst [vmem:[#allocation71_spill] sm:$0xff] %v5423_v15  ;;  %v5429_v24 = vsub.s32 1, %v6992_v42 }
  0xcb   :  { %1077 = vmatpush1.bf16.msra.mxu0 %v5343_v14  ;;  %6994 = vst [vmem:[#allocation72_spill] sm:$0xff] %v5429_v24  ;;  %v295_v14 = vrot.slane %v3978_v8, %v5423_v15  ;;  %v274_v38 = vrot.slane %v226_v7, %v5429_v24  ;;  %v299_v6 = vrot.slane %v3978_v8, %v5429_v24 }
  0xcc   :  { %1118 = vmatpush1.bf16.msra.mxu1 %v5347_v17  ;;  %1167 = vmatprep.subr.bf16.mxu0 %v5107_v43  ;;  %v5432_v17 = vsub.s32 2, %v6992_v42  ;;  %v281_v43 = vsub.s32 3, %v6992_v42 }
  0xcd   :  { %1208 = vmatprep.subr.bf16.mxu1 %v5109_v44  ;;  %v270_v44 = vrot.slane %v226_v7, %v5423_v15  ;;  %v312_v5 = vmul.f32 %v6996_v4, %v295_v14  ;;  %v288_v42 = vmul.f32 %v5327_v0, %v274_v38  ;;  %v313_v9 = vmul.f32 %v6996_v4, %v299_v6 }
  0xce   :  { %6995 = vst [vmem:[#allocation73_spill] sm:$0xff] %v5432_v17  ;;  %v278_v16 = vrot.slane %v226_v7, %v5432_v17  ;;  %v303_v41 = vrot.slane %v3978_v8, %v5432_v17  ;;  %v282_v2 = vrot.slane %v226_v7, %v281_v43  ;;  %v307_v3 = vrot.slane %v3978_v8, %v281_v43 }
  0xcf   :  { %v287_v22 = vmul.f32 %v5327_v0, %v270_v44  ;;  %v5449_v17 = vadd.f32 %v313_v9, %v288_v42 }
  0xd0   :  { %v289_v15 = vmul.f32 %v5327_v0, %v278_v16  ;;  %v314_v13 = vmul.f32 %v6996_v4, %v303_v41  ;;  %v290_v24 = vmul.f32 %v5327_v0, %v282_v2  ;;  %v315_v10 = vmul.f32 %v6996_v4, %v307_v3 }
  0xd1   :  { %v316_v11 = vadd.f32 %v312_v5, %v287_v22 }
  0xd2   :  { %v5451_v7 = vadd.f32 %v314_v13, %v289_v15  ;;  %v5453_v8 = vadd.f32 %v315_v10, %v290_v24 }
 0x121   :  { %v451_v14 = vpop.f32.mrb[0].mxu0 }
 0x122   :  { %v5455_v43 = vadd.f32 %v451_v14, %v316_v11  ;;  %v453_v44 = vpop.f32.mrb[1].mxu0  ;;  %v524_v38 = vpop.f32.mrb[0].mxu1 }
 0x123   :  { %v5458_v6 = vadd.f32 %v453_v44, %v5449_v17  ;;  %v455_v41 = vpop.f32.mrb[2].mxu0  ;;  %v603_v0 = vadd.f32 %v524_v38, %v5451_v7  ;;  %v526_v2 = vpop.f32.mrb[1].mxu1 }
 0x124   :  { %v5461_v3 = vadd.f32 %v455_v41, %v316_v11  ;;  %v457_v4 = vpop.f32.mrb[3].mxu0  ;;  %v5464_v5 = vadd.f32 %v526_v2, %v5453_v8  ;;  %v528_v9 = vpop.f32.mrb[2].mxu1 }
 0x125   :  { %v5467_v10 = vadd.f32 %v457_v4, %v5449_v17  ;;  %v5470_v13 = vadd.f32 %v528_v9, %v5451_v7  ;;  %v530_v15 = vpop.f32.mrb[3].mxu1 }
 0x126   :  { %v5473_v24 = vadd.f32 %v530_v15, %v5453_v8 }
 0x127   :  { %6997 = vst [vmem:[#allocation50_spill] sm:$0xff] %v5467_v10  ;;  %6998 = vst [vmem:[#allocation74_spill] sm:$0xff] %v5470_v13 }
 0x128   :  { %6999 = vst [vmem:[#allocation75_spill] sm:$0xff] %v5473_v24 }
 0x129   :  { %v461_v42 = vpop.f32.mrb[4].mxu0 }
 0x12a   :  { %v5475_v22 = vadd.f32 %v461_v42, %v316_v11  ;;  %v463_v16 = vpop.f32.mrb[5].mxu0  ;;  %v534_v14 = vpop.f32.mrb[4].mxu1 }
 0x12b   :  { %v5478_v44 = vadd.f32 %v463_v16, %v5449_v17  ;;  %v465_v38 = vpop.f32.mrb[6].mxu0  ;;  %v5481_v41 = vadd.f32 %v534_v14, %v5451_v7  ;;  %v536_v2 = vpop.f32.mrb[5].mxu1 }
 0x12c   :  { %7000 = vst [vmem:[#allocation76_spill] sm:$0xff] %v5475_v22  ;;  %v5483_v4 = vadd.f32 %v465_v38, %v316_v11  ;;  %v467_v9 = vpop.f32.mrb[7].mxu0  ;;  %v5486_v10 = vadd.f32 %v536_v2, %v5453_v8  ;;  %v538_v15 = vpop.f32.mrb[6].mxu1 }
 0x12d   :  { %7001 = vst [vmem:[#allocation77_spill] sm:$0xff] %v5478_v44  ;;  %7002 = vst [vmem:[#allocation78_spill] sm:$0xff] %v5481_v41  ;;  %v5489_v42 = vadd.f32 %v467_v9, %v5449_v17  ;;  %v5492_v22 = vadd.f32 %v538_v15, %v5451_v7  ;;  %v540_v16 = vpop.f32.mrb[7].mxu1 }
 0x12e   :  { %7003 = vst [vmem:[#allocation79_spill] sm:$0xff] %v5483_v4  ;;  %7004 = vst [vmem:[#allocation80_spill] sm:$0xff] %v5486_v10  ;;  %v5495_v44 = vadd.f32 %v540_v16, %v5453_v8 }
 0x12f   :  { %7005 = vst [vmem:[#allocation81_spill] sm:$0xff] %v5489_v42  ;;  %7006 = vst [vmem:[#allocation82_spill] sm:$0xff] %v5492_v22 }
 0x130   :  { %7007 = vst [vmem:[#allocation83_spill] sm:$0xff] %v5495_v44 }
 0x131   :  { %v471_v14 = vpop.f32.mrb[8].mxu0 }
 0x132   :  { %v5497_v41 = vadd.f32 %v471_v14, %v316_v11  ;;  %v473_v38 = vpop.f32.mrb[9].mxu0  ;;  %v544_v4 = vpop.f32.mrb[8].mxu1 }
 0x133   :  { %v5500_v24 = vadd.f32 %v473_v38, %v5449_v17  ;;  %v475_v2 = vpop.f32.mrb[10].mxu0  ;;  %v5503_v10 = vadd.f32 %v544_v4, %v5451_v7  ;;  %v546_v9 = vpop.f32.mrb[9].mxu1 }
 0x134   :  { %7008 = vst [vmem:[#allocation84_spill] sm:$0xff] %v5497_v41  ;;  %v5505_v42 = vadd.f32 %v475_v2, %v316_v11  ;;  %v477_v15 = vpop.f32.mrb[11].mxu0  ;;  %v5508_v22 = vadd.f32 %v546_v9, %v5453_v8  ;;  %v548_v16 = vpop.f32.mrb[10].mxu1 }
 0x135   :  { %7009 = vst [vmem:[#allocation85_spill] sm:$0xff] %v5500_v24  ;;  %7010 = vst [vmem:[#allocation86_spill] sm:$0xff] %v5503_v10  ;;  %v5511_v14 = vadd.f32 %v477_v15, %v5449_v17  ;;  %v5514_v41 = vadd.f32 %v548_v16, %v5451_v7  ;;  %v550_v38 = vpop.f32.mrb[11].mxu1 }
 0x136   :  { %7011 = vst [vmem:[#allocation87_spill] sm:$0xff] %v5505_v42  ;;  %7012 = vst [vmem:[#allocation88_spill] sm:$0xff] %v5508_v22  ;;  %v5517_v24 = vadd.f32 %v550_v38, %v5453_v8 }
 0x137   :  { %7013 = vst [vmem:[#allocation89_spill] sm:$0xff] %v5511_v14  ;;  %7014 = vst [vmem:[#allocation90_spill] sm:$0xff] %v5514_v41 }
 0x138   :  { %7015 = vst [vmem:[#allocation91_spill] sm:$0xff] %v5517_v24 }
 0x139   :  { %v481_v4 = vpop.f32.mrb[12].mxu0 }
 0x13a   :  { %v5519_v10 = vadd.f32 %v481_v4, %v316_v11  ;;  %v483_v2 = vpop.f32.mrb[13].mxu0  ;;  %v554_v42 = vpop.f32.mrb[12].mxu1 }
 0x13b   :  { %v5522_v44 = vadd.f32 %v483_v2, %v5449_v17  ;;  %v485_v9 = vpop.f32.mrb[14].mxu0  ;;  %v5525_v22 = vadd.f32 %v554_v42, %v5451_v7  ;;  %v556_v15 = vpop.f32.mrb[13].mxu1 }
 0x13c   :  { %7016 = vst [vmem:[#allocation92_spill] sm:$0xff] %v5519_v10  ;;  %v5527_v14 = vadd.f32 %v485_v9, %v316_v11  ;;  %v487_v16 = vpop.f32.mrb[15].mxu0  ;;  %v5530_v41 = vadd.f32 %v556_v15, %v5453_v8  ;;  %v558_v38 = vpop.f32.mrb[14].mxu1 }
 0x13d   :  { %7017 = vst [vmem:[#allocation93_spill] sm:$0xff] %v5522_v44  ;;  %7018 = vst [vmem:[#allocation94_spill] sm:$0xff] %v5525_v22  ;;  %v5533_v4 = vadd.f32 %v487_v16, %v5449_v17  ;;  %v5536_v10 = vadd.f32 %v558_v38, %v5451_v7  ;;  %v560_v2 = vpop.f32.mrb[15].mxu1 }
 0x13e   :  { %7019 = vst [vmem:[#allocation95_spill] sm:$0xff] %v5527_v14  ;;  %7020 = vst [vmem:[#allocation96_spill] sm:$0xff] %v5530_v41  ;;  %v5539_v44 = vadd.f32 %v560_v2, %v5453_v8 }
 0x13f   :  { %7021 = vst [vmem:[#allocation97_spill] sm:$0xff] %v5533_v4  ;;  %7022 = vst [vmem:[#allocation98_spill] sm:$0xff] %v5536_v10  ;;  %v7049_v10 = vld [vmem:[#allocation74_spill] sm:$0xff] }
 0x140   :  { %7023 = vst [vmem:[#allocation99_spill] sm:$0xff] %v5539_v44 }
 0x161   :  { %v959_v42 = vpop.f32.mrb[16].mxu0 }
 0x162   :  { %v1007_v22 = vadd.f32 %v959_v42, %v5455_v43  ;;  %v1000_v11 = vpop.f32.mrb[16].mxu1  ;;  %v961_v9 = vpop.f32.mrb[17].mxu0 }
 0x163   :  { %v1009_v14 = vadd.f32 %v1000_v11, %v603_v0  ;;  %v1008_v15 = vadd.f32 %v961_v9, %v5458_v6  ;;  %v1002_v41 = vpop.f32.mrb[17].mxu1  ;;  %v963_v24 = vpop.f32.mrb[18].mxu0 }
 0x164   :  { %v4071_v13 = vmul.f32 -1.442695, %v1007_v22  ;;  %v1010_v17 = vadd.f32 %v1002_v41, %v5464_v5  ;;  %v964_v16 = vpop.f32.mrb[19].mxu0  ;;  %v1004_v7 = vpop.f32.mrb[18].mxu1 }
 0x165   :  { %v4072_v38 = vmul.f32 -1.442695, %v1008_v15  ;;  %v1005_v4 = vpop.f32.mrb[19].mxu1  ;;  %v4073_v8 = vmul.f32 -1.442695, %v1009_v14  ;;  %v7033_v7 = vld [vmem:[#allocation57_spill] sm:$0xff] }
 0x166   :  { %4568 = vpow2.f32 %v4071_v13 }
 0x167   :  { %4570 = vpow2.f32 %v4072_v38  ;;  %v7034_v38 = vld [vmem:[#allocation58_spill] sm:$0xff] }
 0x168   :  { %4572 = vpow2.f32 %v4073_v8  ;;  %v7035_v8 = vld [vmem:[#allocation59_spill] sm:$0xff] }
 0x169   :  { %4574 = vtanh.f32 %v1010_v17  ;;  %v7024_v17 = vld [vmem:[#allocation52_spill] sm:$0xff] }
 0x170   :  { %v4569_v2 = vpop.eup %4568 }
 0x171   :  { %v1020_v44 = vadd.f32 1.0, %v4569_v2  ;;  %v4571_v43 = vpop.eup %4570  ;;  %v7036_v2 = vld [vmem:[#allocation60_spill] sm:$0xff] }
 0x172   :  { %v1021_v0 = vadd.f32 1.0, %v4571_v43  ;;  %v4573_v6 = vpop.eup %4572  ;;  %v7037_v43 = vld [vmem:[#allocation61_spill] sm:$0xff] }
 0x173   :  { %4576 = vrcp.f32 %v1020_v44  ;;  %v4575_v24 = vpop.eup %4574  ;;  %v1022_v41 = vadd.f32 1.0, %v4573_v6  ;;  %v7039_v6 = vld [vmem:[#allocation63_spill] sm:$0xff] }
 0x174   :  { %4578 = vrcp.f32 %v1021_v0  ;;  %v7038_v0 = vld [vmem:[#allocation62_spill] sm:$0xff] }
 0x175   :  { %4580 = vrcp.f32 %v1022_v41  ;;  %v7044_v41 = vld [vmem:[#allocation68_spill] sm:$0xff] }
 0x17d   :  { %v4577_v22 = vpop.eup %4576 }
 0x17e   :  { %v1031_v42 = vmul.f32 %v4577_v22, %v4575_v24  ;;  %v4579_v5 = vpop.eup %4578  ;;  %v7040_v24 = vld [vmem:[#allocation64_spill] sm:$0xff]  ;;  %v7041_v22 = vld [vmem:[#allocation65_spill] sm:$0xff] }
 0x17f   :  { %v1030_v11 = vmul.f32 0.0, %v4579_v5  ;;  %v4581_v13 = vpop.eup %4580  ;;  %v7043_v5 = vld [vmem:[#allocation67_spill] sm:$0xff] }
 0x181   :  { %v5544_v9 = vadd.f32 %v1031_v42, %v1030_v11  ;;  %v7042_v42 = vld [vmem:[#allocation66_spill] sm:$0xff]  ;;  %v7045_v11 = vld [vmem:[#allocation69_spill] sm:$0xff] }
 0x183   :  { %4582 = vtanh.f32 %v5544_v9 }
 0x18d   :  { %v4583_v14 = vpop.eup %4582 }
 0x18e   :  { %v1034_v4 = vmul.f32 %v4583_v14, %v4581_v13  ;;  %v7046_v13 = vld [vmem:[#allocation70_spill] sm:$0xff]  ;;  %v7047_v14 = vld [vmem:[#allocation44_spill] sm:$0xff] }
 0x190   :  { %v1039_v15 = vpack.c.bf16 %v1034_v4, %v1034_v4  ;;  %v7048_v4 = vld [vmem:[#allocation45_spill] sm:$0xff] }
 0x192   :  { %v1041_v44 = vmul.bf16 %v1039_v15, %v7024_v17  ;;  %v1040_v16 = vmul.bf16 %v1039_v15, %v5340_v1 }
 0x194   :  { %1078 = vmatprep.mubr.bf16.mxu0 %v1041_v44  ;;  %1119 = vmatprep.mubr.bf16.mxu1 %v1041_v44 }
 0x195   :  { %1079 = vmatmul.mubr.bf16.vlgmr.msra.gmra.mrb[20].mxu0 %v1040_v16  ;;  %1120 = vmatmul.mubr.bf16.vlgmr.msra.gmra.mrb[20].mxu1 %v1040_v16 }
 0x196   :  { %1168 = vmatpush1.bf16.msra.mxu0 %v5111_v46  ;;  %1209 = vmatpush1.bf16.msra.mxu1 %v5113_v47  ;;  %v7025_v46 = vld [vmem:[#allocation47_spill] sm:$0xff]  ;;  %v7026_v47 = vld [vmem:[#allocation48_spill] sm:$0xff] }
 0x197   :  { %1169 = vmatprep.subr.bf16.mxu0 %v5116_v48  ;;  %1210 = vmatprep.subr.bf16.mxu1 %v5119_v49  ;;  %v7027_v48 = vld [vmem:[#allocation49_spill] sm:$0xff]  ;;  %v7028_v49 = vld [vmem:[#allocation51_spill] sm:$0xff] }
 0x19a   :  { %1170 = vmatpush1.bf16.msra.mxu0 %v5124_v50  ;;  %1211 = vmatpush1.bf16.msra.mxu1 %v5128_v51  ;;  %v7029_v50 = vld [vmem:[#allocation53_spill] sm:$0xff]  ;;  %v7030_v51 = vld [vmem:[#allocation54_spill] sm:$0xff] }
 0x19b   :  { %1171 = vmatprep.subr.bf16.mxu0 %v5130_v52  ;;  %1212 = vmatprep.subr.bf16.mxu1 %v5133_v53  ;;  %v7031_v52 = vld [vmem:[#allocation55_spill] sm:$0xff]  ;;  %v7032_v53 = vld [vmem:[#allocation56_spill] sm:$0xff] }
 0x19e   :  { %1172 = vmatpush1.bf16.msra.mxu0 %v5138_v54  ;;  %1213 = vmatpush1.bf16.msra.mxu1 %v5140_v55 }
 0x19f   :  { %1173 = vmatprep.subr.bf16.mxu0 %v5144_v56  ;;  %1214 = vmatprep.subr.bf16.mxu1 %v5147_v57 }
 0x1a2   :  { %1174 = vmatpush1.bf16.msra.mxu0 %v5150_v58  ;;  %1215 = vmatpush1.bf16.msra.mxu1 %v5154_v59 }
 0x1a3   :  { %1175 = vmatprep.subr.bf16.mxu0 %v5156_v60  ;;  %1216 = vmatprep.subr.bf16.mxu1 %v5159_v61 }
 0x1a6   :  { %1176 = vmatpush1.bf16.msra.mxu0 %v5162_v62  ;;  %1217 = vmatpush1.bf16.msra.mxu1 %v5164_v63 }
 0x1a7   :  { %1177 = vmatprep.subr.bf16.mxu0 %v5168_v25  ;;  %1218 = vmatprep.subr.bf16.mxu1 %v5171_v26 }
 0x1aa   :  { %1178 = vmatpush1.bf16.msra.mxu0 %v5173_v27  ;;  %1219 = vmatpush1.bf16.msra.mxu1 %v5176_v28 }
 0x1ab   :  { %1179 = vmatprep.subr.bf16.mxu0 %v5180_v29  ;;  %1220 = vmatprep.subr.bf16.mxu1 %v5186_v31 }
 0x1ae   :  { %1180 = vmatpush1.bf16.msra.mxu0 %v5192_v34  ;;  %1221 = vmatpush1.bf16.msra.mxu1 %v5196_v35 }
 0x1af   :  { %1181 = vmatprep.subr.bf16.mxu0 %v5198_v36  ;;  %1222 = vmatprep.subr.bf16.mxu1 %v5201_v37 }
 0x1b2   :  { %1182 = vmatpush1.bf16.msra.mxu0 %v5210_v39  ;;  %1223 = vmatpush1.bf16.msra.mxu1 %v5212_v40 }
 0x1b3   :  { %1183 = vmatprep.subr.bf16.mxu0 %v5220_v45  ;;  %1224 = vmatprep.subr.bf16.mxu1 %v5223_v30 }
 0x1b6   :  { %1184 = vmatpush1.bf16.msra.mxu0 %v5226_v33  ;;  %1225 = vmatpush1.bf16.msra.mxu1 %v5233_v12 }
 0x1b7   :  { %1185 = vmatprep.subr.bf16.mxu0 %v5235_v23  ;;  %1226 = vmatprep.subr.bf16.mxu1 %v5238_v21 }
 0x1ba   :  { %1186 = vmatpush1.bf16.msra.mxu0 %v5250_v20  ;;  %1227 = vmatpush1.bf16.msra.mxu1 %v5256_v19 }
 0x1bb   :  { %1187 = vmatprep.subr.bf16.mxu0 %v5258_v32  ;;  %1228 = vmatprep.subr.bf16.mxu1 %v5262_v18 }
 0x1be   :  { %1188 = vmatpush1.bf16.msra.mxu0 %v7025_v46  ;;  %1229 = vmatpush1.bf16.msra.mxu1 %v7026_v47 }
 0x1bf   :  { %1189 = vmatprep.subr.bf16.mxu0 %v7027_v48  ;;  %1230 = vmatprep.subr.bf16.mxu1 %v7028_v49 }
 0x1c2   :  { %1190 = vmatpush1.bf16.msra.mxu0 %v7029_v50  ;;  %1231 = vmatpush1.bf16.msra.mxu1 %v7030_v51 }
 0x1c3   :  { %1191 = vmatprep.subr.bf16.mxu0 %v7031_v52  ;;  %1232 = vmatprep.subr.bf16.mxu1 %v7032_v53 }
 0x1c6   :  { %1192 = vmatpush1.bf16.msra.mxu0 %v7033_v7  ;;  %1233 = vmatpush1.bf16.msra.mxu1 %v7034_v38 }
 0x1c7   :  { %1193 = vmatprep.subr.bf16.mxu0 %v7035_v8  ;;  %1234 = vmatprep.subr.bf16.mxu1 %v7036_v2 }
 0x1ca   :  { %1194 = vmatpush1.bf16.msra.mxu0 %v7037_v43  ;;  %1235 = vmatpush1.bf16.msra.mxu1 %v7038_v0  ;;  %v7051_v0 = vld [vmem:[#allocation75_spill] sm:$0xff] }
 0x1cb   :  { %1195 = vmatprep.subr.bf16.mxu0 %v7039_v6  ;;  %1236 = vmatprep.subr.bf16.mxu1 %v7040_v24  ;;  %v7050_v6 = vld [vmem:[#allocation50_spill] sm:$0xff] }
 0x1ce   :  { %1196 = vmatpush1.bf16.msra.mxu0 %v7041_v22  ;;  %1237 = vmatpush1.bf16.msra.mxu1 %v7042_v42 }
 0x1cf   :  { %1197 = vmatprep.subr.bf16.mxu0 %v7043_v5  ;;  %1238 = vmatprep.subr.bf16.mxu1 %v7044_v41 }
 0x1d2   :  { %1198 = vmatpush1.bf16.msra.mxu0 %v7045_v11  ;;  %1239 = vmatpush1.bf16.msra.mxu1 %v7046_v13 }
 0x1d3   :  { %1288 = vmatprep.subr.bf16.mxu0 %v7047_v14  ;;  %1329 = vmatprep.subr.bf16.mxu1 %v7048_v4 }
 0x268   :  { %v1080_v15 = vpop.f32.mrb[20].mxu0  ;;  %v1121_v44 = vpop.f32.mrb[20].mxu1 }
 0x269   :  { %v1128_v16 = vadd.f32 %v1080_v15, %v5461_v3  ;;  %v1130_v22 = vadd.f32 %v1121_v44, %v7049_v10  ;;  %v1082_v24 = vpop.f32.mrb[21].mxu0  ;;  %v1123_v42 = vpop.f32.mrb[21].mxu1  ;;  %v5623_v15 = vld [vmem:[#allocation6 + $0x80] ss:$16 sps:$4 sm:$0xff]   ;;  %v5629_v44 = vld [vmem:[#allocation6 + $0xa4] ss:$16 sps:$4 sm:$0xff]  }
 0x26a   :  { %v1129_v5 = vadd.f32 %v1082_v24, %v7050_v6  ;;  %v1131_v41 = vadd.f32 %v1123_v42, %v7051_v0  ;;  %v1084_v43 = vpop.f32.mrb[22].mxu0  ;;  %v1125_v11 = vpop.f32.mrb[22].mxu1 }
 0x26b   :  { %v4074_v2 = vmul.f32 -1.442695, %v1128_v16  ;;  %v1085_v13 = vpop.f32.mrb[23].mxu0  ;;  %v1126_v8 = vpop.f32.mrb[23].mxu1  ;;  %v4076_v4 = vmul.f32 -1.442695, %v1130_v22 }
 0x26c   :  { %v4075_v14 = vmul.f32 -1.442695, %v1129_v5  ;;  %v5632_v16 = vld [vmem:[#allocation6 + $0xac] ss:$16 sps:$4 sm:$0xff]  }
 0x26d   :  { %4584 = vpow2.f32 %v4074_v2 }
 0x26e   :  { %4586 = vpow2.f32 %v4075_v14  ;;  %v5635_v14 = vld [vmem:[#allocation6 + $0xa0] ss:$16 sps:$4 sm:$0xff]  }
 0x26f   :  { %4588 = vtanh.f32 %v1131_v41 }
 0x270   :  { %4590 = vpow2.f32 %v4076_v4  ;;  %v5638_v4 = vld [vmem:[#allocation6 + $0xa8] ss:$16 sps:$4 sm:$0xff]  }
 0x277   :  { %v4585_v38 = vpop.eup %4584 }
 0x278   :  { %v1141_v7 = vadd.f32 1.0, %v4585_v38  ;;  %v4587_v3 = vpop.eup %4586 }
 0x279   :  { %v1142_v10 = vadd.f32 1.0, %v4587_v3  ;;  %v4589_v6 = vpop.eup %4588  ;;  %v5641_v3 = vld [vmem:[#allocation6 + $0xc4] ss:$16 sps:$4 sm:$0xff]  }
 0x27a   :  { %4592 = vrcp.f32 %v1141_v7  ;;  %v4591_v24 = vpop.eup %4590 }
 0x27b   :  { %4594 = vrcp.f32 %v1142_v10  ;;  %v1143_v11 = vadd.f32 1.0, %v4591_v24  ;;  %v5644_v10 = vld [vmem:[#allocation6 + $0xcc] ss:$16 sps:$4 sm:$0xff]  }
 0x27d   :  { %4596 = vrcp.f32 %v1143_v11 }
 0x284   :  { %v4593_v0 = vpop.eup %4592 }
 0x285   :  { %v1152_v43 = vmul.f32 %v4593_v0, %v4589_v6  ;;  %v4595_v42 = vpop.eup %4594 }
 0x286   :  { %v1151_v8 = vmul.f32 %v4595_v42, %v5544_v9  ;;  %v5626_v9 = vld [vmem:[#allocation6 + $0x88] ss:$16 sps:$4 sm:$0xff]  }
 0x287   :  { %v4597_v38 = vpop.eup %4596 }
 0x288   :  { %v5618_v5 = vadd.f32 %v1152_v43, %v1151_v8 }
 0x28a   :  { %4598 = vtanh.f32 %v5618_v5 }
 0x294   :  { %v4599_v2 = vpop.eup %4598 }
 0x295   :  { %v1155_v22 = vmul.f32 %v4599_v2, %v4597_v38 }
 0x297   :  { %v1160_v41 = vpack.c.bf16 %v1155_v22, %v1155_v22 }
 0x299   :  { %v1162_v7 = vmul.bf16 %v1160_v41, %v7024_v17  ;;  %v1161_v13 = vmul.bf16 %v1160_v41, %v5340_v1 }
 0x29b   :  { %1199 = vmatprep.mubr.bf16.mxu0 %v1162_v7  ;;  %1240 = vmatprep.mubr.bf16.mxu1 %v1162_v7 }
 0x29c   :  { %1200 = vmatmul.mubr.bf16.vlgmr.msra.gmra.mrb[24].mxu0 %v1161_v13  ;;  %1241 = vmatmul.mubr.bf16.vlgmr.msra.gmra.mrb[24].mxu1 %v1161_v13 }
 0x29d   :  { %1289 = vmatpush1.bf16.msra.mxu0 %v5623_v15  ;;  %1330 = vmatpush1.bf16.msra.mxu1 %v5626_v9 }
 0x29e   :  { %1290 = vmatprep.subr.bf16.mxu0 %v5629_v44  ;;  %1331 = vmatprep.subr.bf16.mxu1 %v5632_v16 }
 0x2a1   :  { %1291 = vmatpush1.bf16.msra.mxu0 %v5635_v14  ;;  %1332 = vmatpush1.bf16.msra.mxu1 %v5638_v4 }
 0x2a2   :  { %1292 = vmatprep.subr.bf16.mxu0 %v5641_v3  ;;  %1333 = vmatprep.subr.bf16.mxu1 %v5644_v10 }
 0x2a5   :  { %1293 = vmatpush1.bf16.msra.mxu0 %v5138_v54  ;;  %1334 = vmatpush1.bf16.msra.mxu1 %v5140_v55  ;;  %v7058_v54 = vld [vmem:[#allocation63_spill] sm:$0xff]  ;;  %v7059_v55 = vld [vmem:[#allocation64_spill] sm:$0xff] }
 0x2a6   :  { %1294 = vmatprep.subr.bf16.mxu0 %v5144_v56  ;;  %1335 = vmatprep.subr.bf16.mxu1 %v5147_v57  ;;  %v7060_v56 = vld [vmem:[#allocation65_spill] sm:$0xff]  ;;  %v7061_v57 = vld [vmem:[#allocation66_spill] sm:$0xff] }
 0x2a9   :  { %1295 = vmatpush1.bf16.msra.mxu0 %v5150_v58  ;;  %1336 = vmatpush1.bf16.msra.mxu1 %v5154_v59  ;;  %v7062_v58 = vld [vmem:[#allocation67_spill] sm:$0xff]  ;;  %v7063_v59 = vld [vmem:[#allocation68_spill] sm:$0xff] }
 0x2aa   :  { %1296 = vmatprep.subr.bf16.mxu0 %v5156_v60  ;;  %1337 = vmatprep.subr.bf16.mxu1 %v5159_v61  ;;  %v7064_v60 = vld [vmem:[#allocation69_spill] sm:$0xff]  ;;  %v7065_v61 = vld [vmem:[#allocation70_spill] sm:$0xff] }
 0x2ad   :  { %1297 = vmatpush1.bf16.msra.mxu0 %v5162_v62  ;;  %1338 = vmatpush1.bf16.msra.mxu1 %v5164_v63  ;;  %v5701_v62 = vld [vmem:[#allocation6 + $0x84] ss:$16 sps:$4 sm:$0xff]   ;;  %v5704_v63 = vld [vmem:[#allocation6 + $0x8c] ss:$16 sps:$4 sm:$0xff]  }
 0x2ae   :  { %1298 = vmatprep.subr.bf16.mxu0 %v5168_v25  ;;  %1339 = vmatprep.subr.bf16.mxu1 %v5171_v26  ;;  %7066 = vst [vmem:[#allocation52_spill] sm:$0xff] %v5701_v62  ;;  %7067 = vst [vmem:[#allocation47_spill] sm:$0xff] %v5704_v63 }
 0x2b1   :  { %1299 = vmatpush1.bf16.msra.mxu0 %v5173_v27  ;;  %1340 = vmatpush1.bf16.msra.mxu1 %v5176_v28  ;;  %v7068_v27 = vld [vmem:[#allocation76_spill] sm:$0xff] }
 0x2b2   :  { %1300 = vmatprep.subr.bf16.mxu0 %v5180_v29  ;;  %1341 = vmatprep.subr.bf16.mxu1 %v5186_v31  ;;  %v7069_v29 = vld [vmem:[#allocation78_spill] sm:$0xff] }
 0x2b5   :  { %1301 = vmatpush1.bf16.msra.mxu0 %v5192_v34  ;;  %1342 = vmatpush1.bf16.msra.mxu1 %v5196_v35 }
 0x2b6   :  { %1302 = vmatprep.subr.bf16.mxu0 %v5198_v36  ;;  %1343 = vmatprep.subr.bf16.mxu1 %v5201_v37  ;;  %v7070_v36 = vld [vmem:[#allocation77_spill] sm:$0xff] }
 0x2b9   :  { %1303 = vmatpush1.bf16.msra.mxu0 %v5210_v39  ;;  %1344 = vmatpush1.bf16.msra.mxu1 %v5212_v40  ;;  %v7071_v39 = vld [vmem:[#allocation80_spill] sm:$0xff] }
 0x2ba   :  { %1304 = vmatprep.subr.bf16.mxu0 %v5220_v45  ;;  %1345 = vmatprep.subr.bf16.mxu1 %v5223_v30 }
 0x2bd   :  { %1305 = vmatpush1.bf16.msra.mxu0 %v5226_v33  ;;  %1346 = vmatpush1.bf16.msra.mxu1 %v5233_v12  ;;  %v7052_v12 = vld [vmem:[#allocation57_spill] sm:$0xff] }
 0x2be   :  { %1306 = vmatprep.subr.bf16.mxu0 %v5235_v23  ;;  %1347 = vmatprep.subr.bf16.mxu1 %v5238_v21  ;;  %v7056_v21 = vld [vmem:[#allocation61_spill] sm:$0xff]  ;;  %v7057_v23 = vld [vmem:[#allocation62_spill] sm:$0xff] }
 0x2c1   :  { %1307 = vmatpush1.bf16.msra.mxu0 %v5250_v20  ;;  %1348 = vmatpush1.bf16.msra.mxu1 %v5256_v19  ;;  %v7053_v19 = vld [vmem:[#allocation58_spill] sm:$0xff]  ;;  %v7055_v20 = vld [vmem:[#allocation60_spill] sm:$0xff] }
 0x2c2   :  { %1308 = vmatprep.subr.bf16.mxu0 %v5258_v32  ;;  %1349 = vmatprep.subr.bf16.mxu1 %v5262_v18  ;;  %v7054_v18 = vld [vmem:[#allocation59_spill] sm:$0xff] }
 0x2c5   :  { %1309 = vmatpush1.bf16.msra.mxu0 %v7025_v46  ;;  %1350 = vmatpush1.bf16.msra.mxu1 %v7026_v47 }
 0x2c6   :  { %1310 = vmatprep.subr.bf16.mxu0 %v7027_v48  ;;  %1351 = vmatprep.subr.bf16.mxu1 %v7028_v49 }
 0x2c9   :  { %1311 = vmatpush1.bf16.msra.mxu0 %v7029_v50  ;;  %1352 = vmatpush1.bf16.msra.mxu1 %v7030_v51 }
 0x2ca   :  { %1312 = vmatprep.subr.bf16.mxu0 %v7031_v52  ;;  %1353 = vmatprep.subr.bf16.mxu1 %v7032_v53 }
 0x2cd   :  { %1313 = vmatpush1.bf16.msra.mxu0 %v7052_v12  ;;  %1354 = vmatpush1.bf16.msra.mxu1 %v7053_v19 }
 0x2ce   :  { %1314 = vmatprep.subr.bf16.mxu0 %v7054_v18  ;;  %1355 = vmatprep.subr.bf16.mxu1 %v7055_v20 }
 0x2d1   :  { %1315 = vmatpush1.bf16.msra.mxu0 %v7056_v21  ;;  %1356 = vmatpush1.bf16.msra.mxu1 %v7057_v23 }
 0x2d2   :  { %1316 = vmatprep.subr.bf16.mxu0 %v7058_v54  ;;  %1357 = vmatprep.subr.bf16.mxu1 %v7059_v55 }
 0x2d5   :  { %1317 = vmatpush1.bf16.msra.mxu0 %v7060_v56  ;;  %1358 = vmatpush1.bf16.msra.mxu1 %v7061_v57 }
 0x2d6   :  { %1318 = vmatprep.subr.bf16.mxu0 %v7062_v58  ;;  %1359 = vmatprep.subr.bf16.mxu1 %v7063_v59 }
 0x2d9   :  { %1319 = vmatpush1.bf16.msra.mxu0 %v7064_v60  ;;  %1360 = vmatpush1.bf16.msra.mxu1 %v7065_v61 }
 0x2da   :  { %1409 = vmatprep.subr.bf16.mxu0 %v5701_v62  ;;  %1450 = vmatprep.subr.bf16.mxu1 %v5704_v63 }
 0x36f   :  { %v1201_v25 = vpop.f32.mrb[24].mxu0  ;;  %v1242_v26 = vpop.f32.mrb[24].mxu1 }
 0x370   :  { %v1249_v28 = vadd.f32 %v1201_v25, %v7068_v27  ;;  %v1251_v31 = vadd.f32 %v1242_v26, %v7069_v29  ;;  %v1203_v34 = vpop.f32.mrb[25].mxu0  ;;  %v1244_v35 = vpop.f32.mrb[25].mxu1  ;;  %v5728_v29 = vld [vmem:[#allocation6 + $0xc8] ss:$16 sps:$4 sm:$0xff]  }
 0x371   :  { %v1250_v37 = vadd.f32 %v1203_v34, %v7070_v36  ;;  %v1252_v40 = vadd.f32 %v1244_v35, %v7071_v39  ;;  %v1205_v45 = vpop.f32.mrb[26].mxu0  ;;  %v1246_v30 = vpop.f32.mrb[26].mxu1  ;;  %v5734_v34 = vld [vmem:[#allocation6 + $0xec] ss:$16 sps:$4 sm:$0xff]   ;;  %v5737_v35 = vld [vmem:[#allocation6 + $0xe0] ss:$16 sps:$4 sm:$0xff]  }
 0x372   :  { %v4077_v33 = vmul.f32 -1.442695, %v1249_v28  ;;  %v1206_v32 = vpop.f32.mrb[27].mxu0  ;;  %v1247_v46 = vpop.f32.mrb[27].mxu1  ;;  %v4079_v48 = vmul.f32 -1.442695, %v1251_v31 }
 0x373   :  { %v4078_v47 = vmul.f32 -1.442695, %v1250_v37  ;;  %v5731_v31 = vld [vmem:[#allocation6 + $0xe4] ss:$16 sps:$4 sm:$0xff]   ;;  %v5740_v36 = vld [vmem:[#allocation6 + $0xe8] ss:$16 sps:$4 sm:$0xff]  }
 0x374   :  { %4600 = vpow2.f32 %v4077_v33  ;;  %v5743_v37 = vld [vmem:[#allocation6 + $0x104] ss:$16 sps:$4 sm:$0xff]   ;;  %v5746_v39 = vld [vmem:[#allocation6 + $0x10c] ss:$16 sps:$4 sm:$0xff]   ;;  %v5752_v45 = vld [vmem:[#allocation6 + $0x108] ss:$16 sps:$4 sm:$0xff]  }
 0x375   :  { %4602 = vpow2.f32 %v4078_v47  ;;  %v5755_v30 = vld [vmem:[#allocation6 + $0x124] ss:$16 sps:$4 sm:$0xff]   ;;  %v5758_v33 = vld [vmem:[#allocation6 + $0x12c] ss:$16 sps:$4 sm:$0xff]   ;;  %v5761_v32 = vld [vmem:[#allocation6 + $0x120] ss:$16 sps:$4 sm:$0xff]  }
 0x376   :  { %4604 = vtanh.f32 %v1252_v40  ;;  %v5749_v40 = vld [vmem:[#allocation6 + $0x100] ss:$16 sps:$4 sm:$0xff]   ;;  %v5764_v46 = vld [vmem:[#allocation6 + $0x128] ss:$16 sps:$4 sm:$0xff]   ;;  %v5767_v47 = vld [vmem:[#allocation6 + $0x144] ss:$16 sps:$4 sm:$0xff]  }
 0x377   :  { %4606 = vpow2.f32 %v4079_v48  ;;  %v5770_v48 = vld [vmem:[#allocation6 + $0x14c] ss:$16 sps:$4 sm:$0xff]  }
 0x37e   :  { %v4601_v49 = vpop.eup %4600 }
 0x37f   :  { %v1262_v6 = vadd.f32 1.0, %v4601_v49  ;;  %v4603_v24 = vpop.eup %4602  ;;  %v5773_v49 = vld [vmem:[#allocation6 + $0x140] ss:$16 sps:$4 sm:$0xff]  }
 0x380   :  { %v1263_v0 = vadd.f32 1.0, %v4603_v24  ;;  %v4605_v43 = vpop.eup %4604  ;;  %v5779_v24 = vld [vmem:[#allocation6 + $0x164] ss:$16 sps:$4 sm:$0xff]  }
 0x381   :  { %4608 = vrcp.f32 %v1262_v6  ;;  %v4607_v42 = vpop.eup %4606  ;;  %v5776_v6 = vld [vmem:[#allocation6 + $0x148] ss:$16 sps:$4 sm:$0xff]  }
 0x382   :  { %4610 = vrcp.f32 %v1263_v0  ;;  %v1264_v2 = vadd.f32 1.0, %v4607_v42  ;;  %v5782_v0 = vld [vmem:[#allocation6 + $0x16c] ss:$16 sps:$4 sm:$0xff]   ;;  %v5788_v42 = vld [vmem:[#allocation6 + $0x168] ss:$16 sps:$4 sm:$0xff]  }
 0x384   :  { %4612 = vrcp.f32 %v1264_v2  ;;  %v5800_v2 = vld [vmem:[#allocation6 + $0x188] ss:$16 sps:$4 sm:$0xff]  }
 0x38b   :  { %v4609_v11 = vpop.eup %4608 }
 0x38c   :  { %v1273_v8 = vmul.f32 %v4609_v11, %v4605_v43  ;;  %v4611_v38 = vpop.eup %4610  ;;  %v5785_v43 = vld [vmem:[#allocation6 + $0x160] ss:$16 sps:$4 sm:$0xff]   ;;  %v5791_v11 = vld [vmem:[#allocation6 + $0x184] ss:$16 sps:$4 sm:$0xff]  }
 0x38d   :  { %v1272_v22 = vmul.f32 %v4611_v38, %v5618_v5  ;;  %v5725_v5 = vld [vmem:[#allocation6 + $0xc0] ss:$16 sps:$4 sm:$0xff]  }
 0x38e   :  { %v4613_v7 = vpop.eup %4612  ;;  %v5797_v38 = vld [vmem:[#allocation6 + $0x180] ss:$16 sps:$4 sm:$0xff]  }
 0x38f   :  { %v5712_v41 = vadd.f32 %v1273_v8, %v1272_v22  ;;  %v5794_v8 = vld [vmem:[#allocation6 + $0x18c] ss:$16 sps:$4 sm:$0xff]   ;;  %v5803_v22 = vld [vmem:[#allocation6 + $0x1a4] ss:$16 sps:$4 sm:$0xff]  }
 0x391   :  { %4614 = vtanh.f32 %v5712_v41 }
 0x39b   :  { %v4615_v13 = vpop.eup %4614 }
 0x39c   :  { %v1276_v25 = vmul.f32 %v4615_v13, %v4613_v7  ;;  %v5806_v7 = vld [vmem:[#allocation6 + $0x1ac] ss:$16 sps:$4 sm:$0xff]   ;;  %v5809_v13 = vld [vmem:[#allocation6 + $0x1a0] ss:$16 sps:$4 sm:$0xff]  }
 0x39d   :  { %7072 = vst [vmem:[#allocation48_spill] sm:$0xff] %v5806_v7  ;;  %7073 = vst [vmem:[#allocation49_spill] sm:$0xff] %v5809_v13 }
 0x39e   :  { %v1281_v26 = vpack.c.bf16 %v1276_v25, %v1276_v25  ;;  %v5812_v25 = vld [vmem:[#allocation6 + $0x1a8] ss:$16 sps:$4 sm:$0xff]  }
 0x39f   :  { %7074 = vst [vmem:[#allocation51_spill] sm:$0xff] %v5812_v25 }
 0x3a0   :  { %v1283_v27 = vmul.bf16 %v1281_v26, %v7024_v17  ;;  %v1282_v28 = vmul.bf16 %v1281_v26, %v5340_v1  ;;  %v5815_v26 = vld [vmem:[#allocation6 + $0x1c4] ss:$16 sps:$4 sm:$0xff]  }
 0x3a2   :  { %1320 = vmatprep.mubr.bf16.mxu0 %v1283_v27  ;;  %1361 = vmatprep.mubr.bf16.mxu1 %v1283_v27  ;;  %v5818_v27 = vld [vmem:[#allocation6 + $0x1cc] ss:$16 sps:$4 sm:$0xff]  }
 0x3a3   :  { %1321 = vmatmul.mubr.bf16.vlgmr.msra.gmra.mrb[28].mxu0 %v1282_v28  ;;  %1362 = vmatmul.mubr.bf16.vlgmr.msra.gmra.mrb[28].mxu1 %v1282_v28  ;;  %v5821_v28 = vld [vmem:[#allocation6 + $0x1c0] ss:$16 sps:$4 sm:$0xff]  }
 0x3a4   :  { %1410 = vmatpush1.bf16.msra.mxu0 %v5623_v15  ;;  %1451 = vmatpush1.bf16.msra.mxu1 %v5626_v9  ;;  %7075 = vst [vmem:[#allocation53_spill] sm:$0xff] %v5821_v28 }
 0x3a5   :  { %1411 = vmatprep.subr.bf16.mxu0 %v5629_v44  ;;  %1452 = vmatprep.subr.bf16.mxu1 %v5632_v16 }
 0x3a8   :  { %1412 = vmatpush1.bf16.msra.mxu0 %v5635_v14  ;;  %1453 = vmatpush1.bf16.msra.mxu1 %v5638_v4 }
 0x3a9   :  { %1413 = vmatprep.subr.bf16.mxu0 %v5641_v3  ;;  %1454 = vmatprep.subr.bf16.mxu1 %v5644_v10 }
 0x3ac   :  { %1414 = vmatpush1.bf16.msra.mxu0 %v5725_v5  ;;  %1455 = vmatpush1.bf16.msra.mxu1 %v5728_v29 }
 0x3ad   :  { %1415 = vmatprep.subr.bf16.mxu0 %v5731_v31  ;;  %1456 = vmatprep.subr.bf16.mxu1 %v5734_v34 }
 0x3b0   :  { %1416 = vmatpush1.bf16.msra.mxu0 %v5737_v35  ;;  %1457 = vmatpush1.bf16.msra.mxu1 %v5740_v36 }
 0x3b1   :  { %1417 = vmatprep.subr.bf16.mxu0 %v5743_v37  ;;  %1458 = vmatprep.subr.bf16.mxu1 %v5746_v39 }
 0x3b4   :  { %1418 = vmatpush1.bf16.msra.mxu0 %v5749_v40  ;;  %1459 = vmatpush1.bf16.msra.mxu1 %v5752_v45 }
 0x3b5   :  { %1419 = vmatprep.subr.bf16.mxu0 %v5755_v30  ;;  %1460 = vmatprep.subr.bf16.mxu1 %v5758_v33 }
 0x3b8   :  { %1420 = vmatpush1.bf16.msra.mxu0 %v5761_v32  ;;  %1461 = vmatpush1.bf16.msra.mxu1 %v5764_v46 }
 0x3b9   :  { %1421 = vmatprep.subr.bf16.mxu0 %v5767_v47  ;;  %1462 = vmatprep.subr.bf16.mxu1 %v5770_v48 }
 0x3bc   :  { %1422 = vmatpush1.bf16.msra.mxu0 %v5773_v49  ;;  %1463 = vmatpush1.bf16.msra.mxu1 %v5776_v6 }
 0x3bd   :  { %1423 = vmatprep.subr.bf16.mxu0 %v5779_v24  ;;  %1464 = vmatprep.subr.bf16.mxu1 %v5782_v0 }
 0x3c0   :  { %1424 = vmatpush1.bf16.msra.mxu0 %v5785_v43  ;;  %1465 = vmatpush1.bf16.msra.mxu1 %v5788_v42 }
 0x3c1   :  { %1425 = vmatprep.subr.bf16.mxu0 %v5791_v11  ;;  %1466 = vmatprep.subr.bf16.mxu1 %v5794_v8 }
 0x3c4   :  { %1426 = vmatpush1.bf16.msra.mxu0 %v5797_v38  ;;  %1467 = vmatpush1.bf16.msra.mxu1 %v5800_v2 }
 0x3c5   :  { %1427 = vmatprep.subr.bf16.mxu0 %v5803_v22  ;;  %1468 = vmatprep.subr.bf16.mxu1 %v5806_v7  ;;  %v5824_v7 = vld [vmem:[#allocation6 + $0x1c8] ss:$16 sps:$4 sm:$0xff]  }
 0x3c6   :  { %7076 = vst [vmem:[#allocation54_spill] sm:$0xff] %v5824_v7 }
 0x3c8   :  { %1428 = vmatpush1.bf16.msra.mxu0 %v5809_v13  ;;  %1469 = vmatpush1.bf16.msra.mxu1 %v5812_v25  ;;  %v5827_v13 = vld [vmem:[#allocation6 + $0x1e4] ss:$16 sps:$4 sm:$0xff]   ;;  %v5830_v25 = vld [vmem:[#allocation6 + $0x1ec] ss:$16 sps:$4 sm:$0xff]  }
 0x3c9   :  { %1429 = vmatprep.subr.bf16.mxu0 %v5815_v26  ;;  %1470 = vmatprep.subr.bf16.mxu1 %v5818_v27  ;;  %7077 = vst [vmem:[#allocation55_spill] sm:$0xff] %v5827_v13  ;;  %7078 = vst [vmem:[#allocation56_spill] sm:$0xff] %v5830_v25 }
 0x3cc   :  { %1430 = vmatpush1.bf16.msra.mxu0 %v5821_v28  ;;  %1471 = vmatpush1.bf16.msra.mxu1 %v5824_v7 }
 0x3cd   :  { %1431 = vmatprep.subr.bf16.mxu0 %v5827_v13  ;;  %1472 = vmatprep.subr.bf16.mxu1 %v5830_v25 }
 0x3d0   :  { %1432 = vmatpush1.bf16.msra.mxu0 %v7029_v50  ;;  %1473 = vmatpush1.bf16.msra.mxu1 %v7030_v51 }
 0x3d1   :  { %1433 = vmatprep.subr.bf16.mxu0 %v7031_v52  ;;  %1474 = vmatprep.subr.bf16.mxu1 %v7032_v53  ;;  %v7079_v52 = vld [vmem:[#allocation79_spill] sm:$0xff] }
 0x3d4   :  { %1434 = vmatpush1.bf16.msra.mxu0 %v7052_v12  ;;  %1475 = vmatpush1.bf16.msra.mxu1 %v7053_v19  ;;  %v7080_v12 = vld [vmem:[#allocation82_spill] sm:$0xff] }
 0x3d5   :  { %1435 = vmatprep.subr.bf16.mxu0 %v7054_v18  ;;  %1476 = vmatprep.subr.bf16.mxu1 %v7055_v20 }
 0x3d8   :  { %1436 = vmatpush1.bf16.msra.mxu0 %v7056_v21  ;;  %1477 = vmatpush1.bf16.msra.mxu1 %v7057_v23  ;;  %v7081_v21 = vld [vmem:[#allocation81_spill] sm:$0xff] }
 0x3d9   :  { %1437 = vmatprep.subr.bf16.mxu0 %v7058_v54  ;;  %1478 = vmatprep.subr.bf16.mxu1 %v7059_v55  ;;  %v7082_v54 = vld [vmem:[#allocation83_spill] sm:$0xff] }
 0x3dc   :  { %1438 = vmatpush1.bf16.msra.mxu0 %v7060_v56  ;;  %1479 = vmatpush1.bf16.msra.mxu1 %v7061_v57 }
 0x3dd   :  { %1439 = vmatprep.subr.bf16.mxu0 %v7062_v58  ;;  %1480 = vmatprep.subr.bf16.mxu1 %v7063_v59 }
 0x3e0   :  { %1440 = vmatpush1.bf16.msra.mxu0 %v7064_v60  ;;  %1481 = vmatpush1.bf16.msra.mxu1 %v7065_v61 }
 0x3e1   :  { %1530 = vmatprep.subr.bf16.mxu0 %v5701_v62  ;;  %1571 = vmatprep.subr.bf16.mxu1 %v5704_v63 }
 0x476   :  { %v1322_v50 = vpop.f32.mrb[28].mxu0  ;;  %v1363_v51 = vpop.f32.mrb[28].mxu1 }
 0x477   :  { %v1370_v53 = vadd.f32 %v1322_v50, %v7079_v52  ;;  %v1372_v19 = vadd.f32 %v1363_v51, %v7080_v12  ;;  %v1324_v18 = vpop.f32.mrb[29].mxu0  ;;  %v1365_v20 = vpop.f32.mrb[29].mxu1 }
 0x478   :  { %v1371_v23 = vadd.f32 %v1324_v18, %v7081_v21  ;;  %v1373_v55 = vadd.f32 %v1365_v20, %v7082_v54  ;;  %v1326_v56 = vpop.f32.mrb[30].mxu0  ;;  %v1367_v57 = vpop.f32.mrb[30].mxu1 }
 0x479   :  { %v4080_v58 = vmul.f32 -1.442695, %v1370_v53  ;;  %v1327_v59 = vpop.f32.mrb[31].mxu0  ;;  %v1368_v60 = vpop.f32.mrb[31].mxu1  ;;  %v4082_v63 = vmul.f32 -1.442695, %v1372_v19 }
 0x47a   :  { %v4081_v61 = vmul.f32 -1.442695, %v1371_v23  ;;  %v7084_v57 = vld [vmem:[#allocation49_spill] sm:$0xff]  ;;  %v7086_v59 = vld [vmem:[#allocation56_spill] sm:$0xff] }
 0x47b   :  { %4616 = vpow2.f32 %v4080_v58  ;;  %v7085_v58 = vld [vmem:[#allocation51_spill] sm:$0xff] }
 0x47c   :  { %4618 = vpow2.f32 %v4081_v61  ;;  %v5907_v60 = vld [vmem:[#allocation6 + $0x1e0] ss:$16 sps:$4 sm:$0xff]   ;;  %v5910_v61 = vld [vmem:[#allocation6 + $0x1e8] ss:$16 sps:$4 sm:$0xff]  }
 0x47d   :  { %4620 = vtanh.f32 %v1373_v55  ;;  %7087 = vst [vmem:[#allocation44_spill] sm:$0xff] %v5907_v60  ;;  %7088 = vst [vmem:[#allocation45_spill] sm:$0xff] %v5910_v61 }
 0x47e   :  { %4622 = vpow2.f32 %v4082_v63 }
 0x485   :  { %v4617_v62 = vpop.eup %4616 }
 0x486   :  { %v1383_v25 = vadd.f32 1.0, %v4617_v62  ;;  %v4619_v50 = vpop.eup %4618 }
 0x487   :  { %v1384_v51 = vadd.f32 1.0, %v4619_v50  ;;  %v4621_v52 = vpop.eup %4620  ;;  %v5913_v50 = vld [vmem:[#allocation6 + $0x204] ss:$16 sps:$4 sm:$0xff]  }
 0x488   :  { %4624 = vrcp.f32 %v1383_v25  ;;  %v4623_v12 = vpop.eup %4622  ;;  %7089 = vst [vmem:[#allocation74_spill] sm:$0xff] %v5913_v50 }
 0x489   :  { %4626 = vrcp.f32 %v1384_v51  ;;  %v1385_v53 = vadd.f32 1.0, %v4623_v12  ;;  %v5916_v51 = vld [vmem:[#allocation6 + $0x20c] ss:$16 sps:$4 sm:$0xff]   ;;  %v5922_v12 = vld [vmem:[#allocation6 + $0x208] ss:$16 sps:$4 sm:$0xff]  }
 0x48a   :  { %7090 = vst [vmem:[#allocation50_spill] sm:$0xff] %v5916_v51  ;;  %7092 = vst [vmem:[#allocation57_spill] sm:$0xff] %v5922_v12 }
 0x48b   :  { %4628 = vrcp.f32 %v1385_v53  ;;  %v5934_v53 = vld [vmem:[#allocation6 + $0x228] ss:$16 sps:$4 sm:$0xff]  }
 0x48c   :  { %7096 = vst [vmem:[#allocation61_spill] sm:$0xff] %v5934_v53 }
 0x492   :  { %v4625_v18 = vpop.eup %4624 }
 0x493   :  { %v1394_v20 = vmul.f32 %v4625_v18, %v4621_v52  ;;  %v4627_v21 = vpop.eup %4626  ;;  %v5919_v52 = vld [vmem:[#allocation6 + $0x200] ss:$16 sps:$4 sm:$0xff]   ;;  %v5925_v18 = vld [vmem:[#allocation6 + $0x224] ss:$16 sps:$4 sm:$0xff]  }
 0x494   :  { %v1393_v54 = vmul.f32 %v4627_v21, %v5712_v41  ;;  %v7083_v41 = vld [vmem:[#allocation48_spill] sm:$0xff]  ;;  %7091 = vst [vmem:[#allocation75_spill] sm:$0xff] %v5919_v52  ;;  %7093 = vst [vmem:[#allocation58_spill] sm:$0xff] %v5925_v18  ;;  %v5931_v21 = vld [vmem:[#allocation6 + $0x220] ss:$16 sps:$4 sm:$0xff]  }
 0x495   :  { %v4629_v62 = vpop.eup %4628  ;;  %7095 = vst [vmem:[#allocation60_spill] sm:$0xff] %v5931_v21 }
 0x496   :  { %v5858_v23 = vadd.f32 %v1394_v20, %v1393_v54  ;;  %v5928_v20 = vld [vmem:[#allocation6 + $0x22c] ss:$16 sps:$4 sm:$0xff]   ;;  %v5937_v54 = vld [vmem:[#allocation6 + $0x244] ss:$16 sps:$4 sm:$0xff]  }
 0x497   :  { %7094 = vst [vmem:[#allocation59_spill] sm:$0xff] %v5928_v20  ;;  %7097 = vst [vmem:[#allocation62_spill] sm:$0xff] %v5937_v54 }
 0x498   :  { %4630 = vtanh.f32 %v5858_v23 }
 0x4a2   :  { %v4631_v19 = vpop.eup %4630 }
 0x4a3   :  { %v1397_v55 = vmul.f32 %v4631_v19, %v4629_v62  ;;  %v5940_v62 = vld [vmem:[#allocation6 + $0x24c] ss:$16 sps:$4 sm:$0xff]   ;;  %v5943_v19 = vld [vmem:[#allocation6 + $0x240] ss:$16 sps:$4 sm:$0xff]  }
 0x4a4   :  { %7098 = vst [vmem:[#allocation63_spill] sm:$0xff] %v5940_v62  ;;  %7099 = vst [vmem:[#allocation64_spill] sm:$0xff] %v5943_v19 }
 0x4a5   :  { %v1402_v63 = vpack.c.bf16 %v1397_v55, %v1397_v55  ;;  %v5946_v55 = vld [vmem:[#allocation6 + $0x248] ss:$16 sps:$4 sm:$0xff]  }
 0x4a6   :  { %7100 = vst [vmem:[#allocation65_spill] sm:$0xff] %v5946_v55 }
 0x4a7   :  { %v1404_v25 = vmul.bf16 %v1402_v63, %v7024_v17  ;;  %v1403_v56 = vmul.bf16 %v1402_v63, %v5340_v1  ;;  %v5949_v63 = vld [vmem:[#allocation6 + $0x264] ss:$16 sps:$4 sm:$0xff]  }
 0x4a8   :  { %7101 = vst [vmem:[#allocation66_spill] sm:$0xff] %v5949_v63 }
 0x4a9   :  { %1441 = vmatprep.mubr.bf16.mxu0 %v1404_v25  ;;  %1482 = vmatprep.mubr.bf16.mxu1 %v1404_v25  ;;  %v5952_v25 = vld [vmem:[#allocation6 + $0x26c] ss:$16 sps:$4 sm:$0xff]  }
 0x4aa   :  { %1442 = vmatmul.mubr.bf16.vlgmr.msra.gmra.mrb[32].mxu0 %v1403_v56  ;;  %1483 = vmatmul.mubr.bf16.vlgmr.msra.gmra.mrb[32].mxu1 %v1403_v56  ;;  %7102 = vst [vmem:[#allocation67_spill] sm:$0xff] %v5952_v25  ;;  %v5955_v56 = vld [vmem:[#allocation6 + $0x260] ss:$16 sps:$4 sm:$0xff]  }
 0x4ab   :  { %1531 = vmatpush1.bf16.msra.mxu0 %v5623_v15  ;;  %1572 = vmatpush1.bf16.msra.mxu1 %v5626_v9  ;;  %7103 = vst [vmem:[#allocation68_spill] sm:$0xff] %v5955_v56 }
 0x4ac   :  { %1532 = vmatprep.subr.bf16.mxu0 %v5629_v44  ;;  %1573 = vmatprep.subr.bf16.mxu1 %v5632_v16 }
 0x4af   :  { %1533 = vmatpush1.bf16.msra.mxu0 %v5635_v14  ;;  %1574 = vmatpush1.bf16.msra.mxu1 %v5638_v4 }
 0x4b0   :  { %1534 = vmatprep.subr.bf16.mxu0 %v5641_v3  ;;  %1575 = vmatprep.subr.bf16.mxu1 %v5644_v10 }
 0x4b3   :  { %1535 = vmatpush1.bf16.msra.mxu0 %v5725_v5  ;;  %1576 = vmatpush1.bf16.msra.mxu1 %v5728_v29 }
 0x4b4   :  { %1536 = vmatprep.subr.bf16.mxu0 %v5731_v31  ;;  %1577 = vmatprep.subr.bf16.mxu1 %v5734_v34 }
 0x4b7   :  { %1537 = vmatpush1.bf16.msra.mxu0 %v5737_v35  ;;  %1578 = vmatpush1.bf16.msra.mxu1 %v5740_v36 }
 0x4b8   :  { %1538 = vmatprep.subr.bf16.mxu0 %v5743_v37  ;;  %1579 = vmatprep.subr.bf16.mxu1 %v5746_v39 }
 0x4bb   :  { %1539 = vmatpush1.bf16.msra.mxu0 %v5749_v40  ;;  %1580 = vmatpush1.bf16.msra.mxu1 %v5752_v45 }
 0x4bc   :  { %1540 = vmatprep.subr.bf16.mxu0 %v5755_v30  ;;  %1581 = vmatprep.subr.bf16.mxu1 %v5758_v33 }
 0x4bf   :  { %1541 = vmatpush1.bf16.msra.mxu0 %v5761_v32  ;;  %1582 = vmatpush1.bf16.msra.mxu1 %v5764_v46 }
 0x4c0   :  { %1542 = vmatprep.subr.bf16.mxu0 %v5767_v47  ;;  %1583 = vmatprep.subr.bf16.mxu1 %v5770_v48 }
 0x4c3   :  { %1543 = vmatpush1.bf16.msra.mxu0 %v5773_v49  ;;  %1584 = vmatpush1.bf16.msra.mxu1 %v5776_v6 }
 0x4c4   :  { %1544 = vmatprep.subr.bf16.mxu0 %v5779_v24  ;;  %1585 = vmatprep.subr.bf16.mxu1 %v5782_v0 }
 0x4c7   :  { %1545 = vmatpush1.bf16.msra.mxu0 %v5785_v43  ;;  %1586 = vmatpush1.bf16.msra.mxu1 %v5788_v42 }
 0x4c8   :  { %1546 = vmatprep.subr.bf16.mxu0 %v5791_v11  ;;  %1587 = vmatprep.subr.bf16.mxu1 %v5794_v8 }
 0x4cb   :  { %1547 = vmatpush1.bf16.msra.mxu0 %v5797_v38  ;;  %1588 = vmatpush1.bf16.msra.mxu1 %v5800_v2 }
 0x4cc   :  { %1548 = vmatprep.subr.bf16.mxu0 %v5803_v22  ;;  %1589 = vmatprep.subr.bf16.mxu1 %v7083_v41 }
 0x4cf   :  { %1549 = vmatpush1.bf16.msra.mxu0 %v7084_v57  ;;  %1590 = vmatpush1.bf16.msra.mxu1 %v7085_v58 }
 0x4d0   :  { %1550 = vmatprep.subr.bf16.mxu0 %v5815_v26  ;;  %1591 = vmatprep.subr.bf16.mxu1 %v5818_v27 }
 0x4d3   :  { %1551 = vmatpush1.bf16.msra.mxu0 %v5821_v28  ;;  %1592 = vmatpush1.bf16.msra.mxu1 %v5824_v7 }
 0x4d4   :  { %1552 = vmatprep.subr.bf16.mxu0 %v5827_v13  ;;  %1593 = vmatprep.subr.bf16.mxu1 %v7086_v59 }
 0x4d7   :  { %1553 = vmatpush1.bf16.msra.mxu0 %v5907_v60  ;;  %1594 = vmatpush1.bf16.msra.mxu1 %v5910_v61 }
 0x4d8   :  { %1554 = vmatprep.subr.bf16.mxu0 %v5913_v50  ;;  %1595 = vmatprep.subr.bf16.mxu1 %v5916_v51  ;;  %v7110_v50 = vld [vmem:[#allocation88_spill] sm:$0xff] }
 0x4db   :  { %1555 = vmatpush1.bf16.msra.mxu0 %v5919_v52  ;;  %1596 = vmatpush1.bf16.msra.mxu1 %v5922_v12  ;;  %v7109_v52 = vld [vmem:[#allocation85_spill] sm:$0xff] }
 0x4dc   :  { %1556 = vmatprep.subr.bf16.mxu0 %v5925_v18  ;;  %1597 = vmatprep.subr.bf16.mxu1 %v5928_v20  ;;  %v7108_v20 = vld [vmem:[#allocation86_spill] sm:$0xff] }
 0x4df   :  { %1557 = vmatpush1.bf16.msra.mxu0 %v5931_v21  ;;  %1598 = vmatpush1.bf16.msra.mxu1 %v5934_v53  ;;  %v7107_v21 = vld [vmem:[#allocation84_spill] sm:$0xff] }
 0x4e0   :  { %1558 = vmatprep.subr.bf16.mxu0 %v5937_v54  ;;  %1599 = vmatprep.subr.bf16.mxu1 %v5940_v62  ;;  %v5958_v62 = vld [vmem:[#allocation6 + $0x268] ss:$16 sps:$4 sm:$0xff]   ;;  %v7106_v54 = vld [vmem:[#allocation47_spill] sm:$0xff] }
 0x4e1   :  { %7104 = vst [vmem:[#allocation69_spill] sm:$0xff] %v5958_v62 }
 0x4e3   :  { %1559 = vmatpush1.bf16.msra.mxu0 %v5943_v19  ;;  %1600 = vmatpush1.bf16.msra.mxu1 %v5946_v55  ;;  %v7105_v19 = vld [vmem:[#allocation52_spill] sm:$0xff] }
 0x4e4   :  { %1560 = vmatprep.subr.bf16.mxu0 %v5949_v63  ;;  %1601 = vmatprep.subr.bf16.mxu1 %v5952_v25 }
 0x4e7   :  { %1561 = vmatpush1.bf16.msra.mxu0 %v5955_v56  ;;  %1602 = vmatpush1.bf16.msra.mxu1 %v5958_v62 }
 0x4e8   :  { %1651 = vmatprep.subr.bf16.mxu0 %v7105_v19  ;;  %1692 = vmatprep.subr.bf16.mxu1 %v7106_v54 }
 0x57d   :  { %v1443_v55 = vpop.f32.mrb[32].mxu0  ;;  %v1484_v53 = vpop.f32.mrb[32].mxu1 }
 0x57e   :  { %v1491_v63 = vadd.f32 %v1443_v55, %v7107_v21  ;;  %v1493_v18 = vadd.f32 %v1484_v53, %v7108_v20  ;;  %v1445_v12 = vpop.f32.mrb[33].mxu0  ;;  %v1486_v25 = vpop.f32.mrb[33].mxu1  ;;  %v7113_v55 = vld [vmem:[#allocation55_spill] sm:$0xff] }
 0x57f   :  { %v1492_v51 = vadd.f32 %v1445_v12, %v7109_v52  ;;  %v1494_v56 = vadd.f32 %v1486_v25, %v7110_v50  ;;  %v1447_v61 = vpop.f32.mrb[34].mxu0  ;;  %v1488_v60 = vpop.f32.mrb[34].mxu1  ;;  %v7115_v25 = vld [vmem:[#allocation44_spill] sm:$0xff] }
 0x580   :  { %v4083_v59 = vmul.f32 -1.442695, %v1491_v63  ;;  %v1448_v62 = vpop.f32.mrb[35].mxu0  ;;  %v1489_v13 = vpop.f32.mrb[35].mxu1  ;;  %v4085_v54 = vmul.f32 -1.442695, %v1493_v18 }
 0x581   :  { %v4084_v19 = vmul.f32 -1.442695, %v1492_v51  ;;  %v7114_v63 = vld [vmem:[#allocation56_spill] sm:$0xff] }
 0x582   :  { %4632 = vpow2.f32 %v4083_v59 }
 0x583   :  { %4634 = vpow2.f32 %v4084_v19  ;;  %v7112_v19 = vld [vmem:[#allocation54_spill] sm:$0xff] }
 0x584   :  { %4636 = vtanh.f32 %v1494_v56  ;;  %v7116_v56 = vld [vmem:[#allocation45_spill] sm:$0xff] }
 0x585   :  { %4638 = vpow2.f32 %v4085_v54 }
 0x58c   :  { %v4633_v7 = vpop.eup %4632 }
 0x58d   :  { %v1504_v28 = vadd.f32 1.0, %v4633_v7  ;;  %v4635_v21 = vpop.eup %4634 }
 0x58e   :  { %v1505_v20 = vadd.f32 1.0, %v4635_v21  ;;  %v4637_v52 = vpop.eup %4636  ;;  %v7117_v21 = vld [vmem:[#allocation74_spill] sm:$0xff] }
 0x58f   :  { %4640 = vrcp.f32 %v1504_v28  ;;  %v4639_v12 = vpop.eup %4638 }
 0x590   :  { %4642 = vrcp.f32 %v1505_v20  ;;  %v1506_v53 = vadd.f32 1.0, %v4639_v12  ;;  %v7118_v20 = vld [vmem:[#allocation50_spill] sm:$0xff]  ;;  %v7120_v12 = vld [vmem:[#allocation57_spill] sm:$0xff] }
 0x592   :  { %4644 = vrcp.f32 %v1506_v53  ;;  %v7124_v53 = vld [vmem:[#allocation61_spill] sm:$0xff] }
 0x599   :  { %v4641_v50 = vpop.eup %4640 }
 0x59a   :  { %v1515_v61 = vmul.f32 %v4641_v50, %v4637_v52  ;;  %v4643_v60 = vpop.eup %4642  ;;  %v7119_v52 = vld [vmem:[#allocation75_spill] sm:$0xff]  ;;  %v7121_v50 = vld [vmem:[#allocation58_spill] sm:$0xff] }
 0x59b   :  { %v1514_v13 = vmul.f32 %v4643_v60, %v5858_v23  ;;  %v7111_v23 = vld [vmem:[#allocation53_spill] sm:$0xff]  ;;  %v7123_v60 = vld [vmem:[#allocation60_spill] sm:$0xff] }
 0x59c   :  { %v4645_v7 = vpop.eup %4644 }
 0x59d   :  { %v5968_v51 = vadd.f32 %v1515_v61, %v1514_v13  ;;  %v7122_v61 = vld [vmem:[#allocation59_spill] sm:$0xff]  ;;  %v7125_v13 = vld [vmem:[#allocation62_spill] sm:$0xff] }
 0x59f   :  { %4646 = vtanh.f32 %v5968_v51 }
 0x5a9   :  { %v4647_v59 = vpop.eup %4646 }
 0x5aa   :  { %v1518_v18 = vmul.f32 %v4647_v59, %v4645_v7  ;;  %v7126_v7 = vld [vmem:[#allocation63_spill] sm:$0xff]  ;;  %v7127_v59 = vld [vmem:[#allocation64_spill] sm:$0xff] }
 0x5ac   :  { %v1523_v54 = vpack.c.bf16 %v1518_v18, %v1518_v18  ;;  %v7128_v18 = vld [vmem:[#allocation65_spill] sm:$0xff] }
 0x5ae   :  { %v1525_v28 = vmul.bf16 %v1523_v54, %v7024_v17  ;;  %v1524_v62 = vmul.bf16 %v1523_v54, %v5340_v1  ;;  %v7129_v54 = vld [vmem:[#allocation66_spill] sm:$0xff] }
 0x5b0   :  { %1562 = vmatprep.mubr.bf16.mxu0 %v1525_v28  ;;  %1603 = vmatprep.mubr.bf16.mxu1 %v1525_v28  ;;  %v7130_v28 = vld [vmem:[#allocation67_spill] sm:$0xff] }
 0x5b1   :  { %1563 = vmatmul.mubr.bf16.vlgmr.msra.gmra.mrb[36].mxu0 %v1524_v62  ;;  %1604 = vmatmul.mubr.bf16.vlgmr.msra.gmra.mrb[36].mxu1 %v1524_v62  ;;  %v7131_v62 = vld [vmem:[#allocation68_spill] sm:$0xff] }
 0x5b2   :  { %1652 = vmatpush1.bf16.msra.mxu0 %v5623_v15  ;;  %1693 = vmatpush1.bf16.msra.mxu1 %v5626_v9 }
 0x5b3   :  { %1653 = vmatprep.subr.bf16.mxu0 %v5629_v44  ;;  %1694 = vmatprep.subr.bf16.mxu1 %v5632_v16 }
 0x5b6   :  { %1654 = vmatpush1.bf16.msra.mxu0 %v5635_v14  ;;  %1695 = vmatpush1.bf16.msra.mxu1 %v5638_v4 }
 0x5b7   :  { %1655 = vmatprep.subr.bf16.mxu0 %v5641_v3  ;;  %1696 = vmatprep.subr.bf16.mxu1 %v5644_v10 }
 0x5ba   :  { %1656 = vmatpush1.bf16.msra.mxu0 %v5725_v5  ;;  %1697 = vmatpush1.bf16.msra.mxu1 %v5728_v29 }
 0x5bb   :  { %1657 = vmatprep.subr.bf16.mxu0 %v5731_v31  ;;  %1698 = vmatprep.subr.bf16.mxu1 %v5734_v34 }
 0x5be   :  { %1658 = vmatpush1.bf16.msra.mxu0 %v5737_v35  ;;  %1699 = vmatpush1.bf16.msra.mxu1 %v5740_v36 }
 0x5bf   :  { %1659 = vmatprep.subr.bf16.mxu0 %v5743_v37  ;;  %1700 = vmatprep.subr.bf16.mxu1 %v5746_v39 }
 0x5c2   :  { %1660 = vmatpush1.bf16.msra.mxu0 %v5749_v40  ;;  %1701 = vmatpush1.bf16.msra.mxu1 %v5752_v45 }
 0x5c3   :  { %1661 = vmatprep.subr.bf16.mxu0 %v5755_v30  ;;  %1702 = vmatprep.subr.bf16.mxu1 %v5758_v33 }
 0x5c6   :  { %1662 = vmatpush1.bf16.msra.mxu0 %v5761_v32  ;;  %1703 = vmatpush1.bf16.msra.mxu1 %v5764_v46 }
 0x5c7   :  { %1663 = vmatprep.subr.bf16.mxu0 %v5767_v47  ;;  %1704 = vmatprep.subr.bf16.mxu1 %v5770_v48 }
 0x5ca   :  { %1664 = vmatpush1.bf16.msra.mxu0 %v5773_v49  ;;  %1705 = vmatpush1.bf16.msra.mxu1 %v5776_v6 }
 0x5cb   :  { %1665 = vmatprep.subr.bf16.mxu0 %v5779_v24  ;;  %1706 = vmatprep.subr.bf16.mxu1 %v5782_v0 }
 0x5ce   :  { %1666 = vmatpush1.bf16.msra.mxu0 %v5785_v43  ;;  %1707 = vmatpush1.bf16.msra.mxu1 %v5788_v42 }
 0x5cf   :  { %1667 = vmatprep.subr.bf16.mxu0 %v5791_v11  ;;  %1708 = vmatprep.subr.bf16.mxu1 %v5794_v8 }
 0x5d2   :  { %1668 = vmatpush1.bf16.msra.mxu0 %v5797_v38  ;;  %1709 = vmatpush1.bf16.msra.mxu1 %v5800_v2 }
 0x5d3   :  { %1669 = vmatprep.subr.bf16.mxu0 %v5803_v22  ;;  %1710 = vmatprep.subr.bf16.mxu1 %v7083_v41 }
 0x5d6   :  { %1670 = vmatpush1.bf16.msra.mxu0 %v7084_v57  ;;  %1711 = vmatpush1.bf16.msra.mxu1 %v7085_v58 }
 0x5d7   :  { %1671 = vmatprep.subr.bf16.mxu0 %v5815_v26  ;;  %1712 = vmatprep.subr.bf16.mxu1 %v5818_v27 }
 0x5da   :  { %1672 = vmatpush1.bf16.msra.mxu0 %v7111_v23  ;;  %1713 = vmatpush1.bf16.msra.mxu1 %v7112_v19 }
 0x5db   :  { %1673 = vmatprep.subr.bf16.mxu0 %v7113_v55  ;;  %1714 = vmatprep.subr.bf16.mxu1 %v7114_v63 }
 0x5de   :  { %1674 = vmatpush1.bf16.msra.mxu0 %v7115_v25  ;;  %1715 = vmatpush1.bf16.msra.mxu1 %v7116_v56  ;;  %v7138_v56 = vld [vmem:[#allocation91_spill] sm:$0xff] }
 0x5df   :  { %1675 = vmatprep.subr.bf16.mxu0 %v7117_v21  ;;  %1716 = vmatprep.subr.bf16.mxu1 %v7118_v20  ;;  %v7137_v21 = vld [vmem:[#allocation89_spill] sm:$0xff] }
 0x5e2   :  { %1676 = vmatpush1.bf16.msra.mxu0 %v7119_v52  ;;  %1717 = vmatpush1.bf16.msra.mxu1 %v7120_v12  ;;  %v7135_v12 = vld [vmem:[#allocation87_spill] sm:$0xff]  ;;  %v7136_v52 = vld [vmem:[#allocation90_spill] sm:$0xff] }
 0x5e3   :  { %1677 = vmatprep.subr.bf16.mxu0 %v7121_v50  ;;  %1718 = vmatprep.subr.bf16.mxu1 %v7122_v61  ;;  %v7132_v50 = vld [vmem:[#allocation69_spill] sm:$0xff]  ;;  %v7133_v61 = vld [vmem:[#allocation52_spill] sm:$0xff] }
 0x5e6   :  { %1678 = vmatpush1.bf16.msra.mxu0 %v7123_v60  ;;  %1719 = vmatpush1.bf16.msra.mxu1 %v7124_v53  ;;  %v7134_v60 = vld [vmem:[#allocation47_spill] sm:$0xff] }
 0x5e7   :  { %1679 = vmatprep.subr.bf16.mxu0 %v7125_v13  ;;  %1720 = vmatprep.subr.bf16.mxu1 %v7126_v7 }
 0x5ea   :  { %1680 = vmatpush1.bf16.msra.mxu0 %v7127_v59  ;;  %1721 = vmatpush1.bf16.msra.mxu1 %v7128_v18 }
 0x5eb   :  { %1681 = vmatprep.subr.bf16.mxu0 %v7129_v54  ;;  %1722 = vmatprep.subr.bf16.mxu1 %v7130_v28 }
 0x5ee   :  { %1682 = vmatpush1.bf16.msra.mxu0 %v7131_v62  ;;  %1723 = vmatpush1.bf16.msra.mxu1 %v7132_v50 }
 0x5ef   :  { %1772 = vmatprep.subr.bf16.mxu0 %v7133_v61  ;;  %1813 = vmatprep.subr.bf16.mxu1 %v7134_v60 }
 0x684   :  { %v1564_v53 = vpop.f32.mrb[36].mxu0  ;;  %v1605_v13 = vpop.f32.mrb[36].mxu1 }
 0x685   :  { %v1612_v7 = vadd.f32 %v1564_v53, %v7135_v12  ;;  %v1614_v59 = vadd.f32 %v1605_v13, %v7136_v52  ;;  %v1566_v20 = vpop.f32.mrb[37].mxu0  ;;  %v1607_v18 = vpop.f32.mrb[37].mxu1 }
 0x686   :  { %v1613_v54 = vadd.f32 %v1566_v20, %v7137_v21  ;;  %v1615_v28 = vadd.f32 %v1607_v18, %v7138_v56  ;;  %v1568_v25 = vpop.f32.mrb[38].mxu0  ;;  %v1609_v62 = vpop.f32.mrb[38].mxu1 }
 0x687   :  { %v4086_v63 = vmul.f32 -1.442695, %v1612_v7  ;;  %v1569_v50 = vpop.f32.mrb[39].mxu0  ;;  %v1610_v55 = vpop.f32.mrb[39].mxu1  ;;  %v4088_v60 = vmul.f32 -1.442695, %v1614_v59 }
 0x688   :  { %v4087_v61 = vmul.f32 -1.442695, %v1613_v54 }
 0x689   :  { %4648 = vpow2.f32 %v4086_v63 }
 0x68a   :  { %4650 = vpow2.f32 %v4087_v61 }
 0x68b   :  { %4652 = vtanh.f32 %v1615_v28 }
 0x68c   :  { %4654 = vpow2.f32 %v4088_v60 }
 0x693   :  { %v4649_v19 = vpop.eup %4648 }
 0x694   :  { %v1625_v23 = vadd.f32 1.0, %v4649_v19  ;;  %v4651_v12 = vpop.eup %4650 }
 0x695   :  { %v1626_v52 = vadd.f32 1.0, %v4651_v12  ;;  %v4653_v21 = vpop.eup %4652 }
 0x696   :  { %4656 = vrcp.f32 %v1625_v23  ;;  %v4655_v20 = vpop.eup %4654 }
 0x697   :  { %4658 = vrcp.f32 %v1626_v52  ;;  %v1627_v13 = vadd.f32 1.0, %v4655_v20 }
 0x699   :  { %4660 = vrcp.f32 %v1627_v13 }
 0x6a0   :  { %v4657_v56 = vpop.eup %4656 }
 0x6a1   :  { %v1636_v25 = vmul.f32 %v4657_v56, %v4653_v21  ;;  %v4659_v53 = vpop.eup %4658 }
 0x6a2   :  { %v1635_v55 = vmul.f32 %v4659_v53, %v5968_v51 }
 0x6a3   :  { %v4661_v19 = vpop.eup %4660 }
 0x6a4   :  { %v6042_v50 = vadd.f32 %v1636_v25, %v1635_v55 }
 0x6a6   :  { %4662 = vtanh.f32 %v6042_v50 }
 0x6b0   :  { %v4663_v63 = vpop.eup %4662 }
 0x6b1   :  { %v1639_v7 = vmul.f32 %v4663_v63, %v4661_v19 }
 0x6b3   :  { %v1644_v59 = vpack.c.bf16 %v1639_v7, %v1639_v7 }
 0x6b5   :  { %v1646_v23 = vmul.bf16 %v1644_v59, %v7024_v17  ;;  %v1645_v18 = vmul.bf16 %v1644_v59, %v5340_v1 }
 0x6b7   :  { %1683 = vmatprep.mubr.bf16.mxu0 %v1646_v23  ;;  %1724 = vmatprep.mubr.bf16.mxu1 %v1646_v23 }
 0x6b8   :  { %1684 = vmatmul.mubr.bf16.vlgmr.msra.gmra.mrb[40].mxu0 %v1645_v18  ;;  %1725 = vmatmul.mubr.bf16.vlgmr.msra.gmra.mrb[40].mxu1 %v1645_v18 }
 0x6b9   :  { %1773 = vmatpush1.bf16.msra.mxu0 %v5623_v15  ;;  %1814 = vmatpush1.bf16.msra.mxu1 %v5626_v9  ;;  %v7139_v15 = vld [vmem:[#allocation53_spill] sm:$0xff]  ;;  %v7140_v9 = vld [vmem:[#allocation54_spill] sm:$0xff] }
 0x6ba   :  { %1774 = vmatprep.subr.bf16.mxu0 %v5629_v44  ;;  %1815 = vmatprep.subr.bf16.mxu1 %v5632_v16  ;;  %v7141_v44 = vld [vmem:[#allocation55_spill] sm:$0xff]  ;;  %v7142_v16 = vld [vmem:[#allocation56_spill] sm:$0xff] }
 0x6bd   :  { %1775 = vmatpush1.bf16.msra.mxu0 %v5635_v14  ;;  %1816 = vmatpush1.bf16.msra.mxu1 %v5638_v4  ;;  %v7143_v14 = vld [vmem:[#allocation44_spill] sm:$0xff]  ;;  %v7144_v4 = vld [vmem:[#allocation45_spill] sm:$0xff] }
 0x6be   :  { %1776 = vmatprep.subr.bf16.mxu0 %v5641_v3  ;;  %1817 = vmatprep.subr.bf16.mxu1 %v5644_v10  ;;  %v7145_v3 = vld [vmem:[#allocation74_spill] sm:$0xff] }
 0x6bf   :  { %v7146_v10 = vld [vmem:[#allocation50_spill] sm:$0xff] }
 0x6c1   :  { %1777 = vmatpush1.bf16.msra.mxu0 %v5725_v5  ;;  %1818 = vmatpush1.bf16.msra.mxu1 %v5728_v29  ;;  %v7147_v5 = vld [vmem:[#allocation75_spill] sm:$0xff]  ;;  %v7148_v29 = vld [vmem:[#allocation57_spill] sm:$0xff] }
 0x6c2   :  { %1778 = vmatprep.subr.bf16.mxu0 %v5731_v31  ;;  %1819 = vmatprep.subr.bf16.mxu1 %v5734_v34  ;;  %v7149_v31 = vld [vmem:[#allocation58_spill] sm:$0xff]  ;;  %v7150_v34 = vld [vmem:[#allocation59_spill] sm:$0xff] }
 0x6c5   :  { %1779 = vmatpush1.bf16.msra.mxu0 %v5737_v35  ;;  %1820 = vmatpush1.bf16.msra.mxu1 %v5740_v36  ;;  %v7151_v35 = vld [vmem:[#allocation60_spill] sm:$0xff]  ;;  %v7152_v36 = vld [vmem:[#allocation61_spill] sm:$0xff] }
 0x6c6   :  { %1780 = vmatprep.subr.bf16.mxu0 %v5743_v37  ;;  %1821 = vmatprep.subr.bf16.mxu1 %v5746_v39  ;;  %v7153_v37 = vld [vmem:[#allocation62_spill] sm:$0xff]  ;;  %v7154_v39 = vld [vmem:[#allocation63_spill] sm:$0xff] }
 0x6c9   :  { %1781 = vmatpush1.bf16.msra.mxu0 %v5749_v40  ;;  %1822 = vmatpush1.bf16.msra.mxu1 %v5752_v45  ;;  %v7155_v40 = vld [vmem:[#allocation64_spill] sm:$0xff]  ;;  %v7156_v45 = vld [vmem:[#allocation65_spill] sm:$0xff] }
 0x6ca   :  { %1782 = vmatprep.subr.bf16.mxu0 %v5755_v30  ;;  %1823 = vmatprep.subr.bf16.mxu1 %v5758_v33  ;;  %v7157_v30 = vld [vmem:[#allocation66_spill] sm:$0xff]  ;;  %v7158_v33 = vld [vmem:[#allocation67_spill] sm:$0xff] }
 0x6cd   :  { %1783 = vmatpush1.bf16.msra.mxu0 %v5761_v32  ;;  %1824 = vmatpush1.bf16.msra.mxu1 %v5764_v46  ;;  %v7159_v32 = vld [vmem:[#allocation68_spill] sm:$0xff]  ;;  %v7160_v46 = vld [vmem:[#allocation69_spill] sm:$0xff] }
 0x6ce   :  { %1784 = vmatprep.subr.bf16.mxu0 %v5767_v47  ;;  %1825 = vmatprep.subr.bf16.mxu1 %v5770_v48 }
 0x6d1   :  { %1785 = vmatpush1.bf16.msra.mxu0 %v5773_v49  ;;  %1826 = vmatpush1.bf16.msra.mxu1 %v5776_v6  ;;  %v7161_v49 = vld [vmem:[#allocation92_spill] sm:$0xff] }
 0x6d2   :  { %1786 = vmatprep.subr.bf16.mxu0 %v5779_v24  ;;  %1827 = vmatprep.subr.bf16.mxu1 %v5782_v0  ;;  %v7162_v24 = vld [vmem:[#allocation94_spill] sm:$0xff] }
 0x6d5   :  { %1787 = vmatpush1.bf16.msra.mxu0 %v5785_v43  ;;  %1828 = vmatpush1.bf16.msra.mxu1 %v5788_v42 }
 0x6d6   :  { %1788 = vmatprep.subr.bf16.mxu0 %v5791_v11  ;;  %1829 = vmatprep.subr.bf16.mxu1 %v5794_v8  ;;  %v7163_v11 = vld [vmem:[#allocation93_spill] sm:$0xff] }
 0x6d9   :  { %1789 = vmatpush1.bf16.msra.mxu0 %v5797_v38  ;;  %1830 = vmatpush1.bf16.msra.mxu1 %v5800_v2  ;;  %v7164_v38 = vld [vmem:[#allocation96_spill] sm:$0xff] }
 0x6da   :  { %1790 = vmatprep.subr.bf16.mxu0 %v5803_v22  ;;  %1831 = vmatprep.subr.bf16.mxu1 %v7083_v41 }
 0x6dd   :  { %1791 = vmatpush1.bf16.msra.mxu0 %v7084_v57  ;;  %1832 = vmatpush1.bf16.msra.mxu1 %v7085_v58 }
 0x6de   :  { %1792 = vmatprep.subr.bf16.mxu0 %v5815_v26  ;;  %1833 = vmatprep.subr.bf16.mxu1 %v5818_v27 }
 0x6e1   :  { %1793 = vmatpush1.bf16.msra.mxu0 %v7139_v15  ;;  %1834 = vmatpush1.bf16.msra.mxu1 %v7140_v9  ;;  %v7165_v15 = vld [vmem:[#allocation95_spill] sm:$0xff] }
 0x6e2   :  { %1794 = vmatprep.subr.bf16.mxu0 %v7141_v44  ;;  %1835 = vmatprep.subr.bf16.mxu1 %v7142_v16 }
 0x6e5   :  { %1795 = vmatpush1.bf16.msra.mxu0 %v7143_v14  ;;  %1836 = vmatpush1.bf16.msra.mxu1 %v7144_v4  ;;  %v7167_v4 = vld [vmem:[#allocation97_spill] sm:$0xff] }
 0x6e6   :  { %1796 = vmatprep.subr.bf16.mxu0 %v7145_v3  ;;  %1837 = vmatprep.subr.bf16.mxu1 %v7146_v10  ;;  %v7168_v10 = vld [vmem:[#allocation99_spill] sm:$0xff] }
 0x6e9   :  { %1797 = vmatpush1.bf16.msra.mxu0 %v7147_v5  ;;  %1838 = vmatpush1.bf16.msra.mxu1 %v7148_v29 }
 0x6ea   :  { %1798 = vmatprep.subr.bf16.mxu0 %v7149_v31  ;;  %1839 = vmatprep.subr.bf16.mxu1 %v7150_v34 }
 0x6ed   :  { %1799 = vmatpush1.bf16.msra.mxu0 %v7151_v35  ;;  %1840 = vmatpush1.bf16.msra.mxu1 %v7152_v36 }
 0x6ee   :  { %1800 = vmatprep.subr.bf16.mxu0 %v7153_v37  ;;  %1841 = vmatprep.subr.bf16.mxu1 %v7154_v39 }
 0x6f1   :  { %1801 = vmatpush1.bf16.msra.mxu0 %v7155_v40  ;;  %1842 = vmatpush1.bf16.msra.mxu1 %v7156_v45 }
 0x6f2   :  { %1802 = vmatprep.subr.bf16.mxu0 %v7157_v30  ;;  %1843 = vmatprep.subr.bf16.mxu1 %v7158_v33 }
 0x6f5   :  { %1803 = vmatpush1.bf16.msra.mxu0 %v7159_v32  ;;  %1844 = vmatpush1.bf16.msra.mxu1 %v7160_v46 }
 0x78b   :  { %v1685_v47 = vpop.f32.mrb[40].mxu0  ;;  %v1726_v48 = vpop.f32.mrb[40].mxu1 }
 0x78c   :  { %v1733_v6 = vadd.f32 %v1685_v47, %v7161_v49  ;;  %v1735_v0 = vadd.f32 %v1726_v48, %v7162_v24  ;;  %v1687_v43 = vpop.f32.mrb[41].mxu0  ;;  %v1728_v42 = vpop.f32.mrb[41].mxu1 }
 0x78d   :  { %v1734_v8 = vadd.f32 %v1687_v43, %v7163_v11  ;;  %v1736_v2 = vadd.f32 %v1728_v42, %v7164_v38  ;;  %v1689_v22 = vpop.f32.mrb[42].mxu0  ;;  %v1730_v26 = vpop.f32.mrb[42].mxu1 }
 0x78e   :  { %v4089_v27 = vmul.f32 -1.442695, %v1733_v6  ;;  %v1690_v41 = vpop.f32.mrb[43].mxu0  ;;  %v1731_v57 = vpop.f32.mrb[43].mxu1  ;;  %v4091_v51 = vmul.f32 -1.442695, %v1735_v0 }
 0x78f   :  { %v4090_v58 = vmul.f32 -1.442695, %v1734_v8 }
 0x790   :  { %4664 = vpow2.f32 %v4089_v27 }
 0x791   :  { %4666 = vpow2.f32 %v4090_v58 }
 0x792   :  { %4668 = vtanh.f32 %v1736_v2 }
 0x793   :  { %4670 = vpow2.f32 %v4091_v51 }
 0x79a   :  { %v4665_v54 = vpop.eup %4664 }
 0x79b   :  { %v1746_v28 = vadd.f32 1.0, %v4665_v54  ;;  %v4667_v62 = vpop.eup %4666 }
 0x79c   :  { %v1747_v61 = vadd.f32 1.0, %v4667_v62  ;;  %v4669_v60 = vpop.eup %4668 }
 0x79d   :  { %4672 = vrcp.f32 %v1746_v28  ;;  %v4671_v12 = vpop.eup %4670 }
 0x79e   :  { %4674 = vrcp.f32 %v1747_v61  ;;  %v1748_v56 = vadd.f32 1.0, %v4671_v12 }
 0x7a0   :  { %4676 = vrcp.f32 %v1748_v56 }
 0x7a7   :  { %v4673_v52 = vpop.eup %4672 }
 0x7a8   :  { %v1757_v21 = vmul.f32 %v4673_v52, %v4669_v60  ;;  %v4675_v20 = vpop.eup %4674 }
 0x7a9   :  { %v1756_v25 = vmul.f32 %v4675_v20, %v6042_v50  ;;  %v7166_v50 = vld [vmem:[#allocation98_spill] sm:$0xff] }
 0x7aa   :  { %v4677_v13 = vpop.eup %4676 }
 0x7ab   :  { %v1758_v53 = vadd.f32 %v1757_v21, %v1756_v25 }
 0x7ad   :  { %4678 = vtanh.f32 %v1758_v53 }
 0x7b7   :  { %v4679_v55 = vpop.eup %4678 }
 0x7b8   :  { %v1760_v19 = vmul.f32 %v4679_v55, %v4677_v13 }
 0x7ba   :  { %v1765_v63 = vpack.c.bf16 %v1760_v19, %v1760_v19 }
 0x7bc   :  { %v1767_v7 = vmul.bf16 %v1765_v63, %v7024_v17  ;;  %v1766_v59 = vmul.bf16 %v1765_v63, %v5340_v1 }
 0x7be   :  { %1804 = vmatprep.mubr.bf16.mxu0 %v1767_v7  ;;  %1845 = vmatprep.mubr.bf16.mxu1 %v1767_v7 }
 0x7bf   :  { %1805 = vmatmul.mubr.bf16.vlgmr.msra.gmra.mrb[44].mxu0 %v1766_v59  ;;  %1846 = vmatmul.mubr.bf16.vlgmr.msra.gmra.mrb[44].mxu1 %v1766_v59 }
 0x892   :  { %v1806_v23 = vpop.f32.mrb[44].mxu0  ;;  %v1847_v18 = vpop.f32.mrb[44].mxu1 }
 0x893   :  { %v1854_v9 = vadd.f32 %v1806_v23, %v7165_v15  ;;  %v1856_v44 = vadd.f32 %v1847_v18, %v7166_v50  ;;  %v1808_v16 = vpop.f32.mrb[45].mxu0  ;;  %v1849_v14 = vpop.f32.mrb[45].mxu1 }
 0x894   :  { %v1855_v3 = vadd.f32 %v1808_v16, %v7167_v4  ;;  %v1857_v5 = vadd.f32 %v1849_v14, %v7168_v10  ;;  %v1810_v29 = vpop.f32.mrb[46].mxu0  ;;  %v1851_v17 = vpop.f32.mrb[46].mxu1 }
 0x895   :  { %v4092_v31 = vmul.f32 -1.442695, %v1854_v9  ;;  %v1811_v1 = vpop.f32.mrb[47].mxu0  ;;  %v1852_v34 = vpop.f32.mrb[47].mxu1  ;;  %v4094_v36 = vmul.f32 -1.442695, %v1856_v44 }
 0x896   :  { %v4093_v35 = vmul.f32 -1.442695, %v1855_v3 }
 0x897   :  { %4680 = vpow2.f32 %v4092_v31 }
 0x898   :  { %4682 = vpow2.f32 %v4093_v35 }
 0x899   :  { %4684 = vtanh.f32 %v1857_v5 }
 0x89a   :  { %4686 = vpow2.f32 %v4094_v36 }
 0x8a1   :  { %v4681_v37 = vpop.eup %4680 }
 0x8a2   :  { %v1867_v39 = vadd.f32 1.0, %v4681_v37  ;;  %v4683_v40 = vpop.eup %4682 }
 0x8a3   :  { %v1868_v45 = vadd.f32 1.0, %v4683_v40  ;;  %v4685_v30 = vpop.eup %4684 }
 0x8a4   :  { %4688 = vrcp.f32 %v1867_v39  ;;  %v4687_v33 = vpop.eup %4686 }
 0x8a5   :  { %4690 = vrcp.f32 %v1868_v45  ;;  %v1869_v48 = vadd.f32 1.0, %v4687_v33 }
 0x8a7   :  { %4692 = vrcp.f32 %v1869_v48 }
 0x8ae   :  { %v4689_v32 = vpop.eup %4688 }
 0x8af   :  { %v1878_v46 = vmul.f32 %v4689_v32, %v4685_v30  ;;  %v4691_v47 = vpop.eup %4690 }
 0x8b0   :  { %v1877_v49 = vmul.f32 %v4691_v47, %v1758_v53 }
 0x8b1   :  { %v4693_v24 = vpop.eup %4692 }
 0x8b2   :  { %v1879_v6 = vadd.f32 %v1878_v46, %v1877_v49 }
 0x8b4   :  { %4694 = vtanh.f32 %v1879_v6 }
 0x8be   :  { %v4695_v0 = vpop.eup %4694 }
 0x8bf   :  { %v1881_v43 = vmul.f32 %v4695_v0, %v4693_v24 }
 0x8c1   :  { %v1883_v42 = vrot.slane %v1881_v43, 2 }
 0x8c3   :  { %v1885_v11 = vadd.f32 %v1883_v42, %v1881_v43 }
 0x8c5   :  { %v6120_v8 = vmul.f32 0.5, %v1885_v11 }
 0x8c7   :  { %7169 = vst [vmem:[#allocation70_spill] sm:$0xff] %v6120_v8 }
 0x8c8   :  { %4896 = dma.done.wait [#allocation5], 6144 }
 0x8c9   :  { %4897 = vsyncadd [#allocation5], 4294961152 }
 0x8ca   :  { %4898 = dma.done.wait [#allocation5 + $0x1], 1280 }
 0x8cb   :  { %4899 = vsyncadd [#allocation5 + $0x1], 4294966016  ;;  %v7170_v38 = vmov 0.0   ;;  %v7171_v2 = vld [vmem:[#allocation20_spill] sm:$0xff]  ;;  %v7172_v22 = vld [vmem:[#allocation33_spill] sm:$0xff]  ;;  %vm1955_vm5 = vcmask 130048   ;;  %v2193_v43 = vpack.c.bf16 %v6120_v8, %v6120_v8 }
 0x8cc   :  { %4202 = vmatprep.subr.bf16.mxu1 %v7170_v38  ;;  %4196 = vmatprep.subr.bf16.mxu0 %v7171_v2  ;;  %v7173_v26 = vld [vmem:[#allocation34_spill] sm:$0xff]  ;;  %v7174_v41 = vld [vmem:[#allocation35_spill] sm:$0xff]  ;;  %v7175_v57 = vld [vmem:[#allocation36_spill] sm:$0xff]  ;;  %3894 = vst [vmem:[#allocation11] sm:$0xff] %v7170_v38  ;;  %vm4918_vm6 = vmmov 0   ;;  %v7177_v54 = vmov 0  }
 0x8cd   :  { %v1953_v27 = vpack.c.bf16 %v7173_v26, %v7172_v22  ;;  %v1954_v58 = vpack.c.bf16 %v7175_v57, %v7174_v41  ;;  %v7176_v51 = vld [vmem:[#allocation21_spill] sm:$0xff]  ;;  %4197 = vmatpush3.bf16.msra.mxu0 %v7171_v2  ;;  %4218 = vmatprep.mubr.msk.bf16.mxu1 %vm4918_vm6, %v7170_v38  ;;  %v7178_v28 = vld [vmem:[#allocation22_spill] sm:$0xff]  ;;  %v6141_v62 = vld [vmem:[#allocation2 + $0x8] sm:$0xff]  ;;  %v6916_v41 = vmov 0.0|0.0   ;;  %vm2384_vm8 = vcmask 123904  }
 0x8ce   :  { %4203 = vmatpush3.bf16.msra.mxu1 %v7176_v51  ;;  %4760 = vset.pattern.permute.xlu1 %v7177_v54  ;;  %v6143_v61 = vld [vmem:[#allocation2] sm:$0xff]  ;;  %v6152_v52 = vld [vmem:[#allocation2 + $0x18] sm:$0xff]  ;;  %v7180_v20 = vld [vmem:[#allocation24_spill] sm:$0xff]  ;;  %vm3300_vm13 = vcmask 130112   ;;  %vm3311_vm14 = vcmask 1041409  }
 0x8cf   :  { %4204 = vmatprep.subr.bf16.mxu1 %v7170_v38  ;;  %4198 = vmatprep.mubr.msk.bf16.mxu0 %vm1955_vm5, %v1953_v27  ;;  %v6145_v60 = vld [vmem:[#allocation2 + $0x20] sm:$0xff]  ;;  %v6154_v21 = vld [vmem:[#allocation2 + $0x38] sm:$0xff]  ;;  %v6160_v56 = vld [vmem:[#allocation2 + $0x30] sm:$0xff] }
 0x8d0   :  { %4199 = vmatmul.mubr.msk.bf16.vlgmr.msra.gmra.mrb[48].mxu0 %vm1955_vm5, %v1954_v58  ;;  %4761 = vset.pattern.permute.xlu0 %v7177_v54  ;;  %v7179_v12 = vld [vmem:[#allocation23_spill] sm:$0xff]  ;;  %v6162_v25 = vld [vmem:[#allocation2 + $0x50] sm:$0xff]  ;;  %v6168_v13 = vld [vmem:[#allocation2 + $0x48] sm:$0xff] }
 0x8d1   :  { %2144 = vmatprep.mubr.bf16.mxu0 %v7177_v54  ;;  %2112 = vmatprep.subr.bf16.mxu0 %v6141_v62  ;;  %v7181_v53 = vld [vmem:[#allocation25_spill] sm:$0xff]  ;;  %v6170_v55 = vld [vmem:[#allocation2 + $0x68] sm:$0xff]  ;;  %v7182_v19 = vld [vmem:[#allocation26_spill] sm:$0xff] }
 0x8d2   :  { %4205 = vmatpush3.bf16.msra.mxu1 %v7178_v28  ;;  %2113 = vmatpush1.bf16.msra.mxu0 %v6143_v61  ;;  %v6176_v63 = vld [vmem:[#allocation2 + $0x60] sm:$0xff]  ;;  %v6184_v23 = vld [vmem:[#allocation2 + $0x78] sm:$0xff]  ;;  %v7184_v15 = vld [vmem:[#allocation28_spill] sm:$0xff] }
 0x8d3   :  { %4206 = vmatprep.subr.bf16.mxu1 %v7170_v38  ;;  %2114 = vmatprep.subr.bf16.mxu0 %v6145_v60  ;;  %v6178_v7 = vld [vmem:[#allocation2 + $0x80] sm:$0xff]  ;;  %v6186_v18 = vld [vmem:[#allocation2 + $0x98] sm:$0xff]  ;;  %v6192_v9 = vld [vmem:[#allocation2 + $0x90] sm:$0xff] }
 0x8d4   :  { %v7183_v59 = vld [vmem:[#allocation27_spill] sm:$0xff]  ;;  %v6194_v50 = vld [vmem:[#allocation2 + $0x10] sm:$0xff]  ;;  %v6203_v14 = vld [vmem:[#allocation2 + $0xa8] sm:$0xff] }
 0x8d5   :  { %7185 = vst [vmem:[#allocation76_spill] sm:$0xff] %v6194_v50  ;;  %v6196_v44 = vld [vmem:[#allocation2 + $0xb0] sm:$0xff]  ;;  %v6205_v4 = vld [vmem:[#allocation2 + $0x28] sm:$0xff]  ;;  %v6215_v10 = vld [vmem:[#allocation2 + $0x40] sm:$0xff] }
 0x8d6   :  { %4207 = vmatpush3.bf16.msra.mxu1 %v7179_v12  ;;  %2115 = vmatpush1.bf16.msra.mxu0 %v6152_v52  ;;  %v7186_v16 = vld [vmem:[#allocation29_spill] sm:$0xff]  ;;  %7187 = vst [vmem:[#allocation78_spill] sm:$0xff] %v6205_v4  ;;  %v6207_v3 = vld [vmem:[#allocation2 + $0xc8] sm:$0xff]  ;;  %7188 = vst [vmem:[#allocation77_spill] sm:$0xff] %v6215_v10 }
 0x8d7   :  { %4208 = vmatprep.subr.bf16.mxu1 %v7170_v38  ;;  %2116 = vmatprep.subr.bf16.mxu0 %v6154_v21  ;;  %v6217_v5 = vld [vmem:[#allocation2 + $0xc0] sm:$0xff]  ;;  %v6226_v17 = vld [vmem:[#allocation2 + $0x58] sm:$0xff]  ;;  %v6237_v34 = vld [vmem:[#allocation2 + $0x70] sm:$0xff] }
 0x8d8   :  { %v6219_v29 = vld [vmem:[#allocation2 + $0xe0] sm:$0xff]  ;;  %7189 = vst [vmem:[#allocation80_spill] sm:$0xff] %v6226_v17  ;;  %v6228_v31 = vld [vmem:[#allocation2 + $0xd8] sm:$0xff]  ;;  %7190 = vst [vmem:[#allocation79_spill] sm:$0xff] %v6237_v34 }
 0x8d9   :  { %v6230_v1 = vld [vmem:[#allocation2 + $0xf8] sm:$0xff]  ;;  %v6239_v35 = vld [vmem:[#allocation2 + $0xf0] sm:$0xff]  ;;  %v6247_v37 = vld [vmem:[#allocation2 + $0x88] sm:$0xff] }
 0x8da   :  { %4209 = vmatpush3.bf16.msra.mxu1 %v7180_v20  ;;  %2117 = vmatpush1.bf16.msra.mxu0 %v6160_v56  ;;  %v6241_v36 = vld [vmem:[#allocation2 + $0x110] sm:$0xff]  ;;  %7191 = vst [vmem:[#allocation82_spill] sm:$0xff] %v6247_v37  ;;  %v6249_v39 = vld [vmem:[#allocation2 + $0x108] sm:$0xff]  ;;  %v6257_v45 = vld [vmem:[#allocation2 + $0xa0] sm:$0xff] }
 0x8db   :  { %4210 = vmatprep.subr.bf16.mxu1 %v7170_v38  ;;  %2118 = vmatprep.subr.bf16.mxu0 %v6162_v25  ;;  %v6251_v40 = vld [vmem:[#allocation2 + $0x128] sm:$0xff]  ;;  %7192 = vst [vmem:[#allocation81_spill] sm:$0xff] %v6257_v45  ;;  %v6259_v30 = vld [vmem:[#allocation2 + $0x120] sm:$0xff]  ;;  %v6267_v32 = vld [vmem:[#allocation2 + $0xb8] sm:$0xff] }
 0x8dc   :  { %v6261_v33 = vld [vmem:[#allocation2 + $0x140] sm:$0xff]  ;;  %7193 = vst [vmem:[#allocation83_spill] sm:$0xff] %v6267_v32  ;;  %v6269_v46 = vld [vmem:[#allocation2 + $0x138] sm:$0xff]  ;;  %v6277_v48 = vld [vmem:[#allocation2 + $0x150] sm:$0xff] }
 0x8dd   :  { %v6271_v47 = vld [vmem:[#allocation2 + $0x158] sm:$0xff]  ;;  %v6279_v49 = vld [vmem:[#allocation2 + $0xd0] sm:$0xff]  ;;  %v6288_v24 = vld [vmem:[#allocation2 + $0x168] sm:$0xff] }
 0x8de   :  { %4211 = vmatpush3.bf16.msra.mxu1 %v7181_v53  ;;  %2119 = vmatpush1.bf16.msra.mxu0 %v6168_v13  ;;  %v6281_v6 = vld [vmem:[#allocation2 + $0x170] sm:$0xff]  ;;  %7195 = vst [vmem:[#allocation49_spill] sm:$0xff] %v6288_v24  ;;  %v6290_v0 = vld [vmem:[#allocation2 + $0xe8] sm:$0xff]  ;;  %v6299_v42 = vld [vmem:[#allocation2 + $0x100] sm:$0xff] }
 0x8df   :  { %4212 = vmatprep.subr.bf16.mxu1 %v7170_v38  ;;  %2120 = vmatprep.subr.bf16.mxu0 %v6170_v55  ;;  %7194 = vst [vmem:[#allocation48_spill] sm:$0xff] %v6281_v6  ;;  %v6305_v11 = vld [vmem:[#allocation2 + $0x118] sm:$0xff]  ;;  %v6309_v2 = vld [vmem:[#allocation2 + $0x130] sm:$0xff]  ;;  %v6313_v22 = vld [vmem:[#allocation2 + $0x148] sm:$0xff] }
 0x8e0   :  { %v6317_v26 = vld [vmem:[#allocation2 + $0x160] sm:$0xff]  ;;  %v6321_v27 = vld [vmem:[#allocation2 + $0x178] sm:$0xff]  ;;  %v7202_v20 = vld [vmem:[#allocation32_spill] sm:$0xff] }
 0x8e1   :  { %7196 = vst [vmem:[#allocation51_spill] sm:$0xff] %v6317_v26  ;;  %7197 = vst [vmem:[#allocation84_spill] sm:$0xff] %v6321_v27 }
 0x8e2   :  { %4213 = vmatpush3.bf16.msra.mxu1 %v7182_v19  ;;  %2121 = vmatpush1.bf16.msra.mxu0 %v6176_v63 }
 0x8e3   :  { %4214 = vmatprep.subr.bf16.mxu1 %v7170_v38  ;;  %2122 = vmatprep.subr.bf16.mxu0 %v6178_v7 }
 0x8e6   :  { %4215 = vmatpush3.bf16.msra.mxu1 %v7183_v59  ;;  %2123 = vmatpush1.bf16.msra.mxu0 %v6184_v23 }
 0x8e7   :  { %4216 = vmatprep.subr.bf16.mxu1 %v7170_v38  ;;  %2124 = vmatprep.subr.bf16.mxu0 %v6186_v18 }
 0x8ea   :  { %4217 = vmatpush3.bf16.msra.mxu1 %v7184_v15  ;;  %2125 = vmatpush1.bf16.msra.mxu0 %v6192_v9 }
 0x8eb   :  { %4222 = vmatprep.subr.bf16.mxu1 %v7170_v38  ;;  %2126 = vmatprep.subr.bf16.mxu0 %v6196_v44 }
 0x8ed   :  { %4219 = vmatmul.mubr.bf16.vlgmr.msra.gmra.mrb[48].mxu1 %v7186_v16 }
 0x8ee   :  { %4223 = vmatpush3.bf16.msra.mxu1 %v6194_v50  ;;  %4238 = vmatprep.mubr.msk.bf16.mxu1 %vm4918_vm6, %v7170_v38 }
 0x8ef   :  { %4224 = vmatprep.subr.bf16.mxu1 %v7170_v38  ;;  %2127 = vmatpush1.bf16.msra.mxu0 %v6203_v14 }
 0x8f0   :  { %2210 = vmatprep.subr.bf16.mxu0 %v6207_v3 }
 0x8f2   :  { %4225 = vmatpush3.bf16.msra.mxu1 %v6205_v4  ;;  %2145 = vmatmul.mubr.bf16.vlgmr.msra.gmra.mrb[52].mxu0 %v7177_v54 }
 0x8f3   :  { %4226 = vmatprep.subr.bf16.mxu1 %v7170_v38  ;;  %2211 = vmatpush1.bf16.msra.mxu0 %v6217_v5 }
 0x8f4   :  { %2212 = vmatprep.subr.bf16.mxu0 %v6219_v29  ;;  %2242 = vmatprep.mubr.bf16.mxu0 %v7177_v54 }
 0x8f6   :  { %4227 = vmatpush3.bf16.msra.mxu1 %v6215_v10 }
 0x8f7   :  { %4228 = vmatprep.subr.bf16.mxu1 %v7170_v38  ;;  %2213 = vmatpush1.bf16.msra.mxu0 %v6228_v31 }
 0x8f8   :  { %2214 = vmatprep.subr.bf16.mxu0 %v6230_v1 }
 0x8fa   :  { %4229 = vmatpush3.bf16.msra.mxu1 %v6226_v17 }
 0x8fb   :  { %4230 = vmatprep.subr.bf16.mxu1 %v7170_v38  ;;  %2215 = vmatpush1.bf16.msra.mxu0 %v6239_v35 }
 0x8fc   :  { %2216 = vmatprep.subr.bf16.mxu0 %v6241_v36 }
 0x8fe   :  { %4231 = vmatpush3.bf16.msra.mxu1 %v6237_v34 }
 0x8ff   :  { %4232 = vmatprep.subr.bf16.mxu1 %v7170_v38  ;;  %2217 = vmatpush1.bf16.msra.mxu0 %v6249_v39 }
 0x900   :  { %2218 = vmatprep.subr.bf16.mxu0 %v6251_v40 }
 0x902   :  { %4233 = vmatpush3.bf16.msra.mxu1 %v6247_v37 }
 0x903   :  { %4234 = vmatprep.subr.bf16.mxu1 %v7170_v38  ;;  %2219 = vmatpush1.bf16.msra.mxu0 %v6259_v30 }
 0x904   :  { %2220 = vmatprep.subr.bf16.mxu0 %v6261_v33 }
 0x906   :  { %4235 = vmatpush3.bf16.msra.mxu1 %v6257_v45 }
 0x907   :  { %4236 = vmatprep.subr.bf16.mxu1 %v7170_v38  ;;  %2221 = vmatpush1.bf16.msra.mxu0 %v6269_v46 }
 0x908   :  { %2222 = vmatprep.subr.bf16.mxu0 %v6271_v47 }
 0x90a   :  { %4237 = vmatpush3.bf16.msra.mxu1 %v6267_v32 }
 0x90b   :  { %4242 = vmatprep.subr.bf16.mxu1 %v7170_v38  ;;  %2223 = vmatpush1.bf16.msra.mxu0 %v6277_v48 }
 0x90c   :  { %2224 = vmatprep.subr.bf16.mxu0 %v6281_v6 }
 0x90d   :  { %4239 = vmatmul.mubr.bf16.vlgmr.msra.gmra.mrb[52].mxu1 %v7177_v54 }
 0x90e   :  { %4243 = vmatpush3.bf16.msra.mxu1 %v6279_v49  ;;  %4258 = vmatprep.mubr.msk.bf16.mxu1 %vm4918_vm6, %v7170_v38 }
 0x90f   :  { %4244 = vmatprep.subr.bf16.mxu1 %v7170_v38  ;;  %2225 = vmatpush1.bf16.msra.mxu0 %v6288_v24 }
 0x910   :  { %4384 = vmatprep.subr.bf16.mxu0 %v6916_v41 }
 0x912   :  { %4245 = vmatpush3.bf16.msra.mxu1 %v6290_v0  ;;  %2243 = vmatmul.mubr.bf16.vlgmr.msra.gmra.mrb[52].mxu0 %v2193_v43 }
 0x913   :  { %4246 = vmatprep.subr.bf16.mxu1 %v7170_v38  ;;  %4266 = vmatprep.mubr.msk.f32.mxu0 %vm4918_vm6, %v7170_v38 }
 0x916   :  { %4247 = vmatpush3.bf16.msra.mxu1 %v6299_v42 }
 0x917   :  { %4248 = vmatprep.subr.bf16.mxu1 %v7170_v38 }
 0x91a   :  { %4249 = vmatpush3.bf16.msra.mxu1 %v6305_v11 }
 0x91b   :  { %4250 = vmatprep.subr.bf16.mxu1 %v7170_v38 }
 0x91e   :  { %4251 = vmatpush3.bf16.msra.mxu1 %v6309_v2 }
 0x91f   :  { %4252 = vmatprep.subr.bf16.mxu1 %v7170_v38 }
 0x922   :  { %4253 = vmatpush3.bf16.msra.mxu1 %v6313_v22 }
 0x923   :  { %4254 = vmatprep.subr.bf16.mxu1 %v7170_v38 }
 0x926   :  { %4255 = vmatpush3.bf16.msra.mxu1 %v6317_v26 }
 0x927   :  { %4256 = vmatprep.subr.bf16.mxu1 %v7170_v38 }
 0x92a   :  { %4257 = vmatpush3.bf16.msra.mxu1 %v6321_v27 }
 0x92b   :  { %4276 = vmatprep.subr.bf16.mxu1 %v7170_v38 }
 0x92d   :  { %4259 = vmatmul.mubr.bf16.vlgmr.msra.gmra.mrb[56].mxu1 %v2193_v43 }
 0x92e   :  { %4277 = vmatpush3.bf16.msra.mxu1 %v6194_v50  ;;  %4292 = vmatprep.mubr.msk.bf16.mxu1 %vm4918_vm6, %v7170_v38 }
 0x92f   :  { %4278 = vmatprep.subr.bf16.mxu1 %v7170_v38 }
 0x932   :  { %4279 = vmatpush3.bf16.msra.mxu1 %v6205_v4 }
 0x933   :  { %4280 = vmatprep.subr.bf16.mxu1 %v7170_v38 }
 0x936   :  { %4281 = vmatpush3.bf16.msra.mxu1 %v6215_v10 }
 0x937   :  { %4282 = vmatprep.subr.bf16.mxu1 %v7170_v38 }
 0x93a   :  { %4283 = vmatpush3.bf16.msra.mxu1 %v6226_v17 }
 0x93b   :  { %4284 = vmatprep.subr.bf16.mxu1 %v7170_v38 }
 0x93e   :  { %4285 = vmatpush3.bf16.msra.mxu1 %v6237_v34  ;;  %v7206_v34 = vld [vmem:[#allocation72_spill] sm:$0xff] }
 0x93f   :  { %4286 = vmatprep.subr.bf16.mxu1 %v7170_v38 }
 0x942   :  { %4287 = vmatpush3.bf16.msra.mxu1 %v6247_v37 }
 0x943   :  { %4288 = vmatprep.subr.bf16.mxu1 %v7170_v38 }
 0x946   :  { %4289 = vmatpush3.bf16.msra.mxu1 %v6257_v45 }
 0x947   :  { %4290 = vmatprep.subr.bf16.mxu1 %v7170_v38 }
 0x94a   :  { %4291 = vmatpush3.bf16.msra.mxu1 %v6267_v32  ;;  %v7203_v32 = vld [vmem:[#allocation71_spill] sm:$0xff] }
 0x94b   :  { %4296 = vmatprep.subr.bf16.mxu1 %v7170_v38 }
 0x9a3   :  { %v6344_v57 = vpop.f32.mrb[48].mxu0 }
 0x9a4   :  { %7198 = vst [vmem:[#allocation86_spill] sm:$0xff] %v6344_v57  ;;  %v6346_v58 = vpop.f32.mrb[49].mxu0 }
 0x9a5   :  { %7199 = vst [vmem:[#allocation85_spill] sm:$0xff] %v6346_v58  ;;  %v6348_v51 = vpop.f32.mrb[50].mxu0 }
 0x9a6   :  { %7200 = vst [vmem:[#allocation88_spill] sm:$0xff] %v6348_v51  ;;  %v6350_v28 = vpop.f32.mrb[51].mxu0  ;;  %v7204_v51 = vld [vmem:[#allocation30_spill] sm:$0xff] }
 0x9a7   :  { %7201 = vst [vmem:[#allocation52_spill] sm:$0xff] %v6350_v28  ;;  %v2100_v45 = vrot.slane %v7204_v51, %v7203_v32  ;;  %v7205_v28 = vld [vmem:[#allocation31_spill] sm:$0xff] }
 0x9a8   :  { %v2198_v37 = vrot.slane %v7205_v28, %v7203_v32 }
 0x9c0   :  { %v2045_v12 = vpop.f32.mrb[48].mxu1 }
 0x9c1   :  { %v2046_v53 = vadd.f32 %v2045_v12, %v7202_v20  ;;  %v4220_v19 = vpop.f32.mrb[49].mxu1 }
 0x9c2   :  { %v2048_v59 = vpop.f32.mrb[50].mxu1 }
 0x9c3   :  { %v2049_v15 = vadd.f32 %v2048_v59, %v7202_v20  ;;  %v4221_v16 = vpop.f32.mrb[51].mxu1  ;;  %v2104_v20 = vrot.slane %v7204_v51, %v7206_v34  ;;  %v6366_v59 = vadd.f32 %v2198_v37, %v2100_v45 }
 0x9c5   :  { %v6354_v43 = vpack.c.bf16 %v2049_v15, %v2046_v53  ;;  %v2202_v53 = vrot.slane %v7205_v28, %v7206_v34  ;;  %7207 = vst [vmem:[#allocation47_spill] sm:$0xff] %v6366_v59  ;;  %v7209_v34 = vld [vmem:[#allocation73_spill] sm:$0xff] }
 0x9c6   :  { %v6374_v37 = vrot.slane %v7205_v28, %v7209_v34 }
 0x9c7   :  { %4386 = vmatpush3.bf16.xpose.msra.mxu0 %v6354_v43  ;;  %v6368_v16 = vadd.f32 %v2202_v53, %v2104_v20  ;;  %v6378_v53 = vrot.slane %v7204_v51, %v7209_v34 }
 0x9c8   :  { %4387 = vmatprep.subr.bf16.mxu0 %v6916_v41 }
 0x9c9   :  { %7208 = vst [vmem:[#allocation87_spill] sm:$0xff] %v6368_v16 }
 0x9e0   :  { %v2187_v57 = vpop.f32.mrb[52].mxu1 }
 0x9e1   :  { %v4240_v58 = vpop.f32.mrb[53].mxu1 }
 0x9e2   :  { %v2190_v12 = vpop.f32.mrb[54].mxu1 }
 0x9e3   :  { %v4241_v19 = vpop.f32.mrb[55].mxu1 }
 0x9e5   :  { %v2244_v15 = vpop.f32.mrb[52].mxu0 }
 0x9e6   :  { %v4403_v58 = vadd.f32 %v6366_v59, %v2244_v15  ;;  %v2246_v41 = vpop.f32.mrb[53].mxu0 }
 0x9e7   :  { %v2248_v17 = vpop.f32.mrb[54].mxu0  ;;  %v4405_v12 = vadd.f32 %v6368_v16, %v2246_v41 }
 0x9e8   :  { %v4097_v10 = vmul.f32 -1.442695, %v4403_v58  ;;  %v2249_v4 = vpop.f32.mrb[55].mxu0 }
 0x9e9   :  { %v4098_v19 = vmul.f32 -1.442695, %v4405_v12 }
 0x9ea   :  { %4762 = vpow2.f32 %v4097_v10 }
 0x9eb   :  { %4764 = vpow2.f32 %v4098_v19 }
 0x9f4   :  { %v4763_v32 = vpop.eup %4762 }
 0x9f5   :  { %v2295_v50 = vadd.f32 1.0, %v4763_v32  ;;  %v4765_v45 = vpop.eup %4764  ;;  %v2188_v32 = vadd.f32 %v2187_v57, %v6378_v53  ;;  %v7210_v57 = vlaneseq }
 0x9f6   :  { %v2302_v17 = vadd.f32 1.0, %v4765_v45 }
 0x9f7   :  { %4766 = vrcp.f32 %v2295_v50  ;;  %v6391_v45 = vand.u32 127, %v7210_v57 }
 0x9f8   :  { %4768 = vrcp.f32 %v2302_v17 }
 0x9f9   :  { %7211 = vst [vmem:[#allocation90_spill] sm:$0xff] %v6391_v45  ;;  %vm2054_vm7 = vcmp.ge.s32.totalorder %v6391_v45, 7 }
 0xa00   :  { %v2285_v20 = vpop.f32.mrb[56].mxu1 }
 0xa01   :  { %v2286_v4 = vadd.f32 %v2285_v20, %v6374_v37  ;;  %v4260_v41 = vpop.f32.mrb[57].mxu1  ;;  %v4767_v58 = vpop.eup %4766 }
 0xa02   :  { %v2288_v10 = vpop.f32.mrb[58].mxu1  ;;  %v4769_v28 = vpop.eup %4768 }
 0xa03   :  { %v4261_v15 = vpop.f32.mrb[59].mxu1  ;;  %v2305_v50 = vmul.f32 %v4767_v58, %v2286_v4  ;;  %v2308_v19 = vsub.f32 1.0, %v4769_v28  ;;  %v2310_v34 = vmul.f32 %v4769_v28, %v6120_v8 }
 0xa05   :  { %v2306_v12 = vadd.f32 %v2305_v50, %v2188_v32 }
 0xa07   :  { %4770 = vtanh.f32 %v2306_v12 }
 0xa11   :  { %v4771_v16 = vpop.eup %4770 }
 0xa12   :  { %v2309_v59 = vmul.f32 %v4771_v16, %v2308_v19  ;;  %v6395_v16 = vsel %vm2054_vm7, -1e+30, %v7170_v38 }
 0xa14   :  { %v6383_v51 = vadd.f32 %v2310_v34, %v2309_v59 }
 0xa16   :  { %4267 = vmatmul.mubr.f32.vlgmr.msra.gmra.mrb[56].mxu0 %v6383_v51 }
 0xa17   :  { %4389 = vmatpush3.bf16.msra.mxu0 %v6354_v43  ;;  %4273 = vmatprep.mubr.msk.f32.mxu0 %vm4918_vm6, %v7170_v38 }
 0xa18   :  { %2470 = vmatprep.subr.bf16.mxu0 %v6141_v62 }
 0xae9   :  { %v2378_v20 = vpop.f32.mrb[56].mxu0 }
 0xaea   :  { %v2382_v59 = vmul.f32 0.088388346, %v2378_v20  ;;  %v4268_v17 = vpop.f32.mrb[57].mxu0 }
 0xaeb   :  { %v7212_v17 = vmov 0.0|0.0  }
 0xaec   :  { %v2383_v4 = vadd.f32 %v2382_v59, %v6395_v16  ;;  %v2551_v59 = vpack.c.bf16 %v6383_v51, %v6383_v51 }
 0xaee   :  { %v2385_v41 = vsel %vm2384_vm8, %v2383_v4, -inf }
 0xaef   :  { %2386 = vmax.xlane.f32.xlu0 %v2385_v41  ;;  %v7214_v41 = vld [vmem:[#allocation78_spill] sm:$0xff] }
 0xb7c   :  { %v2387_v10 = vpop.xlane.xlu0 %2386 }
 0xb7d   :  { %v2388_v15 = vsub.f32 %v2383_v4, %v2387_v10  ;;  %v7213_v4 = vld [vmem:[#allocation76_spill] sm:$0xff]  ;;  %v7215_v10 = vld [vmem:[#allocation77_spill] sm:$0xff] }
 0xb7f   :  { %v2389_v58 = vmul.f32 1.442695, %v2388_v15  ;;  %v7216_v15 = vld [vmem:[#allocation80_spill] sm:$0xff] }
 0xb81   :  { %4772 = vpow2.f32 %v2389_v58  ;;  %v7217_v58 = vld [vmem:[#allocation79_spill] sm:$0xff] }
 0xb8b   :  { %v4773_v32 = vpop.eup %4772 }
 0xb8c   :  { %v2391_v50 = vsel %vm2384_vm8, %v4773_v32, 0.0 }
 0xb8d   :  { %2392 = vadd.xlane.f32.xlu0 %v2391_v50  ;;  %v7219_v50 = vld [vmem:[#allocation81_spill] sm:$0xff] }
 0xc1a   :  { %v2393_v12 = vpop.xlane.xlu0 %2392 }
 0xc1b   :  { %4774 = vrcp.f32 %v2393_v12  ;;  %v7220_v12 = vld [vmem:[#allocation83_spill] sm:$0xff] }
 0xc25   :  { %v4775_v28 = vpop.eup %4774 }
 0xc26   :  { %v2395_v19 = vmul.f32 %v4775_v28, %v4773_v32  ;;  %v7218_v32 = vld [vmem:[#allocation82_spill] sm:$0xff] }
 0xc28   :  { %4274 = vmatmul.mubr.msk.f32.vlgmr.msra.gmra.mrb[58].mxu0 %vm1955_vm5, %v2395_v19 }
 0xc29   :  { %2471 = vmatpush1.bf16.msra.mxu0 %v6143_v61  ;;  %2502 = vmatprep.mubr.bf16.mxu0 %v7177_v54 }
 0xc2a   :  { %2472 = vmatprep.subr.bf16.mxu0 %v6145_v60 }
 0xc2d   :  { %2473 = vmatpush1.bf16.msra.mxu0 %v6152_v52 }
 0xc2e   :  { %2474 = vmatprep.subr.bf16.mxu0 %v6154_v21 }
 0xc31   :  { %2475 = vmatpush1.bf16.msra.mxu0 %v6160_v56 }
 0xc32   :  { %2476 = vmatprep.subr.bf16.mxu0 %v6162_v25 }
 0xc35   :  { %2477 = vmatpush1.bf16.msra.mxu0 %v6168_v13 }
 0xc36   :  { %2478 = vmatprep.subr.bf16.mxu0 %v6170_v55 }
 0xc39   :  { %2479 = vmatpush1.bf16.msra.mxu0 %v6176_v63 }
 0xc3a   :  { %2480 = vmatprep.subr.bf16.mxu0 %v6178_v7 }
 0xc3d   :  { %2481 = vmatpush1.bf16.msra.mxu0 %v6184_v23 }
 0xc3e   :  { %2482 = vmatprep.subr.bf16.mxu0 %v6186_v18 }
 0xc41   :  { %2483 = vmatpush1.bf16.msra.mxu0 %v6192_v9 }
 0xc42   :  { %2484 = vmatprep.subr.bf16.mxu0 %v6196_v44 }
 0xc45   :  { %2485 = vmatpush1.bf16.msra.mxu0 %v6203_v14 }
 0xc46   :  { %2552 = vmatprep.subr.bf16.mxu0 %v6207_v3 }
 0xcfb   :  { %v6418_v34 = vpop.f32.mrb[58].mxu0 }
 0xcfc   :  { %v2469_v57 = vpack.c.bf16 %v6418_v34, %v6418_v34  ;;  %v4275_v20 = vpop.f32.mrb[59].mxu0 }
 0xcfe   :  { %2503 = vmatmul.mubr.bf16.vlgmr.msra.gmra.mrb[60].mxu0 %v2469_v57  ;;  %4293 = vmatmul.mubr.bf16.vlgmr.msra.gmra.mrb[60].mxu1 %v2469_v57 }
 0xcff   :  { %2553 = vmatpush1.bf16.msra.mxu0 %v6217_v5  ;;  %4297 = vmatpush3.bf16.msra.mxu1 %v6279_v49 }
 0xd00   :  { %2554 = vmatprep.subr.bf16.mxu0 %v6219_v29  ;;  %4298 = vmatprep.subr.bf16.mxu1 %v7170_v38 }
 0xd01   :  { %2584 = vmatprep.mubr.bf16.mxu0 %v7177_v54  ;;  %4312 = vmatprep.mubr.msk.bf16.mxu1 %vm4918_vm6, %v7170_v38 }
 0xd03   :  { %2555 = vmatpush1.bf16.msra.mxu0 %v6228_v31  ;;  %4299 = vmatpush3.bf16.msra.mxu1 %v6290_v0 }
 0xd04   :  { %2556 = vmatprep.subr.bf16.mxu0 %v6230_v1  ;;  %4300 = vmatprep.subr.bf16.mxu1 %v7170_v38 }
 0xd07   :  { %2557 = vmatpush1.bf16.msra.mxu0 %v6239_v35  ;;  %4301 = vmatpush3.bf16.msra.mxu1 %v6299_v42 }
 0xd08   :  { %2558 = vmatprep.subr.bf16.mxu0 %v6241_v36  ;;  %4302 = vmatprep.subr.bf16.mxu1 %v7170_v38 }
 0xd0b   :  { %2559 = vmatpush1.bf16.msra.mxu0 %v6249_v39  ;;  %4303 = vmatpush3.bf16.msra.mxu1 %v6305_v11 }
 0xd0c   :  { %2560 = vmatprep.subr.bf16.mxu0 %v6251_v40  ;;  %4304 = vmatprep.subr.bf16.mxu1 %v7170_v38 }
 0xd0f   :  { %2561 = vmatpush1.bf16.msra.mxu0 %v6259_v30  ;;  %4305 = vmatpush3.bf16.msra.mxu1 %v6309_v2 }
 0xd10   :  { %2562 = vmatprep.subr.bf16.mxu0 %v6261_v33  ;;  %4306 = vmatprep.subr.bf16.mxu1 %v7170_v38 }
 0xd13   :  { %2563 = vmatpush1.bf16.msra.mxu0 %v6269_v46  ;;  %4307 = vmatpush3.bf16.msra.mxu1 %v6313_v22 }
 0xd14   :  { %2564 = vmatprep.subr.bf16.mxu0 %v6271_v47  ;;  %4308 = vmatprep.subr.bf16.mxu1 %v7170_v38 }
 0xd17   :  { %2565 = vmatpush1.bf16.msra.mxu0 %v6277_v48  ;;  %4309 = vmatpush3.bf16.msra.mxu1 %v6317_v26 }
 0xd18   :  { %2566 = vmatprep.subr.bf16.mxu0 %v6281_v6  ;;  %4310 = vmatprep.subr.bf16.mxu1 %v7170_v38 }
 0xd1b   :  { %2567 = vmatpush1.bf16.msra.mxu0 %v6288_v24  ;;  %4311 = vmatpush3.bf16.msra.mxu1 %v6321_v27  ;;  %v7222_v27 = vld [vmem:[#allocation87_spill] sm:$0xff] }
 0xd1c   :  { %4390 = vmatprep.subr.bf16.mxu0 %v7212_v17  ;;  %4330 = vmatprep.subr.bf16.mxu1 %v7170_v38 }
 0xd1e   :  { %2585 = vmatmul.mubr.bf16.vlgmr.msra.gmra.mrb[60].mxu0 %v2551_v59  ;;  %4313 = vmatmul.mubr.bf16.vlgmr.msra.gmra.mrb[64].mxu1 %v2551_v59 }
 0xd1f   :  { %4320 = vmatprep.mubr.msk.f32.mxu0 %vm4918_vm6, %v7170_v38  ;;  %4331 = vmatpush3.bf16.msra.mxu1 %v7213_v4 }
 0xd20   :  { %4332 = vmatprep.subr.bf16.mxu1 %v7170_v38  ;;  %4346 = vmatprep.mubr.msk.bf16.mxu1 %vm4918_vm6, %v7170_v38 }
 0xd23   :  { %4333 = vmatpush3.bf16.msra.mxu1 %v7214_v41  ;;  %v7221_v41 = vld [vmem:[#allocation47_spill] sm:$0xff] }
 0xd24   :  { %4392 = vmatpush3.bf16.xpose.msra.mxu0 %v6354_v43  ;;  %4334 = vmatprep.subr.bf16.mxu1 %v7170_v38 }
 0xd25   :  { %4393 = vmatprep.subr.bf16.mxu0 %v7212_v17 }
 0xd27   :  { %4335 = vmatpush3.bf16.msra.mxu1 %v7215_v10 }
 0xd28   :  { %4336 = vmatprep.subr.bf16.mxu1 %v7170_v38 }
 0xd2b   :  { %4337 = vmatpush3.bf16.msra.mxu1 %v7216_v15 }
 0xd2c   :  { %4338 = vmatprep.subr.bf16.mxu1 %v7170_v38 }
 0xd2f   :  { %4339 = vmatpush3.bf16.msra.mxu1 %v7217_v58 }
 0xd30   :  { %4340 = vmatprep.subr.bf16.mxu1 %v7170_v38 }
 0xd33   :  { %4341 = vmatpush3.bf16.msra.mxu1 %v7218_v32 }
 0xd34   :  { %4342 = vmatprep.subr.bf16.mxu1 %v7170_v38 }
 0xd37   :  { %4343 = vmatpush3.bf16.msra.mxu1 %v7219_v50 }
 0xd38   :  { %4344 = vmatprep.subr.bf16.mxu1 %v7170_v38 }
 0xd3b   :  { %4345 = vmatpush3.bf16.msra.mxu1 %v7220_v12 }
 0xd3c   :  { %4350 = vmatprep.subr.bf16.mxu1 %v7170_v38 }
 0xdd1   :  { %v2545_v28 = vpop.f32.mrb[60].mxu1 }
 0xdd2   :  { %v4294_v19 = vpop.f32.mrb[61].mxu1 }
 0xdd3   :  { %v2548_v57 = vpop.f32.mrb[62].mxu1 }
 0xdd4   :  { %v4295_v20 = vpop.f32.mrb[63].mxu1 }
 0xdf1   :  { %v2586_v59 = vpop.f32.mrb[60].mxu0  ;;  %v2627_v4 = vpop.f32.mrb[64].mxu1 }
 0xdf2   :  { %v4407_v10 = vadd.f32 %v7221_v41, %v2586_v59  ;;  %v2588_v15 = vpop.f32.mrb[61].mxu0  ;;  %v4314_v58 = vpop.f32.mrb[65].mxu1  ;;  %v2628_v26 = vadd.f32 %v2627_v4, %v6374_v37 }
 0xdf3   :  { %v2590_v32 = vpop.f32.mrb[62].mxu0  ;;  %v2630_v8 = vpop.f32.mrb[66].mxu1  ;;  %v4409_v24 = vadd.f32 %v7222_v27, %v2588_v15  ;;  %v2546_v58 = vadd.f32 %v2545_v28, %v6378_v53 }
 0xdf4   :  { %v4100_v45 = vmul.f32 -1.442695, %v4407_v10  ;;  %v2591_v50 = vpop.f32.mrb[63].mxu0  ;;  %v4315_v17 = vpop.f32.mrb[67].mxu1 }
 0xdf5   :  { %v4101_v12 = vmul.f32 -1.442695, %v4409_v24 }
 0xdf6   :  { %4776 = vpow2.f32 %v4100_v45 }
 0xdf7   :  { %4778 = vpow2.f32 %v4101_v12 }
 0xe00   :  { %v4777_v6 = vpop.eup %4776 }
 0xe01   :  { %v2637_v19 = vadd.f32 1.0, %v4777_v6  ;;  %v4779_v57 = vpop.eup %4778 }
 0xe02   :  { %v2644_v20 = vadd.f32 1.0, %v4779_v57 }
 0xe03   :  { %4780 = vrcp.f32 %v2637_v19 }
 0xe04   :  { %4782 = vrcp.f32 %v2644_v20 }
 0xe0d   :  { %v4781_v59 = vpop.eup %4780 }
 0xe0e   :  { %v2647_v32 = vmul.f32 %v4781_v59, %v2628_v26  ;;  %v4783_v17 = vpop.eup %4782 }
 0xe0f   :  { %v2650_v10 = vsub.f32 1.0, %v4783_v17  ;;  %v2652_v24 = vmul.f32 %v4783_v17, %v6383_v51 }
 0xe10   :  { %v2648_v8 = vadd.f32 %v2647_v32, %v2546_v58 }
 0xe12   :  { %4784 = vtanh.f32 %v2648_v8 }
 0xe1c   :  { %v4785_v15 = vpop.eup %4784 }
 0xe1d   :  { %v2651_v45 = vmul.f32 %v4785_v15, %v2650_v10 }
 0xe1f   :  { %v6486_v50 = vadd.f32 %v2652_v24, %v2651_v45 }
 0xe21   :  { %4321 = vmatmul.mubr.f32.vlgmr.msra.gmra.mrb[64].mxu0 %v6486_v50 }
 0xe22   :  { %4395 = vmatpush3.bf16.msra.mxu0 %v6354_v43  ;;  %4327 = vmatprep.mubr.msk.f32.mxu0 %vm4918_vm6, %v7170_v38 }
 0xe23   :  { %2812 = vmatprep.subr.bf16.mxu0 %v6141_v62 }
 0xef4   :  { %v2720_v6 = vpop.f32.mrb[64].mxu0 }
 0xef5   :  { %v2724_v26 = vmul.f32 0.088388346, %v2720_v6  ;;  %v4322_v28 = vpop.f32.mrb[65].mxu0 }
 0xef7   :  { %v2725_v4 = vadd.f32 %v2724_v26, %v6395_v16 }
 0xef9   :  { %v2726_v12 = vsel %vm2384_vm8, %v2725_v4, -inf }
 0xefa   :  { %2727 = vmax.xlane.f32.xlu1 %v2726_v12 }
 0xf87   :  { %v2728_v51 = vpop.xlane.xlu1 %2727 }
 0xf88   :  { %v2729_v19 = vsub.f32 %v2725_v4, %v2728_v51 }
 0xf8a   :  { %v2730_v57 = vmul.f32 1.442695, %v2729_v19 }
 0xf8c   :  { %4786 = vpow2.f32 %v2730_v57 }
 0xf96   :  { %v4787_v20 = vpop.eup %4786 }
 0xf97   :  { %v2732_v59 = vsel %vm2384_vm8, %v4787_v20, 0.0 }
 0xf98   :  { %2733 = vadd.xlane.f32.xlu1 %v2732_v59 }
0x1025   :  { %v2734_v58 = vpop.xlane.xlu1 %2733 }
0x1026   :  { %4788 = vrcp.f32 %v2734_v58 }
0x1030   :  { %v4789_v32 = vpop.eup %4788 }
0x1031   :  { %v2736_v62 = vmul.f32 %v4789_v32, %v4787_v20 }
0x1033   :  { %4328 = vmatmul.mubr.msk.f32.vlgmr.msra.gmra.mrb[66].mxu0 %vm1955_vm5, %v2736_v62 }
0x1034   :  { %2813 = vmatpush1.bf16.msra.mxu0 %v6143_v61  ;;  %2844 = vmatprep.mubr.bf16.mxu0 %v7177_v54 }
0x1035   :  { %2814 = vmatprep.subr.bf16.mxu0 %v6145_v60 }
0x1038   :  { %2815 = vmatpush1.bf16.msra.mxu0 %v6152_v52 }
0x1039   :  { %2816 = vmatprep.subr.bf16.mxu0 %v6154_v21 }
0x103c   :  { %2817 = vmatpush1.bf16.msra.mxu0 %v6160_v56  ;;  %v7224_v56 = vld [vmem:[#allocation48_spill] sm:$0xff] }
0x103d   :  { %2818 = vmatprep.subr.bf16.mxu0 %v6162_v25  ;;  %v7225_v25 = vld [vmem:[#allocation49_spill] sm:$0xff] }
0x1040   :  { %2819 = vmatpush1.bf16.msra.mxu0 %v6168_v13  ;;  %v7226_v13 = vld [vmem:[#allocation84_spill] sm:$0xff] }
0x1041   :  { %2820 = vmatprep.subr.bf16.mxu0 %v6170_v55  ;;  %v2893_v55 = vpack.c.bf16 %v6486_v50, %v6486_v50 }
0x1044   :  { %2821 = vmatpush1.bf16.msra.mxu0 %v6176_v63  ;;  %v7227_v63 = vmov 0.0|0.0  }
0x1045   :  { %2822 = vmatprep.subr.bf16.mxu0 %v6178_v7  ;;  %v4920_v7 = vmov 1966171168  }
0x1048   :  { %2823 = vmatpush1.bf16.msra.mxu0 %v6184_v23  ;;  %v3186_v23 = vunpack.c.l.s4 %v4920_v7 }
0x1049   :  { %2824 = vmatprep.subr.bf16.mxu0 %v6186_v18 }
0x104a   :  { %v3187_v18 = vunpack.c.0.s8 %v3186_v23 }
0x104c   :  { %2825 = vmatpush1.bf16.msra.mxu0 %v6192_v9  ;;  %v7228_v9 = vld [vmem:[#allocation46_spill] sm:$0xff] }
0x104d   :  { %2826 = vmatprep.subr.bf16.mxu0 %v6196_v44  ;;  %v3190_v44 = vsub.s32 %v3187_v18, %v7228_v9 }
0x1050   :  { %2827 = vmatpush1.bf16.msra.mxu0 %v6203_v14  ;;  %v7229_v14 = vld [vmem:[#allocation41_spill] sm:$0xff] }
0x1051   :  { %2894 = vmatprep.subr.bf16.mxu0 %v6207_v3  ;;  %v3191_v3 = vrot.slane %v7229_v14, %v3190_v44 }
0x1106   :  { %v2806_v61 = vpop.f32.mrb[66].mxu0 }
0x1107   :  { %v6515_v60 = vmul.f32 %v2806_v61, %v6418_v34  ;;  %v2811_v52 = vpack.c.bf16 %v2806_v61, %v2806_v61  ;;  %v4329_v21 = vpop.f32.mrb[67].mxu0 }
0x1109   :  { %2845 = vmatmul.mubr.bf16.vlgmr.msra.gmra.mrb[68].mxu0 %v2811_v52  ;;  %4347 = vmatmul.mubr.bf16.vlgmr.msra.gmra.mrb[68].mxu1 %v2811_v52 }
0x110a   :  { %2895 = vmatpush1.bf16.msra.mxu0 %v6217_v5  ;;  %4351 = vmatpush3.bf16.msra.mxu1 %v6279_v49  ;;  %v3199_v5 = vrot.slane %v3191_v3, %v3190_v44  ;;  %v7234_v49 = vld [vmem:[#allocation40_spill] sm:$0xff] }
0x110b   :  { %2896 = vmatprep.subr.bf16.mxu0 %v6219_v29  ;;  %4352 = vmatprep.subr.bf16.mxu1 %v7170_v38  ;;  %v3192_v29 = vcombine.high %v3191_v3, %v3191_v3 }
0x110c   :  { %2926 = vmatprep.mubr.bf16.mxu0 %v7177_v54  ;;  %4366 = vmatprep.mubr.msk.bf16.mxu1 %vm4918_vm6, %v7170_v38  ;;  %v7223_v54 = vld [vmem:[#allocation51_spill] sm:$0xff] }
0x110e   :  { %2897 = vmatpush1.bf16.msra.mxu0 %v6228_v31  ;;  %4353 = vmatpush3.bf16.msra.mxu1 %v6290_v0  ;;  %v7230_v31 = vld [vmem:[#allocation71_spill] sm:$0xff] }
0x110f   :  { %2898 = vmatprep.subr.bf16.mxu0 %v6230_v1  ;;  %4354 = vmatprep.subr.bf16.mxu1 %v7170_v38  ;;  %v3210_v1 = vrot.slane %v3199_v5, %v7230_v31 }
0x1112   :  { %2899 = vmatpush1.bf16.msra.mxu0 %v6239_v35  ;;  %4355 = vmatpush3.bf16.msra.mxu1 %v6299_v42  ;;  %v3206_v35 = vrot.slane %v3192_v29, %v3190_v44 }
0x1113   :  { %2900 = vmatprep.subr.bf16.mxu0 %v6241_v36  ;;  %4356 = vmatprep.subr.bf16.mxu1 %v7170_v38  ;;  %v7231_v36 = vld [vmem:[#allocation37_spill] sm:$0xff] }
0x1116   :  { %2901 = vmatpush1.bf16.msra.mxu0 %v6249_v39  ;;  %4357 = vmatpush3.bf16.msra.mxu1 %v6305_v11  ;;  %v3217_v39 = vmul.f32 %v3210_v1, %v7231_v36 }
0x1117   :  { %2902 = vmatprep.subr.bf16.mxu0 %v6251_v40  ;;  %4358 = vmatprep.subr.bf16.mxu1 %v7170_v38  ;;  %v3214_v40 = vrot.slane %v3206_v35, %v7230_v31 }
0x1119   :  { %v3220_v0 = vmul.f32 %v3214_v40, %v7234_v49 }
0x111a   :  { %2903 = vmatpush1.bf16.msra.mxu0 %v6259_v30  ;;  %4359 = vmatpush3.bf16.msra.mxu1 %v6309_v2  ;;  %v7232_v30 = vld [vmem:[#allocation38_spill] sm:$0xff]  ;;  %v6574_v2 = vrot.slane %v7229_v14, %v7230_v31 }
0x111b   :  { %2904 = vmatprep.subr.bf16.mxu0 %v6261_v33  ;;  %4360 = vmatprep.subr.bf16.mxu1 %v7170_v38  ;;  %v3221_v33 = vsel %vm1955_vm5, %v3217_v39, 0.0  ;;  %v3230_v11 = vsel %vm1955_vm5, %v3220_v0, 0.0 }
0x111c   :  { %3222 = vadd.xlane.f32.xlu0 %v3221_v33 }
0x111e   :  { %2905 = vmatpush1.bf16.msra.mxu0 %v6269_v46  ;;  %4361 = vmatpush3.bf16.msra.mxu1 %v6313_v22  ;;  %v7233_v46 = vld [vmem:[#allocation39_spill] sm:$0xff]  ;;  %v7235_v22 = vld [vmem:[#allocation72_spill] sm:$0xff] }
0x111f   :  { %2906 = vmatprep.subr.bf16.mxu0 %v6271_v47  ;;  %4362 = vmatprep.subr.bf16.mxu1 %v7170_v38  ;;  %v3219_v47 = vmul.f32 %v3214_v40, %v7233_v46 }
0x1121   :  { %v3227_v42 = vsel %vm1955_vm5, %v3219_v47, 0.0 }
0x1122   :  { %2907 = vmatpush1.bf16.msra.mxu0 %v6277_v48  ;;  %4363 = vmatpush3.bf16.msra.mxu1 %v7223_v54 }
0x1123   :  { %2908 = vmatprep.subr.bf16.mxu0 %v7224_v56  ;;  %4364 = vmatprep.subr.bf16.mxu1 %v7170_v38 }
0x1124   :  { %3228 = vadd.xlane.f32.xlu0 %v3227_v42 }
0x1126   :  { %2909 = vmatpush1.bf16.msra.mxu0 %v7225_v25  ;;  %4365 = vmatpush3.bf16.msra.mxu1 %v7226_v13 }
0x1127   :  { %4399 = vmatprep.subr.bf16.mxu1 %v7227_v63  ;;  %4396 = vmatprep.subr.bf16.mxu0 %v7227_v63 }
0x1129   :  { %2927 = vmatmul.mubr.bf16.vlgmr.msra.gmra.mrb[68].mxu0 %v2893_v55  ;;  %4367 = vmatmul.mubr.bf16.vlgmr.msra.gmra.mrb[72].mxu1 %v2893_v55 }
0x112a   :  { %4401 = vmatpush3.bf16.msra.mxu1 %v6354_v43  ;;  %4374 = vmatprep.mubr.msk.f32.mxu0 %vm4918_vm6, %v7170_v38 }
0x112b   :  { %4381 = vmatprep.mubr.msk.f32.mxu1 %vm4918_vm6, %v7170_v38  ;;  %v3218_v38 = vmul.f32 %v3210_v1, %v7232_v30 }
0x112d   :  { %v3224_v48 = vsel %vm1955_vm5, %v3218_v38, 0.0 }
0x112e   :  { %3225 = vadd.xlane.f32.xlu1 %v3224_v48 }
0x112f   :  { %4398 = vmatpush3.bf16.xpose.msra.mxu0 %v6354_v43  ;;  %v6579_v43 = vrot.slane %v7229_v14, %v7235_v22 }
0x1132   :  { %3231 = vadd.xlane.f32.xlu1 %v3230_v11 }
0x113a   :  { %3238 = vbcast.lane.b32.xlu0 %v6574_v2, 256 }
0x1143   :  { %3242 = vbcast.lane.b32.xlu1 %v6574_v2, 264 }
0x1147   :  { %3249 = vbcast.lane.b32.xlu1 %v6579_v43, 256 }
0x114b   :  { %3253 = vbcast.lane.b32.xlu1 %v6579_v43, 264 }
0x11a9   :  { %v3223_v7 = vpop.xlane.xlu0 %3222 }
0x11b1   :  { %v3229_v18 = vpop.xlane.xlu0 %3228 }
0x11bb   :  { %v3226_v23 = vpop.xlane.xlu1 %3225 }
0x11bf   :  { %v3232_v44 = vpop.xlane.xlu1 %3231 }
0x11c3   :  { %v3243_v3 = vpop.permute.xlu1 %3242 }
0x11c7   :  { %v3250_v35 = vpop.permute.xlu1 %3249 }
0x11c8   :  { %v3261_v40 = vadd.f32 %v3250_v35, %v3229_v18 }
0x11ca   :  { %vm3265_vm11 = vcmp.gt.f32.partialorder %v3261_v40, 0.0 }
0x11cb   :  { %v3254_v33 = vpop.permute.xlu1 %3253 }
0x11cc   :  { %v3262_v47 = vadd.f32 %v3254_v33, %v3232_v44 }
0x11ce   :  { %vm3266_vm12 = vcmp.gt.f32.partialorder %v3262_v47, 0.0 }
0x11cf   :  { %v3270_v0 = vsel %vm3266_vm12, 1.0, %v3262_v47 }
0x11d0   :  { %v3274_v42 = vsub.f32 %v3270_v0, %v3254_v33 }
0x11dc   :  { %v2887_v34 = vpop.f32.mrb[68].mxu1 }
0x11dd   :  { %v4348_v8 = vpop.f32.mrb[69].mxu1  ;;  %v2888_v52 = vadd.f32 %v2887_v34, %v6378_v53  ;;  %v3260_v53 = vadd.f32 %v3243_v3, %v3226_v23  ;;  %v7236_v34 = vld [vmem:[#allocation90_spill] sm:$0xff] }
0x11de   :  { %v2890_v17 = vpop.f32.mrb[70].mxu1  ;;  %v3295_v8 = vadd.s32 4294967288, %v7236_v34 }
0x11df   :  { %v4349_v10 = vpop.f32.mrb[71].mxu1  ;;  %vm3264_vm10 = vcmp.gt.f32.partialorder %v3260_v53, 0.0 }
0x11e0   :  { %v3268_v1 = vsel %vm3264_vm10, 1.0, %v3260_v53  ;;  %v6592_v10 = vsub.s32 %v7236_v34, %v7228_v9 }
0x11e1   :  { %v3272_v38 = vsub.f32 %v3268_v1, %v3243_v3 }
0x11fc   :  { %v2928_v15 = vpop.f32.mrb[68].mxu0  ;;  %v2969_v45 = vpop.f32.mrb[72].mxu1 }
0x11fd   :  { %v4411_v24 = vadd.f32 %v7221_v41, %v2928_v15  ;;  %v2930_v6 = vpop.f32.mrb[69].mxu0  ;;  %v4368_v26 = vpop.f32.mrb[73].mxu1  ;;  %v2970_v61 = vadd.f32 %v2969_v45, %v6374_v37  ;;  %v6595_v15 = vsub.s32 %v3295_v8, %v7228_v9 }
0x11fe   :  { %v2932_v28 = vpop.f32.mrb[70].mxu0  ;;  %v2972_v4 = vpop.f32.mrb[74].mxu1  ;;  %v4413_v57 = vadd.f32 %v7222_v27, %v2930_v6 }
0x11ff   :  { %v4103_v12 = vmul.f32 -1.442695, %v4411_v24  ;;  %v2933_v51 = vpop.f32.mrb[71].mxu0  ;;  %v4369_v19 = vpop.f32.mrb[75].mxu1 }
0x1200   :  { %v4104_v20 = vmul.f32 -1.442695, %v4413_v57  ;;  %v3239_v37 = vpop.permute.xlu0 %3238 }
0x1201   :  { %4790 = vpow2.f32 %v4103_v12  ;;  %v3259_v5 = vadd.f32 %v3239_v37, %v3223_v7 }
0x1202   :  { %4792 = vpow2.f32 %v4104_v20 }
0x1203   :  { %vm3263_vm9 = vcmp.gt.f32.partialorder %v3259_v5, 0.0 }
0x1204   :  { %v3267_v29 = vsel %vm3263_vm9, 1.0, %v3259_v5 }
0x1205   :  { %v3271_v39 = vsub.f32 %v3267_v29, %v3239_v37 }
0x1207   :  { %3280 = vperm.xlu1 %4760, %v3271_v39  }
0x120b   :  { %v4791_v59 = vpop.eup %4790  ;;  %3283 = vperm.xlu1 %4760, %v3272_v38  }
0x120c   :  { %v2979_v58 = vadd.f32 1.0, %v4791_v59  ;;  %v4793_v32 = vpop.eup %4792 }
0x120d   :  { %v2986_v62 = vadd.f32 1.0, %v4793_v32 }
0x120e   :  { %4794 = vrcp.f32 %v2979_v58 }
0x120f   :  { %4796 = vrcp.f32 %v2986_v62 }
0x1218   :  { %v4795_v41 = vpop.eup %4794 }
0x1219   :  { %v2989_v21 = vmul.f32 %v4795_v41, %v2970_v61  ;;  %v4797_v56 = vpop.eup %4796 }
0x121a   :  { %v2992_v25 = vsub.f32 1.0, %v4797_v56  ;;  %v2994_v55 = vmul.f32 %v4797_v56, %v6486_v50  ;;  %v3269_v50 = vsel %vm3265_vm11, 1.0, %v3261_v40 }
0x121b   :  { %v2990_v54 = vadd.f32 %v2989_v21, %v2888_v52  ;;  %v3273_v48 = vsub.f32 %v3269_v50, %v3250_v35 }
0x121d   :  { %4798 = vtanh.f32 %v2990_v54  ;;  %3286 = vperm.xlu1 %4760, %v3273_v48  }
0x1221   :  { %3289 = vperm.xlu1 %4760, %v3274_v42  }
0x1227   :  { %v4799_v27 = vpop.eup %4798 }
0x1228   :  { %v2993_v13 = vmul.f32 %v4799_v27, %v2992_v25 }
0x122a   :  { %v2995_v63 = vadd.f32 %v2994_v55, %v2993_v13 }
0x122c   :  { %4375 = vmatmul.mubr.f32.vlgmr.msra.gmra.mrb[72].mxu0 %v2995_v63 }
0x1286   :  { %v3281_v11 = vpop.permute.xlu1 %3280 }
0x1287   :  { %v3294_v24 = vrot.slane %v3281_v11, %v6592_v10 }
0x128a   :  { %v3284_v17 = vpop.permute.xlu1 %3283 }
0x128b   :  { %v3299_v6 = vrot.slane %v3284_v17, %v6595_v15 }
0x128d   :  { %v3301_v28 = vsel %vm3300_vm13, %v3299_v6, %v3294_v24 }
0x128e   :  { %v3335_v57 = vmul.f32 %v3301_v28, %v7231_v36  ;;  %v3336_v32 = vmul.f32 %v3301_v28, %v7232_v30 }
0x1290   :  { %v3339_v58 = vsel %vm1955_vm5, %v3335_v57, 0.0  ;;  %v3342_v61 = vsel %vm1955_vm5, %v3336_v32, 0.0 }
0x129c   :  { %v3287_v45 = vpop.permute.xlu1 %3286 }
0x129d   :  { %v3305_v20 = vrot.slane %v3287_v45, %v6592_v10 }
0x12a0   :  { %v3290_v51 = vpop.permute.xlu1 %3289 }
0x12a1   :  { %v3309_v9 = vrot.slane %v3290_v51, %v6595_v15 }
0x12a3   :  { %v3310_v62 = vsel %vm3300_vm13, %v3309_v9, %v3305_v20 }
0x12a4   :  { %v3338_v52 = vmul.f32 %v3310_v62, %v7234_v49  ;;  %v3312_v54 = vsel %vm3311_vm14, %v3310_v62, %v3301_v28 }
0x12a5   :  { %v6615_v56 = vadd.f32 %v3312_v54, %v7229_v14 }
0x12a6   :  { %v3348_v21 = vsel %vm1955_vm5, %v3338_v52, 0.0 }
0x12a7   :  { %v3355_v25 = vrot.slane %v6615_v56, %v7230_v31  ;;  %v3366_v27 = vrot.slane %v6615_v56, %v7235_v22 }
0x12ff   :  { %v3062_v26 = vpop.f32.mrb[72].mxu0 }
0x1300   :  { %v3066_v4 = vmul.f32 0.088388346, %v3062_v26  ;;  %v4376_v12 = vpop.f32.mrb[73].mxu0 }
0x1302   :  { %v3067_v19 = vadd.f32 %v3066_v4, %v6395_v16  ;;  %v3337_v16 = vmul.f32 %v3310_v62, %v7233_v46 }
0x1304   :  { %v3068_v59 = vsel %vm2384_vm8, %v3067_v19, -inf  ;;  %v3345_v41 = vsel %vm1955_vm5, %v3337_v16, 0.0 }
0x1305   :  { %3069 = vmax.xlane.f32.xlu0 %v3068_v59 }
0x1309   :  { %3340 = vadd.xlane.f32.xlu0 %v3339_v58 }
0x130d   :  { %3343 = vadd.xlane.f32.xlu0 %v3342_v61 }
0x1311   :  { %3346 = vadd.xlane.f32.xlu0 %v3345_v41 }
0x1315   :  { %3349 = vadd.xlane.f32.xlu0 %v3348_v21 }
0x132b   :  { %3357 = vbcast.lane.b32.xlu0 %v3355_v25, 256 }
0x132f   :  { %3368 = vbcast.lane.b32.xlu0 %v3366_v27, 256 }
0x1392   :  { %v3070_v13 = vpop.xlane.xlu0 %3069 }
0x1393   :  { %v3071_v55 = vsub.f32 %v3067_v19, %v3070_v13 }
0x1395   :  { %v3072_v63 = vmul.f32 1.442695, %v3071_v55 }
0x1396   :  { %v3341_v7 = vpop.xlane.xlu0 %3340 }
0x1397   :  { %4800 = vpow2.f32 %v3072_v63 }
0x139a   :  { %v3344_v23 = vpop.xlane.xlu0 %3343 }
0x139e   :  { %v3347_v18 = vpop.xlane.xlu0 %3346 }
0x13a1   :  { %v4801_v44 = vpop.eup %4800 }
0x13a2   :  { %v3074_v37 = vsel %vm2384_vm8, %v4801_v44, 0.0  ;;  %v3350_v14 = vpop.xlane.xlu0 %3349 }
0x13a3   :  { %3075 = vadd.xlane.f32.xlu1 %v3074_v37 }
0x13a6   :  { %v3358_v3 = vpop.permute.xlu0 %3357 }
0x13a7   :  { %v3378_v5 = vadd.f32 %v3358_v3, %v3341_v7 }
0x13a9   :  { %vm3382_vm15 = vcmp.gt.f32.partialorder %v3378_v5, 0.0 }
0x13aa   :  { %v3386_v53 = vsel %vm3382_vm15, 1.0, %v3378_v5  ;;  %v3369_v1 = vpop.permute.xlu0 %3368  ;;  %vm3932_vm15 = vcmask 132224  }
0x13ab   :  { %v3390_v29 = vsub.f32 %v3386_v53, %v3358_v3  ;;  %v3380_v39 = vadd.f32 %v3369_v1, %v3347_v18  ;;  %v7237_v53 = vld [vmem:[#allocation85_spill] sm:$0xff] }
0x13ad   :  { %3399 = vperm.xlu0 %4761, %v3390_v29   ;;  %vm3384_vm0 = vcmp.gt.f32.partialorder %v3380_v39, 0.0 }
0x13ae   :  { %v3388_v0 = vsel %vm3384_vm0, 1.0, %v3380_v39  ;;  %vm3936_vm0 = vcmask 140424  }
0x13af   :  { %v3392_v17 = vsub.f32 %v3388_v0, %v3369_v1  ;;  %v7238_v1 = vld [vmem:[#allocation52_spill] sm:$0xff]  ;;  %v7239_v0 = vld [vmem:[#allocation42_spill] sm:$0xff] }
0x13b4   :  { %3361 = vbcast.lane.b32.xlu1 %v3355_v25, 264 }
0x13b8   :  { %3372 = vbcast.lane.b32.xlu1 %v3366_v27, 264 }
0x142c   :  { %v3400_v24 = vpop.permute.xlu0 %3399 }
0x142d   :  { %v3413_v26 = vrot.slane %v3400_v24, %v6592_v10 }
0x1430   :  { %v3076_v35 = vpop.xlane.xlu1 %3075 }
0x1431   :  { %4802 = vrcp.f32 %v3076_v35 }
0x1434   :  { %v3362_v40 = vpop.permute.xlu1 %3361 }
0x1435   :  { %v3379_v38 = vadd.f32 %v3362_v40, %v3344_v23 }
0x1437   :  { %vm3383_vm1 = vcmp.gt.f32.partialorder %v3379_v38, 0.0 }
0x1438   :  { %v3387_v50 = vsel %vm3383_vm1, 1.0, %v3379_v38  ;;  %v3373_v33 = vpop.permute.xlu1 %3372 }
0x1439   :  { %v3391_v47 = vsub.f32 %v3387_v50, %v3362_v40  ;;  %v3381_v48 = vadd.f32 %v3373_v33, %v3350_v14 }
0x143b   :  { %v4803_v42 = vpop.eup %4802  ;;  %vm3385_vm2 = vcmp.gt.f32.partialorder %v3381_v48, 0.0  ;;  %3402 = vperm.xlu1 %4760, %v3391_v47  }
0x143c   :  { %v3078_v11 = vmul.f32 %v4803_v42, %v4801_v44  ;;  %v3389_v8 = vsel %vm3385_vm2, 1.0, %v3381_v48  ;;  %v3661_v42 = vsub.f32 1.0, %v7239_v0 }
0x143d   :  { %v3393_v45 = vsub.f32 %v3389_v8, %v3373_v33 }
0x143e   :  { %4382 = vmatmul.mubr.msk.f32.vlgmr.msra.gmra.mrb[76].mxu1 %vm1955_vm5, %v3078_v11  ;;  %v7240_v11 = vld [vmem:[#allocation86_spill] sm:$0xff] }
0x143f   :  { %3408 = vperm.xlu0 %4761, %v3393_v45   ;;  %3405 = vperm.xlu1 %4760, %v3392_v17   ;;  %v7241_v17 = vld [vmem:[#allocation88_spill] sm:$0xff] }
0x14ba   :  { %v3403_v6 = vpop.permute.xlu1 %3402 }
0x14bb   :  { %v3417_v28 = vrot.slane %v3403_v6, %v6595_v15 }
0x14bd   :  { %v3418_v4 = vsel %vm3300_vm13, %v3417_v28, %v3413_v26  ;;  %v3662_v28 = vmul.f32 -1e+11, %v3661_v42 }
0x14be   :  { %v3406_v12 = vpop.permute.xlu1 %3405  ;;  %v3409_v51 = vpop.permute.xlu0 %3408  ;;  %v3446_v19 = vmul.f32 %v3418_v4, %v7232_v30  ;;  %v3445_v57 = vmul.f32 %v3418_v4, %v7231_v36 }
0x14bf   :  { %v3422_v20 = vrot.slane %v3406_v12, %v6592_v10  ;;  %v3426_v9 = vrot.slane %v3409_v51, %v6595_v15 }
0x14c0   :  { %v3452_v59 = vsel %vm1955_vm5, %v3446_v19, 0.0  ;;  %v3449_v58 = vsel %vm1955_vm5, %v3445_v57, 0.0  ;;  %v3667_v57 = vrot.slane %v3662_v28, %v7230_v31 }
0x14c1   :  { %3453 = vadd.xlane.f32.xlu0 %v3452_v59  ;;  %3450 = vadd.xlane.f32.xlu1 %v3449_v58  ;;  %v3427_v32 = vsel %vm3300_vm13, %v3426_v9, %v3422_v20  ;;  %v3153_v59 = vstv %s4972_s15  ;;  %v3155_v58 = vstv %s4974_s16  ;;  %s4921_s16 = smov [#allocation11]  }
0x14c2   :  { %v3447_v62 = vmul.f32 %v3427_v32, %v7233_v46  ;;  %v3448_v30 = vmul.f32 %v3427_v32, %v7234_v49  ;;  %v3428_v16 = vsel %vm3311_vm14, %v3427_v32, %v3418_v4  ;;  %s3944_s24 = sshll.u32 %s4921_s16, 4  ;;  %s3945_s24 = int_to_ptr.vmem [resolvable:$true] %s3944_s24 }
0x14c3   :  { %v6639_v41 = vadd.f32 %v3428_v16, %v6615_v56  ;;  %s4870_s25 = scalar_lea.vmem %s3945_s24, 128  ;;  %p4875_p0 = scmp.lt.s32.totalorder %s3945_s24, %s3945_s24 }
0x14c4   :  { %v3455_v61 = vsel %vm1955_vm5, %v3447_v62, 0.0  ;;  %v3458_v36 = vsel %vm1955_vm5, %v3448_v30, 0.0  ;;  %p4871_p13 = scmp.ne.s32.totalorder %s3945_s24, %s4870_s25  ;;  %p4876_p1 = scmp.lt.s32.totalorder %s4870_s25, %s4870_s25 }
0x14c5   :  { %3456 = vadd.xlane.f32.xlu0 %v3455_v61  ;;  %v3465_v52 = vrot.slane %v6639_v41, %v7230_v31  ;;  %v3476_v46 = vrot.slane %v6639_v41, %v7235_v22  ;;  %v3678_v61 = vrot.slane %v3662_v28, %v7235_v22 }
0x14c6   :  { %p4877_p2 = por %p4876_p1, %p4875_p0 }
0x14c8   :  { %p4878_p3 = pnand %p4877_p2, %p4871_p13 }
0x14c9   :  { %3459 = vadd.xlane.f32.xlu0 %v3458_v36  ;;  %v7242_v36 = vld [vmem:[#allocation70_spill] sm:$0xff] }
0x14ca   :  { %v3156_v16 = vmul.f32 %v3155_v58, %v7242_v36 }
0x14d2   :  { %3467 = vbcast.lane.b32.xlu1 %v3465_v52, 256 }
0x14d6   :  { %3478 = vbcast.lane.b32.xlu1 %v3476_v46, 256 }
0x14da   :  { %3482 = vbcast.lane.b32.xlu1 %v3476_v46, 264 }
0x14de   :  { %2061 = vbcast.lane.b32.xlu1 %v6574_v2, 256 }
0x14df   :  { %3471 = vbcast.lane.b32.xlu0 %v3465_v52, 264 }
0x14e2   :  { %2072 = vbcast.lane.b32.xlu1 %v6579_v43, 256 }
0x14e3   :  { %2065 = vbcast.lane.b32.xlu0 %v6574_v2, 264  ;;  %v233_v2 = vld [vmem:[%s6776_s1 + $0x4] ss:$0 sm:$0xff] }
0x14e4   :  { %v1997_v29 = vadd.f32 %v7237_v53, %v233_v2  ;;  %v2000_v35 = vadd.f32 %v7238_v1, %v233_v2  ;;  %v2005_v8 = vadd.f32 %v7240_v11, %v233_v2  ;;  %v2008_v45 = vadd.f32 %v7241_v17, %v233_v2 }
0x14e7   :  { %2076 = vbcast.lane.b32.xlu0 %v6579_v43, 264 }
0x1511   :  { %v3148_v49 = vpop.f32.mrb[76].mxu1 }
0x1512   :  { %v3152_v21 = vmul.f32 %v3148_v49, %v6515_v60  ;;  %v4383_v54 = vpop.f32.mrb[77].mxu1 }
0x1514   :  { %v3154_v30 = vmul.f32 %v3153_v59, %v3152_v21 }
0x154e   :  { %v3451_v56 = vpop.xlane.xlu1 %3450  ;;  %v3454_v25 = vpop.xlane.xlu0 %3453 }
0x1552   :  { %v3468_v27 = vpop.permute.xlu1 %3467  ;;  %v3457_v13 = vpop.xlane.xlu0 %3456 }
0x1553   :  { %v3488_v55 = vadd.f32 %v3468_v27, %v3451_v56  ;;  %v3157_v56 = vadd.f32 %v3156_v16, %v3154_v30 }
0x1555   :  { %vm3492_vm3 = vcmp.gt.f32.partialorder %v3488_v55, 0.0 }
0x1556   :  { %v3496_v63 = vsel %vm3492_vm3, 1.0, %v3488_v55  ;;  %v3479_v7 = vpop.permute.xlu1 %3478  ;;  %v3460_v23 = vpop.xlane.xlu0 %3459 }
0x1557   :  { %v3500_v18 = vsub.f32 %v3496_v63, %v3468_v27  ;;  %v3490_v44 = vadd.f32 %v3479_v7, %v3457_v13 }
0x1559   :  { %vm3494_vm4 = vcmp.gt.f32.partialorder %v3490_v44, 0.0  ;;  %3509 = vperm.xlu1 %4760, %v3500_v18  }
0x155a   :  { %v3498_v43 = vsel %vm3494_vm4, 1.0, %v3490_v44  ;;  %v3483_v60 = vpop.permute.xlu1 %3482  ;;  %v3472_v37 = vpop.permute.xlu0 %3471 }
0x155b   :  { %v3502_v14 = vsub.f32 %v3498_v43, %v3479_v7  ;;  %v3491_v3 = vadd.f32 %v3483_v60, %v3460_v23  ;;  %v3489_v5 = vadd.f32 %v3472_v37, %v3454_v25  ;;  %v3159_v23 = vrot.slane %v3157_v56, 1 }
0x155d   :  { %vm3495_vm5 = vcmp.gt.f32.partialorder %v3491_v3, 0.0  ;;  %vm3493_vm6 = vcmp.gt.f32.partialorder %v3489_v5, 0.0  ;;  %3515 = vperm.xlu1 %4760, %v3502_v14  }
0x155e   :  { %v3497_v39 = vsel %vm3493_vm6, 1.0, %v3489_v5  ;;  %v2062_v40 = vpop.permute.xlu1 %2061  ;;  %v2066_v38 = vpop.permute.xlu0 %2065  ;;  %v3499_v48 = vsel %vm3495_vm5, 1.0, %v3491_v3 }
0x155f   :  { %v3501_v50 = vsub.f32 %v3497_v39, %v3472_v37  ;;  %v2078_v33 = vmul.f32 %v2062_v40, %v1997_v29  ;;  %v2079_v47 = vmul.f32 %v2066_v38, %v2000_v35  ;;  %v3503_v4 = vsub.f32 %v3499_v48, %v3483_v60 }
0x1561   :  { %v2082_v24 = vadd.f32 %v2079_v47, %v2078_v33  ;;  %3512 = vperm.xlu0 %4761, %v3501_v50   ;;  %3669 = vbcast.lane.b32.xlu1 %v3667_v57, 256 }
0x1562   :  { %v2073_v6 = vpop.permute.xlu1 %2072  ;;  %v2077_v26 = vpop.permute.xlu0 %2076 }
0x1563   :  { %v2083_v12 = vrot.slane %v2082_v24, 4  ;;  %v2080_v51 = vmul.f32 %v2073_v6, %v2005_v8  ;;  %v2081_v19 = vmul.f32 %v2077_v26, %v2008_v45 }
0x1565   :  { %v2084_v20 = vadd.f32 %v2083_v12, %v2082_v24  ;;  %v2089_v9 = vadd.f32 %v2081_v19, %v2080_v51  ;;  %3518 = vperm.xlu0 %4761, %v3503_v4   ;;  %3680 = vbcast.lane.b32.xlu1 %v3678_v61, 256 }
0x1567   :  { %v2085_v32 = vrot.slane %v2084_v20, 2  ;;  %v2090_v62 = vrot.slane %v2089_v9, 4 }
0x1569   :  { %v2086_v52 = vadd.f32 %v2085_v32, %v2084_v20  ;;  %v2091_v46 = vadd.f32 %v2090_v62, %v2089_v9  ;;  %3673 = vbcast.lane.b32.xlu0 %v3667_v57, 264  ;;  %3684 = vbcast.lane.b32.xlu1 %v3678_v61, 264  ;;  %v7243_v61 = vld [vmem:[#allocation43_spill] sm:$0xff] }
0x156a   :  { %v3549_v30 = vrot.slane %v7243_v61, %v7230_v31  ;;  %v3560_v36 = vrot.slane %v7243_v61, %v7235_v22 }
0x156b   :  { %v2092_v49 = vrot.slane %v2091_v46, 2  ;;  %v2087_v54 = vrot.slane %v2086_v52, 1 }
0x156d   :  { %v2093_v25 = vadd.f32 %v2092_v49, %v2091_v46  ;;  %v2088_v27 = vadd.f32 %v2087_v54, %v2086_v52 }
0x156f   :  { %v3162_v13 = vmul.f32 %v3157_v56, %v2088_v27  ;;  %v2094_v55 = vrot.slane %v2093_v25, 1 }
0x1571   :  { %v3167_v63 = vrot.slane %v3162_v13, %v7230_v31  ;;  %v2095_v7 = vadd.f32 %v2094_v55, %v2093_v25 }
0x1573   :  { %v3173_v18 = vmul.f32 %v3167_v63, %v2000_v35  ;;  %v3163_v21 = vmul.f32 %v3159_v23, %v2095_v7  ;;  %v3172_v44 = vmul.f32 %v3167_v63, %v1997_v29 }
0x1575   :  { %v3171_v2 = vrot.slane %v3163_v21, %v7230_v31 }
0x1577   :  { %v3174_v43 = vmul.f32 %v3171_v2, %v2005_v8  ;;  %v3175_v60 = vmul.f32 %v3171_v2, %v2008_v45 }
0x15d8   :  { %v3510_v37 = vpop.permute.xlu1 %3509 }
0x15d9   :  { %v3523_v1 = vrot.slane %v3510_v37, %v6592_v10 }
0x15dc   :  { %v3516_v3 = vpop.permute.xlu1 %3515 }
0x15dd   :  { %v3532_v39 = vrot.slane %v3516_v3, %v6592_v10 }
0x15e0   :  { %v3513_v14 = vpop.permute.xlu0 %3512  ;;  %v3670_v11 = vpop.permute.xlu1 %3669 }
0x15e1   :  { %v3527_v5 = vrot.slane %v3513_v14, %v6595_v15 }
0x15e3   :  { %v3528_v35 = vsel %vm3300_vm13, %v3527_v5, %v3523_v1 }
0x15e4   :  { %v3519_v53 = vpop.permute.xlu0 %3518  ;;  %v3681_v8 = vpop.permute.xlu1 %3680 }
0x15e5   :  { %v3536_v40 = vrot.slane %v3519_v53, %v6595_v15 }
0x15e7   :  { %v3537_v29 = vsel %vm3300_vm13, %v3536_v40, %v3532_v39 }
0x15e8   :  { %v3538_v38 = vsel %vm3311_vm14, %v3537_v29, %v3528_v35  ;;  %v3674_v17 = vpop.permute.xlu0 %3673  ;;  %v3685_v45 = vpop.permute.xlu1 %3684 }
0x15e9   :  { %v3540_v50 = vadd.f32 %v3538_v38, %v6639_v41 }
0x15eb   :  { %v3694_v33 = vsub.f32 1.0, %v3540_v50 }
0x15ed   :  { %v3695_v47 = vmul.f32 -1e+11, %v3694_v33 }
0x15ef   :  { %v3700_v48 = vrot.slane %v3695_v47, %v7230_v31  ;;  %v3711_v42 = vrot.slane %v3695_v47, %v7235_v22 }
0x15f1   :  { %3706 = vbcast.lane.b32.xlu0 %v3700_v48, 264  ;;  %3702 = vbcast.lane.b32.xlu1 %v3700_v48, 256 }
0x1610   :  { %3178 = vadd.xlane.f32.xlu0 %v3173_v18 }
0x1614   :  { %3180 = vadd.xlane.f32.xlu0 %v3174_v43 }
0x1615   :  { %3176 = vadd.xlane.f32.xlu1 %v3172_v44 }
0x1618   :  { %3182 = vadd.xlane.f32.xlu0 %v3175_v60 }
0x1626   :  { %3713 = vbcast.lane.b32.xlu1 %v3711_v42, 256 }
0x162e   :  { %3717 = vbcast.lane.b32.xlu0 %v3711_v42, 264 }
0x1663   :  { %v3707_v24 = vpop.permute.xlu0 %3706  ;;  %v3703_v6 = vpop.permute.xlu1 %3702 }
0x169d   :  { %v6675_v41 = vpop.xlane.xlu0 %3178 }
0x169e   :  { %v3691_v26 = vadd.f32 %v3674_v17, %v6675_v41  ;;  %v3581_v23 = vand.u32 2147483647, %v6675_v41 }
0x16a0   :  { %v6678_v28 = vadd.f32 %v3707_v24, %v3691_v26  ;;  %v3585_v21 = vsub.f32 0.0, %v3581_v23 }
0x16a1   :  { %v6680_v4 = vpop.xlane.xlu0 %3180 }
0x16a2   :  { %v6682_v12 = vpop.xlane.xlu1 %3176  ;;  %3790 = vperm.xlu0 %4761, %v6678_v28   ;;  %v3692_v9 = vadd.f32 %v3681_v8, %v6680_v4  ;;  %v3582_v44 = vand.u32 2147483647, %v6680_v4  ;;  %v3590_v43 = vmul.f32 1.442695, %v3585_v21 }
0x16a3   :  { %v3690_v51 = vadd.f32 %v3670_v11, %v6682_v12  ;;  %v3580_v7 = vand.u32 2147483647, %v6682_v12 }
0x16a4   :  { %v3586_v60 = vsub.f32 0.0, %v3582_v44 }
0x16a5   :  { %v6686_v19 = vpop.xlane.xlu0 %3182  ;;  %v6688_v57 = vadd.f32 %v3703_v6, %v3690_v51  ;;  %v3584_v18 = vsub.f32 0.0, %v3580_v7  ;;  %v3541_v51 = vmax.f32 %v6682_v12, 0.0 }
0x16a6   :  { %v3714_v20 = vpop.permute.xlu1 %3713  ;;  %v3693_v59 = vadd.f32 %v3685_v45, %v6686_v19  ;;  %v3583_v37 = vand.u32 2147483647, %v6686_v19  ;;  %v3592_v3 = vmul.f32 1.442695, %v3586_v60 }
0x16a7   :  { %3787 = vperm.xlu1 %4760, %v6688_v57   ;;  %v6693_v58 = vadd.f32 %v3714_v20, %v3692_v9  ;;  %v3588_v2 = vmul.f32 1.442695, %v3584_v18 }
0x16a8   :  { %v3587_v5 = vsub.f32 0.0, %v3583_v37 }
0x16a9   :  { %v3718_v32 = vpop.permute.xlu0 %3717  ;;  %4804 = vpow2.f32 %v3588_v2 }
0x16aa   :  { %v6695_v62 = vadd.f32 %v3718_v32, %v3693_v59  ;;  %4806 = vpow2.f32 %v3590_v43  ;;  %v3594_v53 = vmul.f32 1.442695, %v3587_v5 }
0x16ab   :  { %3793 = vperm.xlu1 %4760, %v6693_v58   ;;  %4808 = vpow2.f32 %v3592_v3 }
0x16ac   :  { %3796 = vperm.xlu0 %4761, %v6695_v62   ;;  %4810 = vpow2.f32 %v3594_v53 }
0x16b0   :  { %3837 = vbcast.lane.b32.xlu0 %v7236_v34, 256 }
0x16b3   :  { %v4805_v39 = vpop.eup %4804 }
0x16b4   :  { %3841 = vbcast.lane.b32.xlu0 %v7236_v34, 264  ;;  %v3596_v40 = vadd.f32 1.0, %v4805_v39  ;;  %v4807_v35 = vpop.eup %4806 }
0x16b5   :  { %v3597_v50 = vadd.f32 1.0, %v4807_v35  ;;  %v4809_v33 = vpop.eup %4808 }
0x16b6   :  { %4812 = vlog2.f32 %v3596_v40  ;;  %v3598_v17 = vadd.f32 1.0, %v4809_v33  ;;  %v4811_v45 = vpop.eup %4810 }
0x16b7   :  { %4814 = vlog2.f32 %v3597_v50  ;;  %v3599_v26 = vadd.f32 1.0, %v4811_v45  ;;  %v4106_v50 = vmul.f32 -1.442695, %v6688_v57 }
0x16b8   :  { %3551 = vbcast.lane.b32.xlu0 %v3549_v30, 256  ;;  %4816 = vlog2.f32 %v3598_v17 }
0x16b9   :  { %4818 = vlog2.f32 %v3599_v26 }
0x16ba   :  { %4820 = vpow2.f32 %v4106_v50 }
0x16bc   :  { %3555 = vbcast.lane.b32.xlu0 %v3549_v30, 264  ;;  %v3542_v30 = vmax.f32 %v6675_v41, 0.0 }
0x16c0   :  { %3562 = vbcast.lane.b32.xlu0 %v3560_v36, 256  ;;  %v4813_v20 = vpop.eup %4812 }
0x16c4   :  { %3566 = vbcast.lane.b32.xlu0 %v3560_v36, 264  ;;  %v3601_v36 = vmul.f32 0.6931472, %v4813_v20 }
0x1721   :  { %v3791_v52 = vpop.permute.xlu0 %3790 }
0x1722   :  { %v3805_v34 = vrot.slane %v3791_v52, %v6595_v15 }
0x1726   :  { %v3788_v16 = vpop.permute.xlu1 %3787 }
0x1727   :  { %v3801_v46 = vrot.slane %v3788_v16, %v6592_v10  ;;  %v4815_v16 = vpop.eup %4814 }
0x1729   :  { %v3806_v27 = vsel %vm3300_vm13, %v3805_v34, %v3801_v46  ;;  %v4817_v34 = vpop.eup %4816 }
0x172a   :  { %v3794_v49 = vpop.permute.xlu1 %3793 }
0x172b   :  { %v3810_v54 = vrot.slane %v3794_v49, %v6592_v10  ;;  %v3797_v56 = vpop.permute.xlu0 %3796 }
0x172c   :  { %v3814_v25 = vrot.slane %v3797_v56, %v6595_v15  ;;  %v3603_v56 = vmul.f32 0.6931472, %v4815_v16 }
0x172e   :  { %v3815_v13 = vsel %vm3300_vm13, %v3814_v25, %v3810_v54  ;;  %v3543_v54 = vmax.f32 %v6680_v4, 0.0 }
0x172f   :  { %v3816_v55 = vsel %vm3311_vm14, %v3815_v13, %v3806_v27  ;;  %v3838_v14 = vpop.permute.xlu0 %3837 }
0x1730   :  { %v3818_v63 = vsel %vm2384_vm8, %v3816_v55, -inf  ;;  %v3544_v55 = vmax.f32 %v6686_v19, 0.0 }
0x1731   :  { %3819 = vmax.xlane.f32.xlu1 %v3818_v63  ;;  %v4819_v63 = vpop.eup %4818 }
0x1732   :  { %v3607_v18 = vmul.f32 0.6931472, %v4819_v63 }
0x1733   :  { %v3842_v1 = vpop.permute.xlu0 %3841 }
0x1737   :  { %v3552_v29 = vpop.permute.xlu0 %3551 }
0x1738   :  { %v3572_v24 = vmul.f32 %v3552_v29, %v6682_v12 }
0x173a   :  { %v3576_v59 = vsub.f32 %v3541_v51, %v3572_v24 }
0x173b   :  { %v3556_v42 = vpop.permute.xlu0 %3555 }
0x173c   :  { %v3573_v32 = vmul.f32 %v3556_v42, %v6675_v41  ;;  %v3608_v49 = vadd.f32 %v3601_v36, %v3576_v59  ;;  %v3605_v41 = vmul.f32 0.6931472, %v4817_v34  ;;  %v4107_v59 = vmul.f32 -1.442695, %v6678_v28 }
0x173e   :  { %v3577_v52 = vsub.f32 %v3542_v30, %v3573_v32  ;;  %v4108_v32 = vmul.f32 -1.442695, %v6693_v58 }
0x173f   :  { %v3563_v9 = vpop.permute.xlu0 %3562 }
0x1740   :  { %v3574_v46 = vmul.f32 %v3563_v9, %v6680_v4  ;;  %v3609_v13 = vadd.f32 %v3603_v56, %v3577_v52  ;;  %v3755_v4 = vrot.slane %v7239_v0, %v7230_v31 }
0x1742   :  { %v3578_v25 = vsub.f32 %v3543_v54, %v3574_v46 }
0x1743   :  { %v3567_v12 = vpop.permute.xlu0 %3566 }
0x1744   :  { %v3575_v27 = vmul.f32 %v3567_v12, %v6686_v19  ;;  %v3610_v23 = vadd.f32 %v3605_v41, %v3578_v25 }
0x1746   :  { %v3579_v7 = vsub.f32 %v3544_v55, %v3575_v27 }
0x1748   :  { %v3611_v21 = vadd.f32 %v3607_v18, %v3579_v7 }
0x17be   :  { %v3820_v38 = vpop.xlane.xlu1 %3819 }
0x17bf   :  { %v3825_v47 = vrot.slane %v3820_v38, %v7230_v31  ;;  %v3829_v48 = vrot.slane %v3820_v38, %v7235_v22 }
0x17c1   :  { %vm3832_vm7 = vcmp.eq.f32.partialorder %v6688_v57, %v3825_v47  ;;  %vm3835_vm9 = vcmp.eq.f32.partialorder %v6695_v62, %v3829_v48  ;;  %vm3833_vm10 = vcmp.eq.f32.partialorder %v6678_v28, %v3825_v47  ;;  %vm3834_vm11 = vcmp.eq.f32.partialorder %v6693_v58, %v3829_v48  ;;  %v4821_v57 = vpop.eup %4820 }
0x17c2   :  { %v3843_v11 = vsel %vm3832_vm7, %v3838_v14, 16  ;;  %v3846_v8 = vsel %vm3835_vm9, %v3842_v1, 16  ;;  %v3844_v6 = vsel %vm3833_vm10, %v3842_v1, 16  ;;  %v3845_v61 = vsel %vm3834_vm11, %v3838_v14, 16 }
0x17c3   :  { %3848 = vperm.xlu0 %4761, %v3843_v11   ;;  %3857 = vperm.xlu1 %4760, %v3846_v8   ;;  %v3739_v26 = vadd.f32 1.0, %v4821_v57 }
0x17c5   :  { %4822 = vrcp.f32 %v3739_v26 }
0x17c6   :  { %4824 = vpow2.f32 %v4107_v59 }
0x17c7   :  { %3851 = vperm.xlu0 %4761, %v3844_v6   ;;  %v3766_v6 = vrot.slane %v7239_v0, %v7235_v22  ;;  %4826 = vpow2.f32 %v4108_v32 }
0x17cb   :  { %3854 = vperm.xlu0 %4761, %v3845_v61   ;;  %v4109_v61 = vmul.f32 -1.442695, %v6695_v62 }
0x17cd   :  { %4828 = vpow2.f32 %v4109_v61 }
0x17cf   :  { %3617 = vperm.xlu0 %4761, %v3608_v49   ;;  %v4823_v20 = vpop.eup %4822 }
0x17d0   :  { %v4825_v22 = vpop.eup %4824 }
0x17d1   :  { %v3740_v16 = vadd.f32 1.0, %v4825_v22  ;;  %v4827_v46 = vpop.eup %4826 }
0x17d2   :  { %v3741_v49 = vadd.f32 1.0, %v4827_v46 }
0x17d3   :  { %3620 = vperm.xlu0 %4761, %v3609_v13   ;;  %4830 = vrcp.f32 %v3740_v16 }
0x17d4   :  { %4832 = vrcp.f32 %v3741_v49 }
0x17d7   :  { %3623 = vperm.xlu0 %4761, %v3610_v23   ;;  %v4829_v12 = vpop.eup %4828 }
0x17d8   :  { %v3742_v28 = vadd.f32 1.0, %v4829_v12 }
0x17da   :  { %4834 = vrcp.f32 %v3742_v28 }
0x17db   :  { %3626 = vperm.xlu0 %4761, %v3611_v21  }
0x17dd   :  { %v4831_v62 = vpop.eup %4830 }
0x17de   :  { %v4833_v41 = vpop.eup %4832 }
0x17df   :  { %3757 = vbcast.lane.b32.xlu0 %v3755_v4, 256 }
0x17e4   :  { %v4835_v21 = vpop.eup %4834 }
0x1842   :  { %v3849_v44 = vpop.permute.xlu0 %3848  ;;  %v3858_v43 = vpop.permute.xlu1 %3857 }
0x1843   :  { %v3875_v19 = vrot.slane %v3858_v43, %v6595_v15  ;;  %v3862_v14 = vrot.slane %v3849_v44, %v6592_v10 }
0x1846   :  { %v3852_v2 = vpop.permute.xlu0 %3851 }
0x1847   :  { %v3866_v60 = vrot.slane %v3852_v2, %v6595_v15 }
0x1849   :  { %v3867_v5 = vsel %vm3300_vm13, %v3866_v60, %v3862_v14 }
0x184a   :  { %v3855_v37 = vpop.permute.xlu0 %3854 }
0x184b   :  { %v3871_v3 = vrot.slane %v3855_v37, %v6592_v10 }
0x184d   :  { %v3876_v53 = vsel %vm3300_vm13, %v3875_v19, %v3871_v3 }
0x184e   :  { %v3618_v1 = vpop.permute.xlu0 %3617  ;;  %v3877_v31 = vsel %vm3311_vm14, %v3876_v53, %v3867_v5 }
0x184f   :  { %v3878_v39 = vsel %vm2384_vm8, %v3877_v31, 2147483647  ;;  %v3631_v48 = vrot.slane %v3618_v1, %v6592_v10 }
0x1850   :  { %v3880_v40 = vshra.s32 %v3878_v39, 16  ;;  %v3879_v30 = vand.u32 65535, %v3878_v39 }
0x1852   :  { %v3621_v35 = vpop.permute.xlu0 %3620  ;;  %v3882_v29 = vcvt.s32.f32 %v3880_v40  ;;  %v3881_v36 = vcvt.s32.f32 %v3879_v30 }
0x1853   :  { %v3635_v33 = vrot.slane %v3621_v35, %v6595_v15 }
0x1854   :  { %3883 = vmin.xlane.f32.xlu0 %v3882_v29 }
0x1855   :  { %v3636_v8 = vsel %vm3300_vm13, %v3635_v33, %v3631_v48 }
0x1856   :  { %v3624_v38 = vpop.permute.xlu0 %3623 }
0x1857   :  { %v3640_v42 = vrot.slane %v3624_v38, %v6592_v10 }
0x185a   :  { %v3627_v47 = vpop.permute.xlu0 %3626 }
0x185b   :  { %v3644_v11 = vrot.slane %v3627_v47, %v6595_v15 }
0x185d   :  { %v3645_v17 = vsel %vm3300_vm13, %v3644_v11, %v3640_v42 }
0x185e   :  { %v3646_v45 = vsel %vm3311_vm14, %v3645_v17, %v3636_v8  ;;  %v3758_v51 = vpop.permute.xlu0 %3757 }
0x185f   :  { %v3648_v24 = vsel %vm2384_vm8, %v3646_v45, 0.0  ;;  %v3778_v9 = vmul.f32 %v4823_v20, %v3758_v51 }
0x1860   :  { %3649 = vadd.xlane.f32.xlu1 %v3648_v24 }
0x186a   :  { %3768 = vbcast.lane.b32.xlu0 %v3766_v6, 256 }
0x1871   :  { %3761 = vbcast.lane.b32.xlu1 %v3755_v4, 264 }
0x1875   :  { %3772 = vbcast.lane.b32.xlu1 %v3766_v6, 264 }
0x1879   :  { %3900 = vperm.xlu1 %4760, %v3778_v9  }
0x18e1   :  { %v3884_v0 = vpop.xlane.xlu0 %3883 }
0x18e2   :  { %vm3885_vm12 = vcmp.eq.f32.partialorder %v3882_v29, %v3884_v0  ;;  %v3890_v60 = vcvt.f32.s32 %v3884_v0 }
0x18e3   :  { %v3886_v52 = vsel %vm3885_vm12, %v3881_v36, inf }
0x18e4   :  { %3887 = vmin.xlane.f32.xlu0 %v3886_v52  ;;  %v3891_v14 = vshll.u32 %v3890_v60, 16 }
0x18e5   :  { %v3769_v13 = vpop.permute.xlu0 %3768 }
0x18e6   :  { %v3780_v63 = vmul.f32 %v4833_v41, %v3769_v13 }
0x18ed   :  { %v3650_v54 = vpop.xlane.xlu1 %3649 }
0x18ee   :  { %v3651_v58 = vrot.slane %v3650_v54, 4 }
0x18f0   :  { %v3652_v56 = vadd.f32 %v3651_v58, %v3650_v54 }
0x18f1   :  { %v3762_v34 = vpop.permute.xlu1 %3761 }
0x18f2   :  { %v3653_v25 = vrot.slane %v3652_v56, 2  ;;  %v3779_v27 = vmul.f32 %v4831_v62, %v3762_v34 }
0x18f4   :  { %3903 = vperm.xlu1 %4760, %v3779_v27   ;;  %v3654_v55 = vadd.f32 %v3653_v25, %v3652_v56 }
0x18f5   :  { %v3773_v23 = vpop.permute.xlu1 %3772 }
0x18f6   :  { %v3655_v7 = vrot.slane %v3654_v55, 1  ;;  %v3781_v4 = vmul.f32 %v4835_v21, %v3773_v23 }
0x18f8   :  { %3906 = vperm.xlu1 %4760, %v3780_v63   ;;  %v3656_v18 = vadd.f32 %v3655_v7, %v3654_v55 }
0x18f9   :  { %v3901_v44 = vpop.permute.xlu1 %3900 }
0x18fa   :  { %4426 = vpush %v3656_v18  ;;  %v3914_v1 = vrot.slane %v3901_v44, %v6592_v10 }
0x18fc   :  { %3909 = vperm.xlu1 %4760, %v3781_v4  }
0x192b   :  { %s4427_s1 = spop %4426 }
0x192c   :  { %s3660_s15 = smul.f32 0.03125, %s4427_s1 }
0x192e   :  { %v3934_v50 = vstv %s3660_s15 }
0x1971   :  { %v3888_v43 = vpop.xlane.xlu0 %3887 }
0x1972   :  { %v3889_v37 = vcvt.f32.s32 %v3888_v43 }
0x1973   :  { %v3904_v2 = vpop.permute.xlu1 %3903 }
0x1974   :  { %v3918_v3 = vrot.slane %v3904_v2, %v6595_v15  ;;  %v3892_v5 = vadd.s32 %v3891_v14, %v3889_v37 }
0x1976   :  { %v3919_v40 = vsel %vm3300_vm13, %v3918_v3, %v3914_v1  ;;  %v3893_v29 = vcvt.s32.f32 %v3892_v5 }
0x1977   :  { %v3907_v19 = vpop.permute.xlu1 %3906 }
0x1978   :  { %v3923_v31 = vrot.slane %v3907_v19, %v6592_v10 }
0x197b   :  { %v3910_v53 = vpop.permute.xlu1 %3909 }
0x197c   :  { %v3927_v39 = vrot.slane %v3910_v53, %v6595_v15 }
0x197e   :  { %v3928_v35 = vsel %vm3300_vm13, %v3927_v39, %v3923_v31 }
0x197f   :  { %v3929_v38 = vsel %vm3311_vm14, %v3928_v35, %v3919_v40 }
0x1980   :  { %3931 = vst.msk [vmem:[#allocation11] sm:$0x3] %vm2384_vm8, %v3929_v38 }
0x1981   :  { %3933 = vst.msk [vmem:[#allocation11] sm:$0x3] %vm3932_vm15, %v3893_v29 }
0x1982   :  { %3937 = vst.msk [vmem:[#allocation11] sm:$0x3] %vm3936_vm0, %v3934_v50 }
0x1983   :  { %4881 = shalt.err (!%p4878_p3)
}
0x1984   :  { %s4882_s28 = scalar_lea.hbm %s6781_s6, 128 }
0x1985   :  { %p4883_p4 = scmp.ne.s32.totalorder %s6781_s6, %s4882_s28  ;;  %p4886_p5 = scmp.lt.u32.totalorder %s4882_s28, %s6781_s6 }
0x1987   :  { %p4888_p6 = pnand %p4886_p5, %p4883_p4 }
0x1989   :  { %4891 = shalt.err (!%p4888_p6)
}
0x198a   :  { %3947 = dma.vmem_to_hbm [thread:$0]  %s3945_s24, 128, %s6781_s6, [#allocation8]  }
0x198b   :  { %4900 = dma.done.wait [#allocation8], 128  }
0x198c   :  { %4901 = vsyncadd [#allocation8], 4294967168 }
0x198d   :  { %3951 = vsyncpa [#allocation7], 1 }
0x198e   :  { %3952 = vsyncpa [#allocation8], 1 }
0x198f   :  { %3953 = vsyncpa [#allocation9], 1 }
0x1990   :  { %3954 = vsyncmov [#allocation5] }
0x1993   :  { %s3955_s3 = vpop.sfrf %3954 }
0x1994   :  { %p4110_p7 = scmp.ne.s32.totalorder %s3955_s3, 0 }
0x1996   :  { %3959 = shalt.err (%p4110_p7)  }
0x1997   :  { %3961 = vsyncmov [#allocation5 + $0x1] }
0x199a   :  { %s3962_s10 = vpop.sfrf %3961 }
0x199b   :  { %p4111_p8 = scmp.ne.s32.totalorder %s3962_s10, 0 }
0x199d   :  { %3966 = shalt.err (%p4111_p8)  }

</bundles_post_ra>
